<compile_context>
chip_gen: v5e
topology: v5e:2x2
jax: 0.10.0
libtpu: 0.0.40
codegen_flags: <defaults>
</compile_context>

<pallas_src>
import functools

import jax
import jax.numpy as jnp
from jax.experimental import pallas as pl
from jax.experimental.pallas import tpu as pltpu


# Row tile for the gridded LN+QKV and out-proj+FF kernels (review: 512 for v5e/v6e,
# 256-512 on v7x; the explicit vmem_limit below encodes the actual footprint).
ROW_TILE = 512

# MXU operand dtype.  bf16 operands + f32 accumulation per the v6e/v7x review items;
# set to jnp.float32 for bit-exact parity with the torch float32 reference.
MXU_DTYPE = jnp.bfloat16


# ----------------------------- small helpers --------------------------------

def _seq_tile(n):
    """Largest row tile <= ROW_TILE that is a multiple of 8 and divides n (else n)."""
    if n <= ROW_TILE:
        return n
    t = (ROW_TILE // 8) * 8
    while t >= 8:
        if n % t == 0:
            return t
        t -= 8
    return n


def _nbytes(shape, dtype):
    size = 1
    for d in shape:
        size *= d
    return size * jnp.dtype(dtype).itemsize


def _mosaic_params(dims, vmem_bytes):
    # Explicit scoped-VMEM limit (review item): actual footprint + headroom, clamped.
    return pltpu.CompilerParams(
        dimension_semantics=dims,
        vmem_limit_bytes=int(min(max(vmem_bytes, 16 << 20), 100 << 20)))


def _layernorm(x, g, b, eps):
    mu = jnp.mean(x, axis=-1, keepdims=True)
    xc = x - mu
    var = jnp.mean(xc * xc, axis=-1, keepdims=True)
    return xc * jax.lax.rsqrt(var + eps) * g + b


def _gelu_exact(x):
    # exact GELU (matches torch.nn.GELU default, erf form); f32 VPU/EUP math
    return 0.5 * x * (1.0 + jax.lax.erf(x * 0.7071067811865476))


def _softmax_last(x):
    x = x - jnp.max(x, axis=-1, keepdims=True)
    e = jnp.exp(x)
    return e * pl.reciprocal(jnp.sum(e, axis=-1, keepdims=True), approx=True)


def _mxu(x):
    return x.astype(MXU_DTYPE)


def _dot(a, b):
    return jnp.dot(_mxu(a), _mxu(b), preferred_element_type=jnp.float32)


def _dot_nt(a, b):
    # a @ b.T contracting last dims (no in-kernel transpose), MXU-dtype operands
    return jax.lax.dot_general(_mxu(a), _mxu(b), (((1,), (1,)), ((), ())),
                               preferred_element_type=jnp.float32)


# ---------------- kernel 1: LayerNorm1 + QKV projection + Q/K mask*scale ----------------

def _ln_qkv_kernel(x_ref, m_ref, g_ref, b_ref, w_ref, bias_ref, o_ref, *, eps, qk_cols, scale):
    y = _layernorm(x_ref[...], g_ref[...], b_ref[...], eps)            # f32 VPU math
    qkv = jnp.dot(y.astype(w_ref.dtype), w_ref[...],
                  preferred_element_type=jnp.float32) + bias_ref[...]  # (tile, 3*HD)
    # Mask + 1/sqrt(sqrt(hd)) scale on the Q and K columns (first 2*HD lanes), hoisted
    # out of the attention kernel.  Lane-dense elementwise pass; V columns untouched.
    col = jax.lax.broadcasted_iota(jnp.int32, (1, qkv.shape[-1]), 1)
    factor = jnp.where(col < qk_cols, m_ref[...] * scale, 1.0)         # (tile, 3*HD)
    o_ref[...] = qkv * factor


def ln_qkv(xp, mask_col, g, b, w, bias, scale, eps=1e-5):
    B, n_rows, D = xp.shape
    O = w.shape[1]                                   # 3 * HD
    tile = _seq_tile(n_rows)
    grid = (B, n_rows // tile)
    blocks = (_nbytes((tile, D), jnp.float32) + _nbytes((tile, 1), jnp.float32)
              + 2 * _nbytes((1, D), jnp.float32) + _nbytes((D, O), w.dtype)
              + _nbytes((1, O), jnp.float32) + _nbytes((tile, O), jnp.float32))
    return pl.pallas_call(
        functools.partial(_ln_qkv_kernel, eps=eps, qk_cols=2 * (O // 3), scale=scale),
        out_shape=jax.ShapeDtypeStruct((B, n_rows, O), jnp.float32),
        grid=grid,
        in_specs=[pl.BlockSpec((None, tile, D), lambda bi, i: (bi, i, 0)),
                  pl.BlockSpec((None, tile, 1), lambda bi, i: (bi, i, 0)),   # padded mask col
                  pl.BlockSpec((1, D), lambda bi, i: (0, 0)),
                  pl.BlockSpec((1, D), lambda bi, i: (0, 0)),
                  pl.BlockSpec((D, O), lambda bi, i: (0, 0)),                # resident weight
                  pl.BlockSpec((1, O), lambda bi, i: (0, 0))],
        out_specs=pl.BlockSpec((None, tile, O), lambda bi, i: (bi, i, 0)),
        compiler_params=_mosaic_params(
            ("parallel", "parallel"),
            2 * blocks + _nbytes((tile, O), jnp.float32) + (4 << 20)),
    )(xp, mask_col, g, b, w, bias)


# ---------------- kernel 2: Nystrom attention (all heads per grid step) ----------------

def _nystrom_attn_kernel(mr_ref, qkv_ref, s_ref, eye_ref, o_ref, *,
                         num_head, head_dim, num_landmarks, ns_iters=6):
    H, hd, L = num_head, head_dim, num_landmarks
    HD = H * hd

    mr = mr_ref[...]                                # (1, n) f32 key/pad mask
    neg = 1e9 * (1.0 - mr)                          # f32 penalty for masked keys
    S = s_ref[...]                                  # (L, n) segment-mean matrix
    I = eye_ref[...]                                # (L, L) f32 identity

    # Dense, lane-wide slices (Q/K are already mask+scaled in kernel 1).
    q_all = qkv_ref[:, 0 * HD:1 * HD]               # (n, HD) f32
    k_all = qkv_ref[:, 1 * HD:2 * HD]
    v_all = qkv_ref[:, 2 * HD:3 * HD]

    # Landmark (segment) means for ALL heads: two full-width MXU matmuls.
    q_lm = jnp.dot(S, q_all.astype(S.dtype), preferred_element_type=jnp.float32)  # (L, HD)
    k_lm = jnp.dot(S, k_all.astype(S.dtype), preferred_element_type=jnp.float32)  # (L, HD)

    # --- ker2 (landmark x landmark) per head, then Newton-Schulz batched over heads ---
    k2_list, k2t_list = [], []
    for h in range(H):
        ql = q_lm[:, h * hd:(h + 1) * hd]
        kl = k_lm[:, h * hd:(h + 1) * hd]
        k2 = _softmax_last(_dot_nt(ql, kl))                              # (L, L) f32
        k2_list.append(k2)
        # k2.T via an I @ k2^T matmul (avoids an in-kernel minor-dim transpose)
        k2t_list.append(jax.lax.dot_general(I, k2, (((1,), (1,)), ((), ())),
                                            preferred_element_type=jnp.float32))
    ker2 = jnp.stack(k2_list, axis=0)                                    # (H, L, L) f32
    ker2_t = jnp.stack(k2t_list, axis=0)

    def bmm(a, b):                                   # batched (H, L, L) matmul, f32
        return jnp.einsum('hij,hjk->hik', a, b, preferred_element_type=jnp.float32)

    # TODO(synk): per-(batch,head) max column-sum init; torch "original" init is global.
    denom = jnp.max(jnp.sum(ker2, axis=-2, keepdims=True), axis=-1, keepdims=True)  # (H,1,1)
    Z = ker2_t * pl.reciprocal(denom, approx=True)
    for _ in range(ns_iters):                        # Newton-Schulz, f32 throughout
        KZ = bmm(ker2, Z)
        inner = 7.0 * I - KZ
        inner = 15.0 * I - bmm(KZ, inner)
        inner = 13.0 * I - bmm(KZ, inner)
        Z = 0.25 * bmm(Z, inner)

    # --- per-head attention; outputs concatenated into ONE dense (n, HD) store ---
    # TODO(synk): for large H convert to lax.fori_loop over a VMEM scratch (or grid over
    # (B, H)) to bound vreg live ranges; intermediates here are per-iteration only.
    outs = []
    for h in range(H):
        sl = slice(h * hd, (h + 1) * hd)
        q, k, v = q_all[:, sl], k_all[:, sl], v_all[:, sl]
        ql, kl = q_lm[:, sl], k_lm[:, sl]
        ker1 = _softmax_last(_dot_nt(q, kl))                             # (n, L)
        ker3 = _softmax_last(_dot_nt(ql, k) - neg)                       # (L, n)
        ctx = _dot(ker3, v)                                              # (L, hd)
        zctx = jnp.dot(Z[h], ctx, preferred_element_type=jnp.float32)    # (L, hd) f32
        outs.append(_dot(ker1, zctx))                                    # (n, hd)
    o_ref[...] = jnp.concatenate(outs, axis=-1)                          # lane-dense store


def nystrom_attention(mask_row, qkv, S, eye, num_head, head_dim, num_landmarks):
    B, n, threeHD = qkv.shape
    HD = num_head * head_dim
    L = num_landmarks
    blocks = (_nbytes((1, n), jnp.float32) + _nbytes((n, threeHD), jnp.float32)
              + _nbytes((L, n), S.dtype) + _nbytes((L, L), jnp.float32)
              + _nbytes((n, HD), jnp.float32))
    scratch = 6 * _nbytes((n, HD), jnp.float32)      # q/k/v copies, softmax mats, concat
    return pl.pallas_call(
        functools.partial(_nystrom_attn_kernel, num_head=num_head,
                          head_dim=head_dim, num_landmarks=num_landmarks),
        out_shape=jax.ShapeDtypeStruct((B, n, HD), jnp.float32),
        grid=(B,),
        in_specs=[pl.BlockSpec((None, 1, n), lambda b: (b, 0, 0)),       # key mask (lane-dense)
                  pl.BlockSpec((None, n, threeHD), lambda b: (b, 0, 0)),
                  pl.BlockSpec((L, n), lambda b: (0, 0)),                # constant S
                  pl.BlockSpec((L, L), lambda b: (0, 0))],               # constant identity
        out_specs=pl.BlockSpec((None, n, HD), lambda b: (b, 0, 0)),
        compiler_params=_mosaic_params(("parallel",), 2 * blocks + scratch + (4 << 20)),
    )(mask_row, qkv, S, eye)


# ---------------- kernel 3: W_o + residual + LayerNorm2 + FF(GELU) + residual ----------------

def _outproj_ln_ff_kernel(x_ref, a_ref, wo_ref, bo_ref, g2_ref, beta2_ref,
                          w1_ref, b1_ref, w2_ref, bff2_ref, o_ref, *, eps):
    x = x_ref[...]                                                        # (tn, D) residual
    a = a_ref[...]                                                        # (tn, HD) attention
    mha = x + jnp.dot(a.astype(wo_ref.dtype), wo_ref[...],
                      preferred_element_type=jnp.float32) + bo_ref[...]   # dropout1 = id
    y = _layernorm(mha, g2_ref[...], beta2_ref[...], eps)
    h = jnp.dot(y.astype(w1_ref.dtype), w1_ref[...],
                preferred_element_type=jnp.float32) + b1_ref[...]
    h = _gelu_exact(h)
    o_ref[...] = mha + jnp.dot(h.astype(w2_ref.dtype), w2_ref[...],
                               preferred_element_type=jnp.float32) + bff2_ref[...]  # dropout2 = id


def outproj_ln_ff(x, attn, wo, bo, g2, beta2, w1, b1, w2, bff2, eps=1e-5):
    B, N, D = x.shape
    HD = attn.shape[-1]
    Fd = w1.shape[1]
    tn = _seq_tile(N)
    grid = (B, N // tn)
    blocks = (2 * _nbytes((tn, D), jnp.float32) + _nbytes((tn, HD), jnp.float32)
              + _nbytes((HD, D), wo.dtype) + _nbytes((D, Fd), w1.dtype)
              + _nbytes((Fd, D), w2.dtype)
              + 4 * _nbytes((1, D), jnp.float32) + _nbytes((1, Fd), jnp.float32))
    scratch = _nbytes((tn, Fd), jnp.float32) + 2 * _nbytes((tn, D), jnp.float32)
    return pl.pallas_call(
        functools.partial(_outproj_ln_ff_kernel, eps=eps),
        out_shape=jax.ShapeDtypeStruct((B, N, D), jnp.float32),
        grid=grid,
        in_specs=[pl.BlockSpec((None, tn, D), lambda b, i: (b, i, 0)),    # X (residual)
                  pl.BlockSpec((None, tn, HD), lambda b, i: (b, i, 0)),   # attn (first N rows)
                  pl.BlockSpec((HD, D), lambda b, i: (0, 0)),             # resident weights
                  pl.BlockSpec((1, D), lambda b, i: (0, 0)),
                  pl.BlockSpec((1, D), lambda b, i: (0, 0)),
                  pl.BlockSpec((1, D), lambda b, i: (0, 0)),
                  pl.BlockSpec((D, Fd), lambda b, i: (0, 0)),
                  pl.BlockSpec((1, Fd), lambda b, i: (0, 0)),
                  pl.BlockSpec((Fd, D), lambda b, i: (0, 0)),
                  pl.BlockSpec((1, D), lambda b, i: (0, 0))],
        out_specs=pl.BlockSpec((None, tn, D), lambda b, i: (b, i, 0)),
        compiler_params=_mosaic_params(("parallel", "parallel"),
                                       2 * blocks + scratch + (4 << 20)),
    )(x, attn, wo, bo, g2, beta2, w1, b1, w2, bff2)


# ----------------------------- forward pass --------------------------------

def nystrom_block_forward(params, X, mask, cfg):
    B, N, D = X.shape
    H, hd, L = cfg['num_head'], cfg['head_dim'], cfg['num_landmarks']
    HD = H * hd
    eps = 1e-5
    scale = 1.0 / (hd ** 0.25)                       # 1 / sqrt(sqrt(head_dim))

    pad_len = L - N % L                              # torch pads a full L even when divisible
    n_pad = N + pad_len
    seg = n_pad // L

    # Pad X and mask once with zeros; every later kernel indexes the padded arrays.
    # (Padded rows: Q/K are zeroed by the mask, padded V rows receive exactly-zero
    #  softmax weight via the -1e9 key penalty, so the first N output rows match the
    #  torch reference which pads AFTER norm1.)
    xp = jnp.pad(X, ((0, 0), (0, pad_len), (0, 0)))
    mp = jnp.pad(mask.astype(jnp.float32), ((0, 0), (0, pad_len)))

    # Fused QKV weight (MXU dtype) / bias (f32) — constant-folded under jit.
    wqkv = jnp.concatenate([params['wq'], params['wk'], params['wv']], axis=1).astype(MXU_DTYPE)
    bqkv = jnp.concatenate([params['bq'], params['bk'], params['bv']], axis=1)

    # Constant segment-mean matrix S (L, n_pad) and identity (L, L), built on host.
    seg_id = jnp.arange(n_pad, dtype=jnp.int32) // seg
    S = (seg_id[None, :] == jnp.arange(L, dtype=jnp.int32)[:, None]).astype(jnp.float32) / seg
    S = S.astype(MXU_DTYPE)
    eye = jnp.eye(L, dtype=jnp.float32)

    # kernel 1: LN1 + QKV + Q/K mask*scale, written directly in padded layout
    qkv = ln_qkv(xp, mp[..., None], params['ln1_g'], params['ln1_b'],
                 wqkv, bqkv, scale, eps)                                   # (B, n_pad, 3*HD)

    # kernel 2: Nystrom attention (all heads per batch element)
    attn = nystrom_attention(mp[:, None, :], qkv, S, eye, H, hd, L)        # (B, n_pad, HD)

    # kernel 3: W_o + residual + LN2 + FF + residual, reading only the first N rows of
    # the padded attention output (no host-side slice copy on the common path).
    tn = _seq_tile(N)
    if tn % 8 == 0:
        attn_in = attn
    else:
        # TODO(synk): fallback host-side slice when N rows cannot be tiled 8-aligned.
        attn_in = attn[:, :N]
    out = outproj_ln_ff(X, attn_in,
                        params['wo'].astype(MXU_DTYPE), params['bo'],
                        params['ln2_g'], params['ln2_b'],
                        params['w1'].astype(MXU_DTYPE), params['b1'],
                        params['w2'].astype(MXU_DTYPE), params['b2'], eps)
    return out


# ----------------------------- params / main -------------------------------

def init_params(key, cfg):
    D, H, hd, Fd = cfg['hidden_dim'], cfg['num_head'], cfg['head_dim'], cfg['ff_dim']
    ks = jax.random.split(key, 6)

    def dense(k, din, dout):
        return 0.02 * jax.random.normal(k, (din, dout), jnp.float32)

    return {
        'wq': dense(ks[0], D, H * hd), 'bq': jnp.zeros((1, H * hd), jnp.float32),
        'wk': dense(ks[1], D, H * hd), 'bk': jnp.zeros((1, H * hd), jnp.float32),
        'wv': dense(ks[2], D, H * hd), 'bv': jnp.zeros((1, H * hd), jnp.float32),
        'wo': dense(ks[3], H * hd, D), 'bo': jnp.zeros((1, D), jnp.float32),
        'w1': dense(ks[4], D, Fd),     'b1': jnp.zeros((1, Fd), jnp.float32),
        'w2': dense(ks[5], Fd, D),     'b2': jnp.zeros((1, D), jnp.float32),
        'ln1_g': jnp.ones((1, D), jnp.float32), 'ln1_b': jnp.zeros((1, D), jnp.float32),
        'ln2_g': jnp.ones((1, D), jnp.float32), 'ln2_b': jnp.zeros((1, D), jnp.float32),
    }


if __name__ == "__main__":
    cfg = dict(hidden_dim=32, head_dim=8, num_head=4, num_landmarks=4,
               ff_dim=64, dropout_prob=0.0,
               attention_grad_checkpointing=False, attn_type='nystrom')

    key = jax.random.PRNGKey(0)
    kp, kx = jax.random.split(key)
    params = init_params(kp, cfg)

    B, N, D = 2, 8, cfg['hidden_dim']
    X = jax.random.normal(kx, (B, N, D), jnp.float32)
    mask = jnp.ones((B, N), jnp.float32)

    fwd = jax.jit(functools.partial(nystrom_block_forward, cfg=cfg))
    out = jax.block_until_ready(fwd(params, X, mask))

    assert out.shape == (B, N, D)
    assert bool(jnp.all(jnp.isfinite(out)))
    print("KERNEL_OK")
</pallas_src>

<mosaic_0001>
module attributes {stable_mosaic.version = 11 : i64} {
  func.func @_ln_qkv_kernel(%arg0: i32, %arg1: i32, %arg2: memref<1x12x32xf32, #tpu.memory_space<vmem>>, %arg3: memref<1x12x1xf32, #tpu.memory_space<vmem>>, %arg4: memref<1x32xf32, #tpu.memory_space<vmem>>, %arg5: memref<1x32xf32, #tpu.memory_space<vmem>>, %arg6: memref<32x96xbf16, #tpu.memory_space<vmem>>, %arg7: memref<1x96xf32, #tpu.memory_space<vmem>>, %arg8: memref<1x12x96xf32, #tpu.memory_space<vmem>>) attributes {dimension_semantics = [#tpu.dimension_semantics<parallel>, #tpu.dimension_semantics<parallel>], iteration_bounds = array<i64: 2, 1>, scalar_prefetch = 0 : i64, scratch_operands = 0 : i64, tpu.core_type = #tpu.core_type<tc>, window_params = [{transform_indices = @transform_0, window_bounds = array<i64: 1, 12, 32>}, {transform_indices = @transform_1, window_bounds = array<i64: 1, 12, 1>}, {pipeline_mode = #tpu.pipeline_mode<synchronous>, transform_indices = @transform_2, window_bounds = array<i64: 1, 32>}, {pipeline_mode = #tpu.pipeline_mode<synchronous>, transform_indices = @transform_3, window_bounds = array<i64: 1, 32>}, {pipeline_mode = #tpu.pipeline_mode<synchronous>, transform_indices = @transform_4, window_bounds = array<i64: 32, 96>}, {pipeline_mode = #tpu.pipeline_mode<synchronous>, transform_indices = @transform_5, window_bounds = array<i64: 1, 96>}, {transform_indices = @transform_6, window_bounds = array<i64: 1, 12, 96>}]} {
    %c0 = arith.constant 0 : index
    %c0_0 = arith.constant 0 : index
    %c0_1 = arith.constant 0 : index
    %0 = vector.load %arg2[%c0, %c0_0, %c0_1] : memref<1x12x32xf32, #tpu.memory_space<vmem>>, vector<1x12x32xf32>
    %1 = vector.shape_cast %0 : vector<1x12x32xf32> to vector<12x32xf32>
    %c0_2 = arith.constant 0 : index
    %c0_3 = arith.constant 0 : index
    %2 = vector.load %arg4[%c0_2, %c0_3] : memref<1x32xf32, #tpu.memory_space<vmem>>, vector<1x32xf32>
    %c0_4 = arith.constant 0 : index
    %c0_5 = arith.constant 0 : index
    %3 = vector.load %arg5[%c0_4, %c0_5] : memref<1x32xf32, #tpu.memory_space<vmem>>, vector<1x32xf32>
    %cst = arith.constant dense<0.000000e+00> : vector<12xf32>
    %4 = vector.multi_reduction <add>, %1, %cst [1] : vector<12x32xf32> to vector<12xf32>
    %5 = vector.shape_cast %4 : vector<12xf32> to vector<12x1xf32>
    %cst_6 = arith.constant 3.200000e+01 : f32
    %6 = vector.broadcast %cst_6 : f32 to vector<12x1xf32>
    %7 = arith.divf %5, %6 : vector<12x1xf32>
    %8 = vector.broadcast %7 : vector<12x1xf32> to vector<12x32xf32>
    %9 = arith.subf %1, %8 : vector<12x32xf32>
    %10 = arith.mulf %9, %9 : vector<12x32xf32>
    %cst_7 = arith.constant dense<0.000000e+00> : vector<12xf32>
    %11 = vector.multi_reduction <add>, %10, %cst_7 [1] : vector<12x32xf32> to vector<12xf32>
    %12 = vector.shape_cast %11 : vector<12xf32> to vector<12x1xf32>
    %cst_8 = arith.constant 3.200000e+01 : f32
    %13 = vector.broadcast %cst_8 : f32 to vector<12x1xf32>
    %14 = arith.divf %12, %13 : vector<12x1xf32>
    %cst_9 = arith.constant 9.99999974E-6 : f32
    %15 = vector.broadcast %cst_9 : f32 to vector<12x1xf32>
    %16 = arith.addf %14, %15 : vector<12x1xf32>
    %17 = math.rsqrt %16 : vector<12x1xf32>
    %18 = vector.broadcast %17 : vector<12x1xf32> to vector<12x32xf32>
    %19 = arith.mulf %9, %18 : vector<12x32xf32>
    %20 = vector.broadcast %2 : vector<1x32xf32> to vector<12x32xf32>
    %21 = arith.mulf %19, %20 : vector<12x32xf32>
    %22 = vector.broadcast %3 : vector<1x32xf32> to vector<12x32xf32>
    %23 = arith.addf %21, %22 : vector<12x32xf32>
    %24 = arith.truncf %23 : vector<12x32xf32> to vector<12x32xbf16>
    %c0_10 = arith.constant 0 : index
    %c0_11 = arith.constant 0 : index
    %25 = vector.load %arg6[%c0_10, %c0_11] : memref<32x96xbf16, #tpu.memory_space<vmem>>, vector<32x96xbf16>
    %cst_12 = arith.constant dense<0.000000e+00> : vector<12x96xf32>
    %26 = tpu.matmul %24, %25, %cst_12 {dimension_numbers = #tpu.dot_dimension_numbers<[1], [0], [0], [1], [0, 0, 1, 1], [], []>} : vector<12x32xbf16>, vector<32x96xbf16>, vector<12x96xf32> -> vector<12x96xf32>
    %c0_13 = arith.constant 0 : index
    %c0_14 = arith.constant 0 : index
    %27 = vector.load %arg7[%c0_13, %c0_14] : memref<1x96xf32, #tpu.memory_space<vmem>>, vector<1x96xf32>
    %28 = vector.broadcast %27 : vector<1x96xf32> to vector<12x96xf32>
    %29 = arith.addf %26, %28 : vector<12x96xf32>
    %30 = tpu.iota {dimensions = array<i32: 1>} : vector<1x96xi32>
    %c64_i32 = arith.constant 64 : i32
    %31 = vector.broadcast %c64_i32 : i32 to vector<1x96xi32>
    %32 = arith.cmpi slt, %30, %31 : vector<1x96xi32>
    %c0_15 = arith.constant 0 : index
    %c0_16 = arith.constant 0 : index
    %c0_17 = arith.constant 0 : index
    %33 = vector.load %arg3[%c0_15, %c0_16, %c0_17] : memref<1x12x1xf32, #tpu.memory_space<vmem>>, vector<1x12x1xf32>
    %34 = vector.shape_cast %33 : vector<1x12x1xf32> to vector<12x1xf32>
    %cst_18 = arith.constant 0.594603539 : f32
    %35 = vector.broadcast %cst_18 : f32 to vector<12x1xf32>
    %36 = arith.mulf %34, %35 : vector<12x1xf32>
    %cst_19 = arith.constant 1.000000e+00 : f32
    %37 = vector.shape_cast %32 : vector<1x96xi1> to vector<1x96xi1>
    %38 = vector.broadcast %37 : vector<1x96xi1> to vector<12x96xi1>
    %39 = vector.shape_cast %36 : vector<12x1xf32> to vector<12x1xf32>
    %40 = vector.broadcast %39 : vector<12x1xf32> to vector<12x96xf32>
    %41 = vector.broadcast %cst_19 : f32 to vector<12x96xf32>
    %42 = arith.select %38, %40, %41 : vector<12x96xi1>, vector<12x96xf32>
    %43 = arith.mulf %29, %42 : vector<12x96xf32>
    %c0_20 = arith.constant 0 : index
    %c0_21 = arith.constant 0 : index
    %c0_22 = arith.constant 0 : index
    %44 = vector.load %arg8[%c0_20, %c0_21, %c0_22] : memref<1x12x96xf32, #tpu.memory_space<vmem>>, vector<1x12x96xf32>
    %45 = vector.shape_cast %44 : vector<1x12x96xf32> to vector<12x96xf32>
    %46 = vector.shape_cast %43 : vector<12x96xf32> to vector<1x12x96xf32>
    tpu.vector_store %arg8[%c0_20, %c0_21, %c0_22], %46 {strides = array<i32>} : memref<1x12x96xf32, #tpu.memory_space<vmem>>, vector<1x12x96xf32>,
    return
  }
  func.func @transform_0(%arg0: i32, %arg1: i32) -> (i32, i32, i32) {
    %c0_i32 = arith.constant 0 : i32
    %c0_i32_0 = arith.constant 0 : i32
    return %arg0, %arg1, %c0_i32 : i32, i32, i32
  }
  func.func @transform_1(%arg0: i32, %arg1: i32) -> (i32, i32, i32) {
    %c0_i32 = arith.constant 0 : i32
    %c0_i32_0 = arith.constant 0 : i32
    return %arg0, %arg1, %c0_i32 : i32, i32, i32
  }
  func.func @transform_2(%arg0: i32, %arg1: i32) -> (i32, i32) {
    %c0_i32 = arith.constant 0 : i32
    %c0_i32_0 = arith.constant 0 : i32
    %c0_i32_1 = arith.constant 0 : i32
    return %c0_i32, %c0_i32_0 : i32, i32
  }
  func.func @transform_3(%arg0: i32, %arg1: i32) -> (i32, i32) {
    %c0_i32 = arith.constant 0 : i32
    %c0_i32_0 = arith.constant 0 : i32
    %c0_i32_1 = arith.constant 0 : i32
    return %c0_i32, %c0_i32_0 : i32, i32
  }
  func.func @transform_4(%arg0: i32, %arg1: i32) -> (i32, i32) {
    %c0_i32 = arith.constant 0 : i32
    %c0_i32_0 = arith.constant 0 : i32
    %c0_i32_1 = arith.constant 0 : i32
    return %c0_i32, %c0_i32_0 : i32, i32
  }
  func.func @transform_5(%arg0: i32, %arg1: i32) -> (i32, i32) {
    %c0_i32 = arith.constant 0 : i32
    %c0_i32_0 = arith.constant 0 : i32
    %c0_i32_1 = arith.constant 0 : i32
    return %c0_i32, %c0_i32_0 : i32, i32
  }
  func.func @transform_6(%arg0: i32, %arg1: i32) -> (i32, i32, i32) {
    %c0_i32 = arith.constant 0 : i32
    %c0_i32_0 = arith.constant 0 : i32
    return %arg0, %arg1, %c0_i32 : i32, i32, i32
  }
}

module attributes {stable_mosaic.version = 11 : i64} {
  func.func @_nystrom_attn_kernel(%arg0: i32, %arg1: memref<1x1x12xf32, #tpu.memory_space<vmem>>, %arg2: memref<1x12x96xf32, #tpu.memory_space<vmem>>, %arg3: memref<4x12xbf16, #tpu.memory_space<vmem>>, %arg4: memref<4x4xf32, #tpu.memory_space<vmem>>, %arg5: memref<1x12x32xf32, #tpu.memory_space<vmem>>) attributes {dimension_semantics = [#tpu.dimension_semantics<parallel>], iteration_bounds = array<i64: 2>, scalar_prefetch = 0 : i64, scratch_operands = 0 : i64, tpu.core_type = #tpu.core_type<tc>, window_params = [{transform_indices = @transform_0, window_bounds = array<i64: 1, 1, 12>}, {transform_indices = @transform_1, window_bounds = array<i64: 1, 12, 96>}, {pipeline_mode = #tpu.pipeline_mode<synchronous>, transform_indices = @transform_2, window_bounds = array<i64: 4, 12>}, {pipeline_mode = #tpu.pipeline_mode<synchronous>, transform_indices = @transform_3, window_bounds = array<i64: 4, 4>}, {transform_indices = @transform_4, window_bounds = array<i64: 1, 12, 32>}]} {
    %c0 = arith.constant 0 : index
    %c0_0 = arith.constant 0 : index
    %c0_1 = arith.constant 0 : index
    %0 = vector.load %arg1[%c0, %c0_0, %c0_1] : memref<1x1x12xf32, #tpu.memory_space<vmem>>, vector<1x1x12xf32>
    %1 = vector.shape_cast %0 : vector<1x1x12xf32> to vector<1x12xf32>
    %cst = arith.constant 1.000000e+00 : f32
    %2 = vector.broadcast %cst : f32 to vector<1x12xf32>
    %3 = arith.subf %2, %1 : vector<1x12xf32>
    %cst_2 = arith.constant 1.000000e+09 : f32
    %4 = vector.broadcast %cst_2 : f32 to vector<1x12xf32>
    %5 = arith.mulf %4, %3 : vector<1x12xf32>
    %c0_3 = arith.constant 0 : index
    %c0_4 = arith.constant 0 : index
    %6 = vector.load %arg3[%c0_3, %c0_4] : memref<4x12xbf16, #tpu.memory_space<vmem>>, vector<4x12xbf16>
    %c0_5 = arith.constant 0 : index
    %c0_6 = arith.constant 0 : index
    %7 = vector.load %arg4[%c0_5, %c0_6] : memref<4x4xf32, #tpu.memory_space<vmem>>, vector<4x4xf32>
    %c0_7 = arith.constant 0 : index
    %c0_8 = arith.constant 0 : index
    %c0_9 = arith.constant 0 : index
    %8 = vector.load %arg2[%c0_7, %c0_8, %c0_9] : memref<1x12x96xf32, #tpu.memory_space<vmem>>, vector<1x12x32xf32>
    %9 = vector.shape_cast %8 : vector<1x12x32xf32> to vector<12x32xf32>
    %c0_10 = arith.constant 0 : index
    %c0_11 = arith.constant 0 : index
    %c32 = arith.constant 32 : index
    %10 = vector.load %arg2[%c0_10, %c0_11, %c32] : memref<1x12x96xf32, #tpu.memory_space<vmem>>, vector<1x12x32xf32>
    %11 = vector.shape_cast %10 : vector<1x12x32xf32> to vector<12x32xf32>
    %c0_12 = arith.constant 0 : index
    %c0_13 = arith.constant 0 : index
    %c64 = arith.constant 64 : index
    %12 = vector.load %arg2[%c0_12, %c0_13, %c64] : memref<1x12x96xf32, #tpu.memory_space<vmem>>, vector<1x12x32xf32>
    %13 = vector.shape_cast %12 : vector<1x12x32xf32> to vector<12x32xf32>
    %14 = arith.truncf %9 : vector<12x32xf32> to vector<12x32xbf16>
    %cst_14 = arith.constant dense<0.000000e+00> : vector<4x32xf32>
    %15 = tpu.matmul %6, %14, %cst_14 {dimension_numbers = #tpu.dot_dimension_numbers<[1], [0], [0], [1], [0, 0, 1, 1], [], []>} : vector<4x12xbf16>, vector<12x32xbf16>, vector<4x32xf32> -> vector<4x32xf32>
    %16 = arith.truncf %11 : vector<12x32xf32> to vector<12x32xbf16>
    %cst_15 = arith.constant dense<0.000000e+00> : vector<4x32xf32>
    %17 = tpu.matmul %6, %16, %cst_15 {dimension_numbers = #tpu.dot_dimension_numbers<[1], [0], [0], [1], [0, 0, 1, 1], [], []>} : vector<4x12xbf16>, vector<12x32xbf16>, vector<4x32xf32> -> vector<4x32xf32>
    %18 = vector.extract_strided_slice %15 {offsets = [0, 0], sizes = [4, 8], strides = [1, 1]} : vector<4x32xf32> to vector<4x8xf32>
    %19 = vector.extract_strided_slice %17 {offsets = [0, 0], sizes = [4, 8], strides = [1, 1]} : vector<4x32xf32> to vector<4x8xf32>
    %20 = arith.truncf %18 : vector<4x8xf32> to vector<4x8xbf16>
    %21 = arith.truncf %19 : vector<4x8xf32> to vector<4x8xbf16>
    %cst_16 = arith.constant dense<0.000000e+00> : vector<4x4xf32>
    %22 = tpu.matmul %20, %21, %cst_16 {dimension_numbers = #tpu.dot_dimension_numbers<[1], [1], [0], [0], [0, 0, 1, 0], [], []>} : vector<4x8xbf16>, vector<4x8xbf16>, vector<4x4xf32> -> vector<4x4xf32>
    %cst_17 = arith.constant dense<0xFF800000> : vector<4xf32>
    %23 = vector.multi_reduction <maximumf>, %22, %cst_17 [1] : vector<4x4xf32> to vector<4xf32>
    %24 = vector.shape_cast %23 : vector<4xf32> to vector<4x1xf32>
    %25 = vector.broadcast %24 : vector<4x1xf32> to vector<4x4xf32>
    %26 = arith.subf %22, %25 : vector<4x4xf32>
    %27 = math.exp %26 : vector<4x4xf32>
    %cst_18 = arith.constant dense<0.000000e+00> : vector<4xf32>
    %28 = vector.multi_reduction <add>, %27, %cst_18 [1] : vector<4x4xf32> to vector<4xf32>
    %29 = vector.shape_cast %28 : vector<4xf32> to vector<4x1xf32>
    %30 = tpu.reciprocal %29 {approx = true} : vector<4x1xf32> -> vector<4x1xf32>
    %31 = vector.broadcast %30 : vector<4x1xf32> to vector<4x4xf32>
    %32 = arith.mulf %27, %31 : vector<4x4xf32>
    %cst_19 = arith.constant dense<0.000000e+00> : vector<4x4xf32>
    %33 = tpu.matmul %7, %32, %cst_19 {dimension_numbers = #tpu.dot_dimension_numbers<[1], [1], [0], [0], [0, 0, 1, 0], [], []>} : vector<4x4xf32>, vector<4x4xf32>, vector<4x4xf32> -> vector<4x4xf32>
    %34 = vector.extract_strided_slice %15 {offsets = [0, 8], sizes = [4, 8], strides = [1, 1]} : vector<4x32xf32> to vector<4x8xf32>
    %35 = vector.extract_strided_slice %17 {offsets = [0, 8], sizes = [4, 8], strides = [1, 1]} : vector<4x32xf32> to vector<4x8xf32>
    %36 = arith.truncf %34 : vector<4x8xf32> to vector<4x8xbf16>
    %37 = arith.truncf %35 : vector<4x8xf32> to vector<4x8xbf16>
    %cst_20 = arith.constant dense<0.000000e+00> : vector<4x4xf32>
    %38 = tpu.matmul %36, %37, %cst_20 {dimension_numbers = #tpu.dot_dimension_numbers<[1], [1], [0], [0], [0, 0, 1, 0], [], []>} : vector<4x8xbf16>, vector<4x8xbf16>, vector<4x4xf32> -> vector<4x4xf32>
    %cst_21 = arith.constant dense<0xFF800000> : vector<4xf32>
    %39 = vector.multi_reduction <maximumf>, %38, %cst_21 [1] : vector<4x4xf32> to vector<4xf32>
    %40 = vector.shape_cast %39 : vector<4xf32> to vector<4x1xf32>
    %41 = vector.broadcast %40 : vector<4x1xf32> to vector<4x4xf32>
    %42 = arith.subf %38, %41 : vector<4x4xf32>
    %43 = math.exp %42 : vector<4x4xf32>
    %cst_22 = arith.constant dense<0.000000e+00> : vector<4xf32>
    %44 = vector.multi_reduction <add>, %43, %cst_22 [1] : vector<4x4xf32> to vector<4xf32>
    %45 = vector.shape_cast %44 : vector<4xf32> to vector<4x1xf32>
    %46 = tpu.reciprocal %45 {approx = true} : vector<4x1xf32> -> vector<4x1xf32>
    %47 = vector.broadcast %46 : vector<4x1xf32> to vector<4x4xf32>
    %48 = arith.mulf %43, %47 : vector<4x4xf32>
    %cst_23 = arith.constant dense<0.000000e+00> : vector<4x4xf32>
    %49 = tpu.matmul %7, %48, %cst_23 {dimension_numbers = #tpu.dot_dimension_numbers<[1], [1], [0], [0], [0, 0, 1, 0], [], []>} : vector<4x4xf32>, vector<4x4xf32>, vector<4x4xf32> -> vector<4x4xf32>
    %50 = vector.extract_strided_slice %15 {offsets = [0, 16], sizes = [4, 8], strides = [1, 1]} : vector<4x32xf32> to vector<4x8xf32>
    %51 = vector.extract_strided_slice %17 {offsets = [0, 16], sizes = [4, 8], strides = [1, 1]} : vector<4x32xf32> to vector<4x8xf32>
    %52 = arith.truncf %50 : vector<4x8xf32> to vector<4x8xbf16>
    %53 = arith.truncf %51 : vector<4x8xf32> to vector<4x8xbf16>
    %cst_24 = arith.constant dense<0.000000e+00> : vector<4x4xf32>
    %54 = tpu.matmul %52, %53, %cst_24 {dimension_numbers = #tpu.dot_dimension_numbers<[1], [1], [0], [0], [0, 0, 1, 0], [], []>} : vector<4x8xbf16>, vector<4x8xbf16>, vector<4x4xf32> -> vector<4x4xf32>
    %cst_25 = arith.constant dense<0xFF800000> : vector<4xf32>
    %55 = vector.multi_reduction <maximumf>, %54, %cst_25 [1] : vector<4x4xf32> to vector<4xf32>
    %56 = vector.shape_cast %55 : vector<4xf32> to vector<4x1xf32>
    %57 = vector.broadcast %56 : vector<4x1xf32> to vector<4x4xf32>
    %58 = arith.subf %54, %57 : vector<4x4xf32>
    %59 = math.exp %58 : vector<4x4xf32>
    %cst_26 = arith.constant dense<0.000000e+00> : vector<4xf32>
    %60 = vector.multi_reduction <add>, %59, %cst_26 [1] : vector<4x4xf32> to vector<4xf32>
    %61 = vector.shape_cast %60 : vector<4xf32> to vector<4x1xf32>
    %62 = tpu.reciprocal %61 {approx = true} : vector<4x1xf32> -> vector<4x1xf32>
    %63 = vector.broadcast %62 : vector<4x1xf32> to vector<4x4xf32>
    %64 = arith.mulf %59, %63 : vector<4x4xf32>
    %cst_27 = arith.constant dense<0.000000e+00> : vector<4x4xf32>
    %65 = tpu.matmul %7, %64, %cst_27 {dimension_numbers = #tpu.dot_dimension_numbers<[1], [1], [0], [0], [0, 0, 1, 0], [], []>} : vector<4x4xf32>, vector<4x4xf32>, vector<4x4xf32> -> vector<4x4xf32>
    %66 = vector.extract_strided_slice %15 {offsets = [0, 24], sizes = [4, 8], strides = [1, 1]} : vector<4x32xf32> to vector<4x8xf32>
    %67 = vector.extract_strided_slice %17 {offsets = [0, 24], sizes = [4, 8], strides = [1, 1]} : vector<4x32xf32> to vector<4x8xf32>
    %68 = arith.truncf %66 : vector<4x8xf32> to vector<4x8xbf16>
    %69 = arith.truncf %67 : vector<4x8xf32> to vector<4x8xbf16>
    %cst_28 = arith.constant dense<0.000000e+00> : vector<4x4xf32>
    %70 = tpu.matmul %68, %69, %cst_28 {dimension_numbers = #tpu.dot_dimension_numbers<[1], [1], [0], [0], [0, 0, 1, 0], [], []>} : vector<4x8xbf16>, vector<4x8xbf16>, vector<4x4xf32> -> vector<4x4xf32>
    %cst_29 = arith.constant dense<0xFF800000> : vector<4xf32>
    %71 = vector.multi_reduction <maximumf>, %70, %cst_29 [1] : vector<4x4xf32> to vector<4xf32>
    %72 = vector.shape_cast %71 : vector<4xf32> to vector<4x1xf32>
    %73 = vector.broadcast %72 : vector<4x1xf32> to vector<4x4xf32>
    %74 = arith.subf %70, %73 : vector<4x4xf32>
    %75 = math.exp %74 : vector<4x4xf32>
    %cst_30 = arith.constant dense<0.000000e+00> : vector<4xf32>
    %76 = vector.multi_reduction <add>, %75, %cst_30 [1] : vector<4x4xf32> to vector<4xf32>
    %77 = vector.shape_cast %76 : vector<4xf32> to vector<4x1xf32>
    %78 = tpu.reciprocal %77 {approx = true} : vector<4x1xf32> -> vector<4x1xf32>
    %79 = vector.broadcast %78 : vector<4x1xf32> to vector<4x4xf32>
    %80 = arith.mulf %75, %79 : vector<4x4xf32>
    %cst_31 = arith.constant dense<0.000000e+00> : vector<4x4xf32>
    %81 = tpu.matmul %7, %80, %cst_31 {dimension_numbers = #tpu.dot_dimension_numbers<[1], [1], [0], [0], [0, 0, 1, 0], [], []>} : vector<4x4xf32>, vector<4x4xf32>, vector<4x4xf32> -> vector<4x4xf32>
    %82 = vector.shape_cast %32 : vector<4x4xf32> to vector<1x4x4xf32>
    %83 = vector.shape_cast %48 : vector<4x4xf32> to vector<1x4x4xf32>
    %84 = vector.shape_cast %64 : vector<4x4xf32> to vector<1x4x4xf32>
    %85 = vector.shape_cast %80 : vector<4x4xf32> to vector<1x4x4xf32>
    %86 = tpu.concatenate %82, %83, %84, %85 in 0 : vector<1x4x4xf32>, vector<1x4x4xf32>, vector<1x4x4xf32>, vector<1x4x4xf32> -> vector<4x4x4xf32>
    %87 = vector.shape_cast %33 : vector<4x4xf32> to vector<1x4x4xf32>
    %88 = vector.shape_cast %49 : vector<4x4xf32> to vector<1x4x4xf32>
    %89 = vector.shape_cast %65 : vector<4x4xf32> to vector<1x4x4xf32>
    %90 = vector.shape_cast %81 : vector<4x4xf32> to vector<1x4x4xf32>
    %91 = tpu.concatenate %87, %88, %89, %90 in 0 : vector<1x4x4xf32>, vector<1x4x4xf32>, vector<1x4x4xf32>, vector<1x4x4xf32> -> vector<4x4x4xf32>
    %cst_32 = arith.constant dense<0.000000e+00> : vector<4x4xf32>
    %92 = vector.multi_reduction <add>, %86, %cst_32 [1] : vector<4x4x4xf32> to vector<4x4xf32>
    %93 = vector.shape_cast %92 : vector<4x4xf32> to vector<4x1x4xf32>
    %cst_33 = arith.constant dense<0xFF800000> : vector<4x1xf32>
    %94 = vector.multi_reduction <maximumf>, %93, %cst_33 [2] : vector<4x1x4xf32> to vector<4x1xf32>
    %95 = vector.shape_cast %94 : vector<4x1xf32> to vector<4x1x1xf32>
    %96 = tpu.reciprocal %95 {approx = true} : vector<4x1x1xf32> -> vector<4x1x1xf32>
    %97 = vector.broadcast %96 : vector<4x1x1xf32> to vector<4x4x4xf32>
    %98 = arith.mulf %91, %97 : vector<4x4x4xf32>
    "tpu.trace_start"() <{level = 10 : i32, message = "hij,hjk->hik"}> : () -> ()
    %cst_34 = arith.constant dense<0.000000e+00> : vector<4x4x4xf32>
    %99 = tpu.matmul %86, %98, %cst_34 {dimension_numbers = #tpu.dot_dimension_numbers<[2], [1], [1], [2], [0, 0, 0, 1, 1, 2], [0], [0]>} : vector<4x4x4xf32>, vector<4x4x4xf32>, vector<4x4x4xf32> -> vector<4x4x4xf32>
    "tpu.trace_stop"() : () -> ()
    %cst_35 = arith.constant 7.000000e+00 : f32
    %100 = vector.broadcast %cst_35 : f32 to vector<4x4xf32>
    %101 = arith.mulf %100, %7 : vector<4x4xf32>
    %102 = vector.shape_cast %101 : vector<4x4xf32> to vector<1x4x4xf32>
    %103 = vector.broadcast %102 : vector<1x4x4xf32> to vector<4x4x4xf32>
    %104 = arith.subf %103, %99 : vector<4x4x4xf32>
    %cst_36 = arith.constant 1.500000e+01 : f32
    %105 = vector.broadcast %cst_36 : f32 to vector<4x4xf32>
    %106 = arith.mulf %105, %7 : vector<4x4xf32>
    "tpu.trace_start"() <{level = 10 : i32, message = "hij,hjk->hik"}> : () -> ()
    %cst_37 = arith.constant dense<0.000000e+00> : vector<4x4x4xf32>
    %107 = tpu.matmul %99, %104, %cst_37 {dimension_numbers = #tpu.dot_dimension_numbers<[2], [1], [1], [2], [0, 0, 0, 1, 1, 2], [0], [0]>} : vector<4x4x4xf32>, vector<4x4x4xf32>, vector<4x4x4xf32> -> vector<4x4x4xf32>
    "tpu.trace_stop"() : () -> ()
    %108 = vector.shape_cast %106 : vector<4x4xf32> to vector<1x4x4xf32>
    %109 = vector.broadcast %108 : vector<1x4x4xf32> to vector<4x4x4xf32>
    %110 = arith.subf %109, %107 : vector<4x4x4xf32>
    %cst_38 = arith.constant 1.300000e+01 : f32
    %111 = vector.broadcast %cst_38 : f32 to vector<4x4xf32>
    %112 = arith.mulf %111, %7 : vector<4x4xf32>
    "tpu.trace_start"() <{level = 10 : i32, message = "hij,hjk->hik"}> : () -> ()
    %cst_39 = arith.constant dense<0.000000e+00> : vector<4x4x4xf32>
    %113 = tpu.matmul %99, %110, %cst_39 {dimension_numbers = #tpu.dot_dimension_numbers<[2], [1], [1], [2], [0, 0, 0, 1, 1, 2], [0], [0]>} : vector<4x4x4xf32>, vector<4x4x4xf32>, vector<4x4x4xf32> -> vector<4x4x4xf32>
    "tpu.trace_stop"() : () -> ()
    %114 = vector.shape_cast %112 : vector<4x4xf32> to vector<1x4x4xf32>
    %115 = vector.broadcast %114 : vector<1x4x4xf32> to vector<4x4x4xf32>
    %116 = arith.subf %115, %113 : vector<4x4x4xf32>
    "tpu.trace_start"() <{level = 10 : i32, message = "hij,hjk->hik"}> : () -> ()
    %cst_40 = arith.constant dense<0.000000e+00> : vector<4x4x4xf32>
    %117 = tpu.matmul %98, %116, %cst_40 {dimension_numbers = #tpu.dot_dimension_numbers<[2], [1], [1], [2], [0, 0, 0, 1, 1, 2], [0], [0]>} : vector<4x4x4xf32>, vector<4x4x4xf32>, vector<4x4x4xf32> -> vector<4x4x4xf32>
    "tpu.trace_stop"() : () -> ()
    %cst_41 = arith.constant 2.500000e-01 : f32
    %118 = vector.broadcast %cst_41 : f32 to vector<4x4x4xf32>
    %119 = arith.mulf %118, %117 : vector<4x4x4xf32>
    "tpu.trace_start"() <{level = 10 : i32, message = "hij,hjk->hik"}> : () -> ()
    %cst_42 = arith.constant dense<0.000000e+00> : vector<4x4x4xf32>
    %120 = tpu.matmul %86, %119, %cst_42 {dimension_numbers = #tpu.dot_dimension_numbers<[2], [1], [1], [2], [0, 0, 0, 1, 1, 2], [0], [0]>} : vector<4x4x4xf32>, vector<4x4x4xf32>, vector<4x4x4xf32> -> vector<4x4x4xf32>
    "tpu.trace_stop"() : () -> ()
    %cst_43 = arith.constant 7.000000e+00 : f32
    %121 = vector.broadcast %cst_43 : f32 to vector<4x4xf32>
    %122 = arith.mulf %121, %7 : vector<4x4xf32>
    %123 = vector.shape_cast %122 : vector<4x4xf32> to vector<1x4x4xf32>
    %124 = vector.broadcast %123 : vector<1x4x4xf32> to vector<4x4x4xf32>
    %125 = arith.subf %124, %120 : vector<4x4x4xf32>
    %cst_44 = arith.constant 1.500000e+01 : f32
    %126 = vector.broadcast %cst_44 : f32 to vector<4x4xf32>
    %127 = arith.mulf %126, %7 : vector<4x4xf32>
    "tpu.trace_start"() <{level = 10 : i32, message = "hij,hjk->hik"}> : () -> ()
    %cst_45 = arith.constant dense<0.000000e+00> : vector<4x4x4xf32>
    %128 = tpu.matmul %120, %125, %cst_45 {dimension_numbers = #tpu.dot_dimension_numbers<[2], [1], [1], [2], [0, 0, 0, 1, 1, 2], [0], [0]>} : vector<4x4x4xf32>, vector<4x4x4xf32>, vector<4x4x4xf32> -> vector<4x4x4xf32>
    "tpu.trace_stop"() : () -> ()
    %129 = vector.shape_cast %127 : vector<4x4xf32> to vector<1x4x4xf32>
    %130 = vector.broadcast %129 : vector<1x4x4xf32> to vector<4x4x4xf32>
    %131 = arith.subf %130, %128 : vector<4x4x4xf32>
    %cst_46 = arith.constant 1.300000e+01 : f32
    %132 = vector.broadcast %cst_46 : f32 to vector<4x4xf32>
    %133 = arith.mulf %132, %7 : vector<4x4xf32>
    "tpu.trace_start"() <{level = 10 : i32, message = "hij,hjk->hik"}> : () -> ()
    %cst_47 = arith.constant dense<0.000000e+00> : vector<4x4x4xf32>
    %134 = tpu.matmul %120, %131, %cst_47 {dimension_numbers = #tpu.dot_dimension_numbers<[2], [1], [1], [2], [0, 0, 0, 1, 1, 2], [0], [0]>} : vector<4x4x4xf32>, vector<4x4x4xf32>, vector<4x4x4xf32> -> vector<4x4x4xf32>
    "tpu.trace_stop"() : () -> ()
    %135 = vector.shape_cast %133 : vector<4x4xf32> to vector<1x4x4xf32>
    %136 = vector.broadcast %135 : vector<1x4x4xf32> to vector<4x4x4xf32>
    %137 = arith.subf %136, %134 : vector<4x4x4xf32>
    "tpu.trace_start"() <{level = 10 : i32, message = "hij,hjk->hik"}> : () -> ()
    %cst_48 = arith.constant dense<0.000000e+00> : vector<4x4x4xf32>
    %138 = tpu.matmul %119, %137, %cst_48 {dimension_numbers = #tpu.dot_dimension_numbers<[2], [1], [1], [2], [0, 0, 0, 1, 1, 2], [0], [0]>} : vector<4x4x4xf32>, vector<4x4x4xf32>, vector<4x4x4xf32> -> vector<4x4x4xf32>
    "tpu.trace_stop"() : () -> ()
    %cst_49 = arith.constant 2.500000e-01 : f32
    %139 = vector.broadcast %cst_49 : f32 to vector<4x4x4xf32>
    %140 = arith.mulf %139, %138 : vector<4x4x4xf32>
    "tpu.trace_start"() <{level = 10 : i32, message = "hij,hjk->hik"}> : () -> ()
    %cst_50 = arith.constant dense<0.000000e+00> : vector<4x4x4xf32>
    %141 = tpu.matmul %86, %140, %cst_50 {dimension_numbers = #tpu.dot_dimension_numbers<[2], [1], [1], [2], [0, 0, 0, 1, 1, 2], [0], [0]>} : vector<4x4x4xf32>, vector<4x4x4xf32>, vector<4x4x4xf32> -> vector<4x4x4xf32>
    "tpu.trace_stop"() : () -> ()
    %cst_51 = arith.constant 7.000000e+00 : f32
    %142 = vector.broadcast %cst_51 : f32 to vector<4x4xf32>
    %143 = arith.mulf %142, %7 : vector<4x4xf32>
    %144 = vector.shape_cast %143 : vector<4x4xf32> to vector<1x4x4xf32>
    %145 = vector.broadcast %144 : vector<1x4x4xf32> to vector<4x4x4xf32>
    %146 = arith.subf %145, %141 : vector<4x4x4xf32>
    %cst_52 = arith.constant 1.500000e+01 : f32
    %147 = vector.broadcast %cst_52 : f32 to vector<4x4xf32>
    %148 = arith.mulf %147, %7 : vector<4x4xf32>
    "tpu.trace_start"() <{level = 10 : i32, message = "hij,hjk->hik"}> : () -> ()
    %cst_53 = arith.constant dense<0.000000e+00> : vector<4x4x4xf32>
    %149 = tpu.matmul %141, %146, %cst_53 {dimension_numbers = #tpu.dot_dimension_numbers<[2], [1], [1], [2], [0, 0, 0, 1, 1, 2], [0], [0]>} : vector<4x4x4xf32>, vector<4x4x4xf32>, vector<4x4x4xf32> -> vector<4x4x4xf32>
    "tpu.trace_stop"() : () -> ()
    %150 = vector.shape_cast %148 : vector<4x4xf32> to vector<1x4x4xf32>
    %151 = vector.broadcast %150 : vector<1x4x4xf32> to vector<4x4x4xf32>
    %152 = arith.subf %151, %149 : vector<4x4x4xf32>
    %cst_54 = arith.constant 1.300000e+01 : f32
    %153 = vector.broadcast %cst_54 : f32 to vector<4x4xf32>
    %154 = arith.mulf %153, %7 : vector<4x4xf32>
    "tpu.trace_start"() <{level = 10 : i32, message = "hij,hjk->hik"}> : () -> ()
    %cst_55 = arith.constant dense<0.000000e+00> : vector<4x4x4xf32>
    %155 = tpu.matmul %141, %152, %cst_55 {dimension_numbers = #tpu.dot_dimension_numbers<[2], [1], [1], [2], [0, 0, 0, 1, 1, 2], [0], [0]>} : vector<4x4x4xf32>, vector<4x4x4xf32>, vector<4x4x4xf32> -> vector<4x4x4xf32>
    "tpu.trace_stop"() : () -> ()
    %156 = vector.shape_cast %154 : vector<4x4xf32> to vector<1x4x4xf32>
    %157 = vector.broadcast %156 : vector<1x4x4xf32> to vector<4x4x4xf32>
    %158 = arith.subf %157, %155 : vector<4x4x4xf32>
    "tpu.trace_start"() <{level = 10 : i32, message = "hij,hjk->hik"}> : () -> ()
    %cst_56 = arith.constant dense<0.000000e+00> : vector<4x4x4xf32>
    %159 = tpu.matmul %140, %158, %cst_56 {dimension_numbers = #tpu.dot_dimension_numbers<[2], [1], [1], [2], [0, 0, 0, 1, 1, 2], [0], [0]>} : vector<4x4x4xf32>, vector<4x4x4xf32>, vector<4x4x4xf32> -> vector<4x4x4xf32>
    "tpu.trace_stop"() : () -> ()
    %cst_57 = arith.constant 2.500000e-01 : f32
    %160 = vector.broadcast %cst_57 : f32 to vector<4x4x4xf32>
    %161 = arith.mulf %160, %159 : vector<4x4x4xf32>
    "tpu.trace_start"() <{level = 10 : i32, message = "hij,hjk->hik"}> : () -> ()
    %cst_58 = arith.constant dense<0.000000e+00> : vector<4x4x4xf32>
    %162 = tpu.matmul %86, %161, %cst_58 {dimension_numbers = #tpu.dot_dimension_numbers<[2], [1], [1], [2], [0, 0, 0, 1, 1, 2], [0], [0]>} : vector<4x4x4xf32>, vector<4x4x4xf32>, vector<4x4x4xf32> -> vector<4x4x4xf32>
    "tpu.trace_stop"() : () -> ()
    %cst_59 = arith.constant 7.000000e+00 : f32
    %163 = vector.broadcast %cst_59 : f32 to vector<4x4xf32>
    %164 = arith.mulf %163, %7 : vector<4x4xf32>
    %165 = vector.shape_cast %164 : vector<4x4xf32> to vector<1x4x4xf32>
    %166 = vector.broadcast %165 : vector<1x4x4xf32> to vector<4x4x4xf32>
    %167 = arith.subf %166, %162 : vector<4x4x4xf32>
    %cst_60 = arith.constant 1.500000e+01 : f32
    %168 = vector.broadcast %cst_60 : f32 to vector<4x4xf32>
    %169 = arith.mulf %168, %7 : vector<4x4xf32>
    "tpu.trace_start"() <{level = 10 : i32, message = "hij,hjk->hik"}> : () -> ()
    %cst_61 = arith.constant dense<0.000000e+00> : vector<4x4x4xf32>
    %170 = tpu.matmul %162, %167, %cst_61 {dimension_numbers = #tpu.dot_dimension_numbers<[2], [1], [1], [2], [0, 0, 0, 1, 1, 2], [0], [0]>} : vector<4x4x4xf32>, vector<4x4x4xf32>, vector<4x4x4xf32> -> vector<4x4x4xf32>
    "tpu.trace_stop"() : () -> ()
    %171 = vector.shape_cast %169 : vector<4x4xf32> to vector<1x4x4xf32>
    %172 = vector.broadcast %171 : vector<1x4x4xf32> to vector<4x4x4xf32>
    %173 = arith.subf %172, %170 : vector<4x4x4xf32>
    %cst_62 = arith.constant 1.300000e+01 : f32
    %174 = vector.broadcast %cst_62 : f32 to vector<4x4xf32>
    %175 = arith.mulf %174, %7 : vector<4x4xf32>
    "tpu.trace_start"() <{level = 10 : i32, message = "hij,hjk->hik"}> : () -> ()
    %cst_63 = arith.constant dense<0.000000e+00> : vector<4x4x4xf32>
    %176 = tpu.matmul %162, %173, %cst_63 {dimension_numbers = #tpu.dot_dimension_numbers<[2], [1], [1], [2], [0, 0, 0, 1, 1, 2], [0], [0]>} : vector<4x4x4xf32>, vector<4x4x4xf32>, vector<4x4x4xf32> -> vector<4x4x4xf32>
    "tpu.trace_stop"() : () -> ()
    %177 = vector.shape_cast %175 : vector<4x4xf32> to vector<1x4x4xf32>
    %178 = vector.broadcast %177 : vector<1x4x4xf32> to vector<4x4x4xf32>
    %179 = arith.subf %178, %176 : vector<4x4x4xf32>
    "tpu.trace_start"() <{level = 10 : i32, message = "hij,hjk->hik"}> : () -> ()
    %cst_64 = arith.constant dense<0.000000e+00> : vector<4x4x4xf32>
    %180 = tpu.matmul %161, %179, %cst_64 {dimension_numbers = #tpu.dot_dimension_numbers<[2], [1], [1], [2], [0, 0, 0, 1, 1, 2], [0], [0]>} : vector<4x4x4xf32>, vector<4x4x4xf32>, vector<4x4x4xf32> -> vector<4x4x4xf32>
    "tpu.trace_stop"() : () -> ()
    %cst_65 = arith.constant 2.500000e-01 : f32
    %181 = vector.broadcast %cst_65 : f32 to vector<4x4x4xf32>
    %182 = arith.mulf %181, %180 : vector<4x4x4xf32>
    "tpu.trace_start"() <{level = 10 : i32, message = "hij,hjk->hik"}> : () -> ()
    %cst_66 = arith.constant dense<0.000000e+00> : vector<4x4x4xf32>
    %183 = tpu.matmul %86, %182, %cst_66 {dimension_numbers = #tpu.dot_dimension_numbers<[2], [1], [1], [2], [0, 0, 0, 1, 1, 2], [0], [0]>} : vector<4x4x4xf32>, vector<4x4x4xf32>, vector<4x4x4xf32> -> vector<4x4x4xf32>
    "tpu.trace_stop"() : () -> ()
    %cst_67 = arith.constant 7.000000e+00 : f32
    %184 = vector.broadcast %cst_67 : f32 to vector<4x4xf32>
    %185 = arith.mulf %184, %7 : vector<4x4xf32>
    %186 = vector.shape_cast %185 : vector<4x4xf32> to vector<1x4x4xf32>
    %187 = vector.broadcast %186 : vector<1x4x4xf32> to vector<4x4x4xf32>
    %188 = arith.subf %187, %183 : vector<4x4x4xf32>
    %cst_68 = arith.constant 1.500000e+01 : f32
    %189 = vector.broadcast %cst_68 : f32 to vector<4x4xf32>
    %190 = arith.mulf %189, %7 : vector<4x4xf32>
    "tpu.trace_start"() <{level = 10 : i32, message = "hij,hjk->hik"}> : () -> ()
    %cst_69 = arith.constant dense<0.000000e+00> : vector<4x4x4xf32>
    %191 = tpu.matmul %183, %188, %cst_69 {dimension_numbers = #tpu.dot_dimension_numbers<[2], [1], [1], [2], [0, 0, 0, 1, 1, 2], [0], [0]>} : vector<4x4x4xf32>, vector<4x4x4xf32>, vector<4x4x4xf32> -> vector<4x4x4xf32>
    "tpu.trace_stop"() : () -> ()
    %192 = vector.shape_cast %190 : vector<4x4xf32> to vector<1x4x4xf32>
    %193 = vector.broadcast %192 : vector<1x4x4xf32> to vector<4x4x4xf32>
    %194 = arith.subf %193, %191 : vector<4x4x4xf32>
    %cst_70 = arith.constant 1.300000e+01 : f32
    %195 = vector.broadcast %cst_70 : f32 to vector<4x4xf32>
    %196 = arith.mulf %195, %7 : vector<4x4xf32>
    "tpu.trace_start"() <{level = 10 : i32, message = "hij,hjk->hik"}> : () -> ()
    %cst_71 = arith.constant dense<0.000000e+00> : vector<4x4x4xf32>
    %197 = tpu.matmul %183, %194, %cst_71 {dimension_numbers = #tpu.dot_dimension_numbers<[2], [1], [1], [2], [0, 0, 0, 1, 1, 2], [0], [0]>} : vector<4x4x4xf32>, vector<4x4x4xf32>, vector<4x4x4xf32> -> vector<4x4x4xf32>
    "tpu.trace_stop"() : () -> ()
    %198 = vector.shape_cast %196 : vector<4x4xf32> to vector<1x4x4xf32>
    %199 = vector.broadcast %198 : vector<1x4x4xf32> to vector<4x4x4xf32>
    %200 = arith.subf %199, %197 : vector<4x4x4xf32>
    "tpu.trace_start"() <{level = 10 : i32, message = "hij,hjk->hik"}> : () -> ()
    %cst_72 = arith.constant dense<0.000000e+00> : vector<4x4x4xf32>
    %201 = tpu.matmul %182, %200, %cst_72 {dimension_numbers = #tpu.dot_dimension_numbers<[2], [1], [1], [2], [0, 0, 0, 1, 1, 2], [0], [0]>} : vector<4x4x4xf32>, vector<4x4x4xf32>, vector<4x4x4xf32> -> vector<4x4x4xf32>
    "tpu.trace_stop"() : () -> ()
    %cst_73 = arith.constant 2.500000e-01 : f32
    %202 = vector.broadcast %cst_73 : f32 to vector<4x4x4xf32>
    %203 = arith.mulf %202, %201 : vector<4x4x4xf32>
    "tpu.trace_start"() <{level = 10 : i32, message = "hij,hjk->hik"}> : () -> ()
    %cst_74 = arith.constant dense<0.000000e+00> : vector<4x4x4xf32>
    %204 = tpu.matmul %86, %203, %cst_74 {dimension_numbers = #tpu.dot_dimension_numbers<[2], [1], [1], [2], [0, 0, 0, 1, 1, 2], [0], [0]>} : vector<4x4x4xf32>, vector<4x4x4xf32>, vector<4x4x4xf32> -> vector<4x4x4xf32>
    "tpu.trace_stop"() : () -> ()
    %cst_75 = arith.constant 7.000000e+00 : f32
    %205 = vector.broadcast %cst_75 : f32 to vector<4x4xf32>
    %206 = arith.mulf %205, %7 : vector<4x4xf32>
    %207 = vector.shape_cast %206 : vector<4x4xf32> to vector<1x4x4xf32>
    %208 = vector.broadcast %207 : vector<1x4x4xf32> to vector<4x4x4xf32>
    %209 = arith.subf %208, %204 : vector<4x4x4xf32>
    %cst_76 = arith.constant 1.500000e+01 : f32
    %210 = vector.broadcast %cst_76 : f32 to vector<4x4xf32>
    %211 = arith.mulf %210, %7 : vector<4x4xf32>
    "tpu.trace_start"() <{level = 10 : i32, message = "hij,hjk->hik"}> : () -> ()
    %cst_77 = arith.constant dense<0.000000e+00> : vector<4x4x4xf32>
    %212 = tpu.matmul %204, %209, %cst_77 {dimension_numbers = #tpu.dot_dimension_numbers<[2], [1], [1], [2], [0, 0, 0, 1, 1, 2], [0], [0]>} : vector<4x4x4xf32>, vector<4x4x4xf32>, vector<4x4x4xf32> -> vector<4x4x4xf32>
    "tpu.trace_stop"() : () -> ()
    %213 = vector.shape_cast %211 : vector<4x4xf32> to vector<1x4x4xf32>
    %214 = vector.broadcast %213 : vector<1x4x4xf32> to vector<4x4x4xf32>
    %215 = arith.subf %214, %212 : vector<4x4x4xf32>
    %cst_78 = arith.constant 1.300000e+01 : f32
    %216 = vector.broadcast %cst_78 : f32 to vector<4x4xf32>
    %217 = arith.mulf %216, %7 : vector<4x4xf32>
    "tpu.trace_start"() <{level = 10 : i32, message = "hij,hjk->hik"}> : () -> ()
    %cst_79 = arith.constant dense<0.000000e+00> : vector<4x4x4xf32>
    %218 = tpu.matmul %204, %215, %cst_79 {dimension_numbers = #tpu.dot_dimension_numbers<[2], [1], [1], [2], [0, 0, 0, 1, 1, 2], [0], [0]>} : vector<4x4x4xf32>, vector<4x4x4xf32>, vector<4x4x4xf32> -> vector<4x4x4xf32>
    "tpu.trace_stop"() : () -> ()
    %219 = vector.shape_cast %217 : vector<4x4xf32> to vector<1x4x4xf32>
    %220 = vector.broadcast %219 : vector<1x4x4xf32> to vector<4x4x4xf32>
    %221 = arith.subf %220, %218 : vector<4x4x4xf32>
    "tpu.trace_start"() <{level = 10 : i32, message = "hij,hjk->hik"}> : () -> ()
    %cst_80 = arith.constant dense<0.000000e+00> : vector<4x4x4xf32>
    %222 = tpu.matmul %203, %221, %cst_80 {dimension_numbers = #tpu.dot_dimension_numbers<[2], [1], [1], [2], [0, 0, 0, 1, 1, 2], [0], [0]>} : vector<4x4x4xf32>, vector<4x4x4xf32>, vector<4x4x4xf32> -> vector<4x4x4xf32>
    "tpu.trace_stop"() : () -> ()
    %cst_81 = arith.constant 2.500000e-01 : f32
    %223 = vector.broadcast %cst_81 : f32 to vector<4x4x4xf32>
    %224 = arith.mulf %223, %222 : vector<4x4x4xf32>
    %225 = vector.extract_strided_slice %9 {offsets = [0, 0], sizes = [12, 8], strides = [1, 1]} : vector<12x32xf32> to vector<12x8xf32>
    %226 = vector.extract_strided_slice %11 {offsets = [0, 0], sizes = [12, 8], strides = [1, 1]} : vector<12x32xf32> to vector<12x8xf32>
    %227 = vector.extract_strided_slice %13 {offsets = [0, 0], sizes = [12, 8], strides = [1, 1]} : vector<12x32xf32> to vector<12x8xf32>
    %228 = vector.extract_strided_slice %15 {offsets = [0, 0], sizes = [4, 8], strides = [1, 1]} : vector<4x32xf32> to vector<4x8xf32>
    %229 = vector.extract_strided_slice %17 {offsets = [0, 0], sizes = [4, 8], strides = [1, 1]} : vector<4x32xf32> to vector<4x8xf32>
    %230 = arith.truncf %225 : vector<12x8xf32> to vector<12x8xbf16>
    %231 = arith.truncf %229 : vector<4x8xf32> to vector<4x8xbf16>
    %cst_82 = arith.constant dense<0.000000e+00> : vector<12x4xf32>
    %232 = tpu.matmul %230, %231, %cst_82 {dimension_numbers = #tpu.dot_dimension_numbers<[1], [1], [0], [0], [0, 0, 1, 0], [], []>} : vector<12x8xbf16>, vector<4x8xbf16>, vector<12x4xf32> -> vector<12x4xf32>
    %cst_83 = arith.constant dense<0xFF800000> : vector<12xf32>
    %233 = vector.multi_reduction <maximumf>, %232, %cst_83 [1] : vector<12x4xf32> to vector<12xf32>
    %234 = vector.shape_cast %233 : vector<12xf32> to vector<12x1xf32>
    %235 = vector.broadcast %234 : vector<12x1xf32> to vector<12x4xf32>
    %236 = arith.subf %232, %235 : vector<12x4xf32>
    %237 = math.exp %236 : vector<12x4xf32>
    %cst_84 = arith.constant dense<0.000000e+00> : vector<12xf32>
    %238 = vector.multi_reduction <add>, %237, %cst_84 [1] : vector<12x4xf32> to vector<12xf32>
    %239 = vector.shape_cast %238 : vector<12xf32> to vector<12x1xf32>
    %240 = tpu.reciprocal %239 {approx = true} : vector<12x1xf32> -> vector<12x1xf32>
    %241 = vector.broadcast %240 : vector<12x1xf32> to vector<12x4xf32>
    %242 = arith.mulf %237, %241 : vector<12x4xf32>
    %243 = arith.truncf %228 : vector<4x8xf32> to vector<4x8xbf16>
    %244 = arith.truncf %226 : vector<12x8xf32> to vector<12x8xbf16>
    %cst_85 = arith.constant dense<0.000000e+00> : vector<4x12xf32>
    %245 = tpu.matmul %243, %244, %cst_85 {dimension_numbers = #tpu.dot_dimension_numbers<[1], [1], [0], [0], [0, 0, 1, 0], [], []>} : vector<4x8xbf16>, vector<12x8xbf16>, vector<4x12xf32> -> vector<4x12xf32>
    %246 = vector.broadcast %5 : vector<1x12xf32> to vector<4x12xf32>
    %247 = arith.subf %245, %246 : vector<4x12xf32>
    %cst_86 = arith.constant dense<0xFF800000> : vector<4xf32>
    %248 = vector.multi_reduction <maximumf>, %247, %cst_86 [1] : vector<4x12xf32> to vector<4xf32>
    %249 = vector.shape_cast %248 : vector<4xf32> to vector<4x1xf32>
    %250 = vector.broadcast %249 : vector<4x1xf32> to vector<4x12xf32>
    %251 = arith.subf %247, %250 : vector<4x12xf32>
    %252 = math.exp %251 : vector<4x12xf32>
    %cst_87 = arith.constant dense<0.000000e+00> : vector<4xf32>
    %253 = vector.multi_reduction <add>, %252, %cst_87 [1] : vector<4x12xf32> to vector<4xf32>
    %254 = vector.shape_cast %253 : vector<4xf32> to vector<4x1xf32>
    %255 = tpu.reciprocal %254 {approx = true} : vector<4x1xf32> -> vector<4x1xf32>
    %256 = vector.broadcast %255 : vector<4x1xf32> to vector<4x12xf32>
    %257 = arith.mulf %252, %256 : vector<4x12xf32>
    %258 = arith.truncf %257 : vector<4x12xf32> to vector<4x12xbf16>
    %259 = arith.truncf %227 : vector<12x8xf32> to vector<12x8xbf16>
    %cst_88 = arith.constant dense<0.000000e+00> : vector<4x8xf32>
    %260 = tpu.matmul %258, %259, %cst_88 {dimension_numbers = #tpu.dot_dimension_numbers<[1], [0], [0], [1], [0, 0, 1, 1], [], []>} : vector<4x12xbf16>, vector<12x8xbf16>, vector<4x8xf32> -> vector<4x8xf32>
    %261 = vector.extract_strided_slice %224 {offsets = [0, 0, 0], sizes = [1, 4, 4], strides = [1, 1, 1]} : vector<4x4x4xf32> to vector<1x4x4xf32>
    %262 = vector.shape_cast %261 : vector<1x4x4xf32> to vector<4x4xf32>
    %cst_89 = arith.constant dense<0.000000e+00> : vector<4x8xf32>
    %263 = tpu.matmul %262, %260, %cst_89 {dimension_numbers = #tpu.dot_dimension_numbers<[1], [0], [0], [1], [0, 0, 1, 1], [], []>} : vector<4x4xf32>, vector<4x8xf32>, vector<4x8xf32> -> vector<4x8xf32>
    %264 = arith.truncf %242 : vector<12x4xf32> to vector<12x4xbf16>
    %265 = arith.truncf %263 : vector<4x8xf32> to vector<4x8xbf16>
    %cst_90 = arith.constant dense<0.000000e+00> : vector<12x8xf32>
    %266 = tpu.matmul %264, %265, %cst_90 {dimension_numbers = #tpu.dot_dimension_numbers<[1], [0], [0], [1], [0, 0, 1, 1], [], []>} : vector<12x4xbf16>, vector<4x8xbf16>, vector<12x8xf32> -> vector<12x8xf32>
    %267 = vector.extract_strided_slice %9 {offsets = [0, 8], sizes = [12, 8], strides = [1, 1]} : vector<12x32xf32> to vector<12x8xf32>
    %268 = vector.extract_strided_slice %11 {offsets = [0, 8], sizes = [12, 8], strides = [1, 1]} : vector<12x32xf32> to vector<12x8xf32>
    %269 = vector.extract_strided_slice %13 {offsets = [0, 8], sizes = [12, 8], strides = [1, 1]} : vector<12x32xf32> to vector<12x8xf32>
    %270 = vector.extract_strided_slice %15 {offsets = [0, 8], sizes = [4, 8], strides = [1, 1]} : vector<4x32xf32> to vector<4x8xf32>
    %271 = vector.extract_strided_slice %17 {offsets = [0, 8], sizes = [4, 8], strides = [1, 1]} : vector<4x32xf32> to vector<4x8xf32>
    %272 = arith.truncf %267 : vector<12x8xf32> to vector<12x8xbf16>
    %273 = arith.truncf %271 : vector<4x8xf32> to vector<4x8xbf16>
    %cst_91 = arith.constant dense<0.000000e+00> : vector<12x4xf32>
    %274 = tpu.matmul %272, %273, %cst_91 {dimension_numbers = #tpu.dot_dimension_numbers<[1], [1], [0], [0], [0, 0, 1, 0], [], []>} : vector<12x8xbf16>, vector<4x8xbf16>, vector<12x4xf32> -> vector<12x4xf32>
    %cst_92 = arith.constant dense<0xFF800000> : vector<12xf32>
    %275 = vector.multi_reduction <maximumf>, %274, %cst_92 [1] : vector<12x4xf32> to vector<12xf32>
    %276 = vector.shape_cast %275 : vector<12xf32> to vector<12x1xf32>
    %277 = vector.broadcast %276 : vector<12x1xf32> to vector<12x4xf32>
    %278 = arith.subf %274, %277 : vector<12x4xf32>
    %279 = math.exp %278 : vector<12x4xf32>
    %cst_93 = arith.constant dense<0.000000e+00> : vector<12xf32>
    %280 = vector.multi_reduction <add>, %279, %cst_93 [1] : vector<12x4xf32> to vector<12xf32>
    %281 = vector.shape_cast %280 : vector<12xf32> to vector<12x1xf32>
    %282 = tpu.reciprocal %281 {approx = true} : vector<12x1xf32> -> vector<12x1xf32>
    %283 = vector.broadcast %282 : vector<12x1xf32> to vector<12x4xf32>
    %284 = arith.mulf %279, %283 : vector<12x4xf32>
    %285 = arith.truncf %270 : vector<4x8xf32> to vector<4x8xbf16>
    %286 = arith.truncf %268 : vector<12x8xf32> to vector<12x8xbf16>
    %cst_94 = arith.constant dense<0.000000e+00> : vector<4x12xf32>
    %287 = tpu.matmul %285, %286, %cst_94 {dimension_numbers = #tpu.dot_dimension_numbers<[1], [1], [0], [0], [0, 0, 1, 0], [], []>} : vector<4x8xbf16>, vector<12x8xbf16>, vector<4x12xf32> -> vector<4x12xf32>
    %288 = vector.broadcast %5 : vector<1x12xf32> to vector<4x12xf32>
    %289 = arith.subf %287, %288 : vector<4x12xf32>
    %cst_95 = arith.constant dense<0xFF800000> : vector<4xf32>
    %290 = vector.multi_reduction <maximumf>, %289, %cst_95 [1] : vector<4x12xf32> to vector<4xf32>
    %291 = vector.shape_cast %290 : vector<4xf32> to vector<4x1xf32>
    %292 = vector.broadcast %291 : vector<4x1xf32> to vector<4x12xf32>
    %293 = arith.subf %289, %292 : vector<4x12xf32>
    %294 = math.exp %293 : vector<4x12xf32>
    %cst_96 = arith.constant dense<0.000000e+00> : vector<4xf32>
    %295 = vector.multi_reduction <add>, %294, %cst_96 [1] : vector<4x12xf32> to vector<4xf32>
    %296 = vector.shape_cast %295 : vector<4xf32> to vector<4x1xf32>
    %297 = tpu.reciprocal %296 {approx = true} : vector<4x1xf32> -> vector<4x1xf32>
    %298 = vector.broadcast %297 : vector<4x1xf32> to vector<4x12xf32>
    %299 = arith.mulf %294, %298 : vector<4x12xf32>
    %300 = arith.truncf %299 : vector<4x12xf32> to vector<4x12xbf16>
    %301 = arith.truncf %269 : vector<12x8xf32> to vector<12x8xbf16>
    %cst_97 = arith.constant dense<0.000000e+00> : vector<4x8xf32>
    %302 = tpu.matmul %300, %301, %cst_97 {dimension_numbers = #tpu.dot_dimension_numbers<[1], [0], [0], [1], [0, 0, 1, 1], [], []>} : vector<4x12xbf16>, vector<12x8xbf16>, vector<4x8xf32> -> vector<4x8xf32>
    %303 = vector.extract_strided_slice %224 {offsets = [1, 0, 0], sizes = [1, 4, 4], strides = [1, 1, 1]} : vector<4x4x4xf32> to vector<1x4x4xf32>
    %304 = vector.shape_cast %303 : vector<1x4x4xf32> to vector<4x4xf32>
    %cst_98 = arith.constant dense<0.000000e+00> : vector<4x8xf32>
    %305 = tpu.matmul %304, %302, %cst_98 {dimension_numbers = #tpu.dot_dimension_numbers<[1], [0], [0], [1], [0, 0, 1, 1], [], []>} : vector<4x4xf32>, vector<4x8xf32>, vector<4x8xf32> -> vector<4x8xf32>
    %306 = arith.truncf %284 : vector<12x4xf32> to vector<12x4xbf16>
    %307 = arith.truncf %305 : vector<4x8xf32> to vector<4x8xbf16>
    %cst_99 = arith.constant dense<0.000000e+00> : vector<12x8xf32>
    %308 = tpu.matmul %306, %307, %cst_99 {dimension_numbers = #tpu.dot_dimension_numbers<[1], [0], [0], [1], [0, 0, 1, 1], [], []>} : vector<12x4xbf16>, vector<4x8xbf16>, vector<12x8xf32> -> vector<12x8xf32>
    %309 = vector.extract_strided_slice %9 {offsets = [0, 16], sizes = [12, 8], strides = [1, 1]} : vector<12x32xf32> to vector<12x8xf32>
    %310 = vector.extract_strided_slice %11 {offsets = [0, 16], sizes = [12, 8], strides = [1, 1]} : vector<12x32xf32> to vector<12x8xf32>
    %311 = vector.extract_strided_slice %13 {offsets = [0, 16], sizes = [12, 8], strides = [1, 1]} : vector<12x32xf32> to vector<12x8xf32>
    %312 = vector.extract_strided_slice %15 {offsets = [0, 16], sizes = [4, 8], strides = [1, 1]} : vector<4x32xf32> to vector<4x8xf32>
    %313 = vector.extract_strided_slice %17 {offsets = [0, 16], sizes = [4, 8], strides = [1, 1]} : vector<4x32xf32> to vector<4x8xf32>
    %314 = arith.truncf %309 : vector<12x8xf32> to vector<12x8xbf16>
    %315 = arith.truncf %313 : vector<4x8xf32> to vector<4x8xbf16>
    %cst_100 = arith.constant dense<0.000000e+00> : vector<12x4xf32>
    %316 = tpu.matmul %314, %315, %cst_100 {dimension_numbers = #tpu.dot_dimension_numbers<[1], [1], [0], [0], [0, 0, 1, 0], [], []>} : vector<12x8xbf16>, vector<4x8xbf16>, vector<12x4xf32> -> vector<12x4xf32>
    %cst_101 = arith.constant dense<0xFF800000> : vector<12xf32>
    %317 = vector.multi_reduction <maximumf>, %316, %cst_101 [1] : vector<12x4xf32> to vector<12xf32>
    %318 = vector.shape_cast %317 : vector<12xf32> to vector<12x1xf32>
    %319 = vector.broadcast %318 : vector<12x1xf32> to vector<12x4xf32>
    %320 = arith.subf %316, %319 : vector<12x4xf32>
    %321 = math.exp %320 : vector<12x4xf32>
    %cst_102 = arith.constant dense<0.000000e+00> : vector<12xf32>
    %322 = vector.multi_reduction <add>, %321, %cst_102 [1] : vector<12x4xf32> to vector<12xf32>
    %323 = vector.shape_cast %322 : vector<12xf32> to vector<12x1xf32>
    %324 = tpu.reciprocal %323 {approx = true} : vector<12x1xf32> -> vector<12x1xf32>
    %325 = vector.broadcast %324 : vector<12x1xf32> to vector<12x4xf32>
    %326 = arith.mulf %321, %325 : vector<12x4xf32>
    %327 = arith.truncf %312 : vector<4x8xf32> to vector<4x8xbf16>
    %328 = arith.truncf %310 : vector<12x8xf32> to vector<12x8xbf16>
    %cst_103 = arith.constant dense<0.000000e+00> : vector<4x12xf32>
    %329 = tpu.matmul %327, %328, %cst_103 {dimension_numbers = #tpu.dot_dimension_numbers<[1], [1], [0], [0], [0, 0, 1, 0], [], []>} : vector<4x8xbf16>, vector<12x8xbf16>, vector<4x12xf32> -> vector<4x12xf32>
    %330 = vector.broadcast %5 : vector<1x12xf32> to vector<4x12xf32>
    %331 = arith.subf %329, %330 : vector<4x12xf32>
    %cst_104 = arith.constant dense<0xFF800000> : vector<4xf32>
    %332 = vector.multi_reduction <maximumf>, %331, %cst_104 [1] : vector<4x12xf32> to vector<4xf32>
    %333 = vector.shape_cast %332 : vector<4xf32> to vector<4x1xf32>
    %334 = vector.broadcast %333 : vector<4x1xf32> to vector<4x12xf32>
    %335 = arith.subf %331, %334 : vector<4x12xf32>
    %336 = math.exp %335 : vector<4x12xf32>
    %cst_105 = arith.constant dense<0.000000e+00> : vector<4xf32>
    %337 = vector.multi_reduction <add>, %336, %cst_105 [1] : vector<4x12xf32> to vector<4xf32>
    %338 = vector.shape_cast %337 : vector<4xf32> to vector<4x1xf32>
    %339 = tpu.reciprocal %338 {approx = true} : vector<4x1xf32> -> vector<4x1xf32>
    %340 = vector.broadcast %339 : vector<4x1xf32> to vector<4x12xf32>
    %341 = arith.mulf %336, %340 : vector<4x12xf32>
    %342 = arith.truncf %341 : vector<4x12xf32> to vector<4x12xbf16>
    %343 = arith.truncf %311 : vector<12x8xf32> to vector<12x8xbf16>
    %cst_106 = arith.constant dense<0.000000e+00> : vector<4x8xf32>
    %344 = tpu.matmul %342, %343, %cst_106 {dimension_numbers = #tpu.dot_dimension_numbers<[1], [0], [0], [1], [0, 0, 1, 1], [], []>} : vector<4x12xbf16>, vector<12x8xbf16>, vector<4x8xf32> -> vector<4x8xf32>
    %345 = vector.extract_strided_slice %224 {offsets = [2, 0, 0], sizes = [1, 4, 4], strides = [1, 1, 1]} : vector<4x4x4xf32> to vector<1x4x4xf32>
    %346 = vector.shape_cast %345 : vector<1x4x4xf32> to vector<4x4xf32>
    %cst_107 = arith.constant dense<0.000000e+00> : vector<4x8xf32>
    %347 = tpu.matmul %346, %344, %cst_107 {dimension_numbers = #tpu.dot_dimension_numbers<[1], [0], [0], [1], [0, 0, 1, 1], [], []>} : vector<4x4xf32>, vector<4x8xf32>, vector<4x8xf32> -> vector<4x8xf32>
    %348 = arith.truncf %326 : vector<12x4xf32> to vector<12x4xbf16>
    %349 = arith.truncf %347 : vector<4x8xf32> to vector<4x8xbf16>
    %cst_108 = arith.constant dense<0.000000e+00> : vector<12x8xf32>
    %350 = tpu.matmul %348, %349, %cst_108 {dimension_numbers = #tpu.dot_dimension_numbers<[1], [0], [0], [1], [0, 0, 1, 1], [], []>} : vector<12x4xbf16>, vector<4x8xbf16>, vector<12x8xf32> -> vector<12x8xf32>
    %351 = vector.extract_strided_slice %9 {offsets = [0, 24], sizes = [12, 8], strides = [1, 1]} : vector<12x32xf32> to vector<12x8xf32>
    %352 = vector.extract_strided_slice %11 {offsets = [0, 24], sizes = [12, 8], strides = [1, 1]} : vector<12x32xf32> to vector<12x8xf32>
    %353 = vector.extract_strided_slice %13 {offsets = [0, 24], sizes = [12, 8], strides = [1, 1]} : vector<12x32xf32> to vector<12x8xf32>
    %354 = vector.extract_strided_slice %15 {offsets = [0, 24], sizes = [4, 8], strides = [1, 1]} : vector<4x32xf32> to vector<4x8xf32>
    %355 = vector.extract_strided_slice %17 {offsets = [0, 24], sizes = [4, 8], strides = [1, 1]} : vector<4x32xf32> to vector<4x8xf32>
    %356 = arith.truncf %351 : vector<12x8xf32> to vector<12x8xbf16>
    %357 = arith.truncf %355 : vector<4x8xf32> to vector<4x8xbf16>
    %cst_109 = arith.constant dense<0.000000e+00> : vector<12x4xf32>
    %358 = tpu.matmul %356, %357, %cst_109 {dimension_numbers = #tpu.dot_dimension_numbers<[1], [1], [0], [0], [0, 0, 1, 0], [], []>} : vector<12x8xbf16>, vector<4x8xbf16>, vector<12x4xf32> -> vector<12x4xf32>
    %cst_110 = arith.constant dense<0xFF800000> : vector<12xf32>
    %359 = vector.multi_reduction <maximumf>, %358, %cst_110 [1] : vector<12x4xf32> to vector<12xf32>
    %360 = vector.shape_cast %359 : vector<12xf32> to vector<12x1xf32>
    %361 = vector.broadcast %360 : vector<12x1xf32> to vector<12x4xf32>
    %362 = arith.subf %358, %361 : vector<12x4xf32>
    %363 = math.exp %362 : vector<12x4xf32>
    %cst_111 = arith.constant dense<0.000000e+00> : vector<12xf32>
    %364 = vector.multi_reduction <add>, %363, %cst_111 [1] : vector<12x4xf32> to vector<12xf32>
    %365 = vector.shape_cast %364 : vector<12xf32> to vector<12x1xf32>
    %366 = tpu.reciprocal %365 {approx = true} : vector<12x1xf32> -> vector<12x1xf32>
    %367 = vector.broadcast %366 : vector<12x1xf32> to vector<12x4xf32>
    %368 = arith.mulf %363, %367 : vector<12x4xf32>
    %369 = arith.truncf %354 : vector<4x8xf32> to vector<4x8xbf16>
    %370 = arith.truncf %352 : vector<12x8xf32> to vector<12x8xbf16>
    %cst_112 = arith.constant dense<0.000000e+00> : vector<4x12xf32>
    %371 = tpu.matmul %369, %370, %cst_112 {dimension_numbers = #tpu.dot_dimension_numbers<[1], [1], [0], [0], [0, 0, 1, 0], [], []>} : vector<4x8xbf16>, vector<12x8xbf16>, vector<4x12xf32> -> vector<4x12xf32>
    %372 = vector.broadcast %5 : vector<1x12xf32> to vector<4x12xf32>
    %373 = arith.subf %371, %372 : vector<4x12xf32>
    %cst_113 = arith.constant dense<0xFF800000> : vector<4xf32>
    %374 = vector.multi_reduction <maximumf>, %373, %cst_113 [1] : vector<4x12xf32> to vector<4xf32>
    %375 = vector.shape_cast %374 : vector<4xf32> to vector<4x1xf32>
    %376 = vector.broadcast %375 : vector<4x1xf32> to vector<4x12xf32>
    %377 = arith.subf %373, %376 : vector<4x12xf32>
    %378 = math.exp %377 : vector<4x12xf32>
    %cst_114 = arith.constant dense<0.000000e+00> : vector<4xf32>
    %379 = vector.multi_reduction <add>, %378, %cst_114 [1] : vector<4x12xf32> to vector<4xf32>
    %380 = vector.shape_cast %379 : vector<4xf32> to vector<4x1xf32>
    %381 = tpu.reciprocal %380 {approx = true} : vector<4x1xf32> -> vector<4x1xf32>
    %382 = vector.broadcast %381 : vector<4x1xf32> to vector<4x12xf32>
    %383 = arith.mulf %378, %382 : vector<4x12xf32>
    %384 = arith.truncf %383 : vector<4x12xf32> to vector<4x12xbf16>
    %385 = arith.truncf %353 : vector<12x8xf32> to vector<12x8xbf16>
    %cst_115 = arith.constant dense<0.000000e+00> : vector<4x8xf32>
    %386 = tpu.matmul %384, %385, %cst_115 {dimension_numbers = #tpu.dot_dimension_numbers<[1], [0], [0], [1], [0, 0, 1, 1], [], []>} : vector<4x12xbf16>, vector<12x8xbf16>, vector<4x8xf32> -> vector<4x8xf32>
    %387 = vector.extract_strided_slice %224 {offsets = [3, 0, 0], sizes = [1, 4, 4], strides = [1, 1, 1]} : vector<4x4x4xf32> to vector<1x4x4xf32>
    %388 = vector.shape_cast %387 : vector<1x4x4xf32> to vector<4x4xf32>
    %cst_116 = arith.constant dense<0.000000e+00> : vector<4x8xf32>
    %389 = tpu.matmul %388, %386, %cst_116 {dimension_numbers = #tpu.dot_dimension_numbers<[1], [0], [0], [1], [0, 0, 1, 1], [], []>} : vector<4x4xf32>, vector<4x8xf32>, vector<4x8xf32> -> vector<4x8xf32>
    %390 = arith.truncf %368 : vector<12x4xf32> to vector<12x4xbf16>
    %391 = arith.truncf %389 : vector<4x8xf32> to vector<4x8xbf16>
    %cst_117 = arith.constant dense<0.000000e+00> : vector<12x8xf32>
    %392 = tpu.matmul %390, %391, %cst_117 {dimension_numbers = #tpu.dot_dimension_numbers<[1], [0], [0], [1], [0, 0, 1, 1], [], []>} : vector<12x4xbf16>, vector<4x8xbf16>, vector<12x8xf32> -> vector<12x8xf32>
    %393 = tpu.concatenate %266, %308, %350, %392 in 1 : vector<12x8xf32>, vector<12x8xf32>, vector<12x8xf32>, vector<12x8xf32> -> vector<12x32xf32>
    %c0_118 = arith.constant 0 : index
    %c0_119 = arith.constant 0 : index
    %c0_120 = arith.constant 0 : index
    %394 = vector.load %arg5[%c0_118, %c0_119, %c0_120] : memref<1x12x32xf32, #tpu.memory_space<vmem>>, vector<1x12x32xf32>
    %395 = vector.shape_cast %394 : vector<1x12x32xf32> to vector<12x32xf32>
    %396 = vector.shape_cast %393 : vector<12x32xf32> to vector<1x12x32xf32>
    tpu.vector_store %arg5[%c0_118, %c0_119, %c0_120], %396 {strides = array<i32>} : memref<1x12x32xf32, #tpu.memory_space<vmem>>, vector<1x12x32xf32>,
    return
  }
  func.func @transform_0(%arg0: i32) -> (i32, i32, i32) {
    %c0_i32 = arith.constant 0 : i32
    %c0_i32_0 = arith.constant 0 : i32
    %c0_i32_1 = arith.constant 0 : i32
    return %arg0, %c0_i32, %c0_i32_0 : i32, i32, i32
  }
  func.func @transform_1(%arg0: i32) -> (i32, i32, i32) {
    %c0_i32 = arith.constant 0 : i32
    %c0_i32_0 = arith.constant 0 : i32
    %c0_i32_1 = arith.constant 0 : i32
    return %arg0, %c0_i32, %c0_i32_0 : i32, i32, i32
  }
  func.func @transform_2(%arg0: i32) -> (i32, i32) {
    %c0_i32 = arith.constant 0 : i32
    %c0_i32_0 = arith.constant 0 : i32
    %c0_i32_1 = arith.constant 0 : i32
    return %c0_i32, %c0_i32_0 : i32, i32
  }
  func.func @transform_3(%arg0: i32) -> (i32, i32) {
    %c0_i32 = arith.constant 0 : i32
    %c0_i32_0 = arith.constant 0 : i32
    %c0_i32_1 = arith.constant 0 : i32
    return %c0_i32, %c0_i32_0 : i32, i32
  }
  func.func @transform_4(%arg0: i32) -> (i32, i32, i32) {
    %c0_i32 = arith.constant 0 : i32
    %c0_i32_0 = arith.constant 0 : i32
    %c0_i32_1 = arith.constant 0 : i32
    return %arg0, %c0_i32, %c0_i32_0 : i32, i32, i32
  }
}

module attributes {stable_mosaic.version = 11 : i64} {
  func.func @_outproj_ln_ff_kernel(%arg0: i32, %arg1: i32, %arg2: memref<1x8x32xf32, #tpu.memory_space<vmem>>, %arg3: memref<1x8x32xf32, #tpu.memory_space<vmem>>, %arg4: memref<32x32xbf16, #tpu.memory_space<vmem>>, %arg5: memref<1x32xf32, #tpu.memory_space<vmem>>, %arg6: memref<1x32xf32, #tpu.memory_space<vmem>>, %arg7: memref<1x32xf32, #tpu.memory_space<vmem>>, %arg8: memref<32x64xbf16, #tpu.memory_space<vmem>>, %arg9: memref<1x64xf32, #tpu.memory_space<vmem>>, %arg10: memref<64x32xbf16, #tpu.memory_space<vmem>>, %arg11: memref<1x32xf32, #tpu.memory_space<vmem>>, %arg12: memref<1x8x32xf32, #tpu.memory_space<vmem>>) attributes {dimension_semantics = [#tpu.dimension_semantics<parallel>, #tpu.dimension_semantics<parallel>], iteration_bounds = array<i64: 2, 1>, scalar_prefetch = 0 : i64, scratch_operands = 0 : i64, tpu.core_type = #tpu.core_type<tc>, window_params = [{transform_indices = @transform_0, window_bounds = array<i64: 1, 8, 32>}, {transform_indices = @transform_1, window_bounds = array<i64: 1, 8, 32>}, {pipeline_mode = #tpu.pipeline_mode<synchronous>, transform_indices = @transform_2, window_bounds = array<i64: 32, 32>}, {pipeline_mode = #tpu.pipeline_mode<synchronous>, transform_indices = @transform_3, window_bounds = array<i64: 1, 32>}, {pipeline_mode = #tpu.pipeline_mode<synchronous>, transform_indices = @transform_4, window_bounds = array<i64: 1, 32>}, {pipeline_mode = #tpu.pipeline_mode<synchronous>, transform_indices = @transform_5, window_bounds = array<i64: 1, 32>}, {pipeline_mode = #tpu.pipeline_mode<synchronous>, transform_indices = @transform_6, window_bounds = array<i64: 32, 64>}, {pipeline_mode = #tpu.pipeline_mode<synchronous>, transform_indices = @transform_7, window_bounds = array<i64: 1, 64>}, {pipeline_mode = #tpu.pipeline_mode<synchronous>, transform_indices = @transform_8, window_bounds = array<i64: 64, 32>}, {pipeline_mode = #tpu.pipeline_mode<synchronous>, transform_indices = @transform_9, window_bounds = array<i64: 1, 32>}, {transform_indices = @transform_10, window_bounds = array<i64: 1, 8, 32>}]} {
    %c0 = arith.constant 0 : index
    %c0_0 = arith.constant 0 : index
    %c0_1 = arith.constant 0 : index
    %0 = vector.load %arg2[%c0, %c0_0, %c0_1] : memref<1x8x32xf32, #tpu.memory_space<vmem>>, vector<1x8x32xf32>
    %1 = vector.shape_cast %0 : vector<1x8x32xf32> to vector<8x32xf32>
    %c0_2 = arith.constant 0 : index
    %c0_3 = arith.constant 0 : index
    %c0_4 = arith.constant 0 : index
    %2 = vector.load %arg3[%c0_2, %c0_3, %c0_4] : memref<1x8x32xf32, #tpu.memory_space<vmem>>, vector<1x8x32xf32>
    %3 = vector.shape_cast %2 : vector<1x8x32xf32> to vector<8x32xf32>
    %4 = arith.truncf %3 : vector<8x32xf32> to vector<8x32xbf16>
    %c0_5 = arith.constant 0 : index
    %c0_6 = arith.constant 0 : index
    %5 = vector.load %arg4[%c0_5, %c0_6] : memref<32x32xbf16, #tpu.memory_space<vmem>>, vector<32x32xbf16>
    %cst = arith.constant dense<0.000000e+00> : vector<8x32xf32>
    %6 = tpu.matmul %4, %5, %cst {dimension_numbers = #tpu.dot_dimension_numbers<[1], [0], [0], [1], [0, 0, 1, 1], [], []>} : vector<8x32xbf16>, vector<32x32xbf16>, vector<8x32xf32> -> vector<8x32xf32>
    %7 = arith.addf %1, %6 : vector<8x32xf32>
    %c0_7 = arith.constant 0 : index
    %c0_8 = arith.constant 0 : index
    %8 = vector.load %arg5[%c0_7, %c0_8] : memref<1x32xf32, #tpu.memory_space<vmem>>, vector<1x32xf32>
    %9 = vector.broadcast %8 : vector<1x32xf32> to vector<8x32xf32>
    %10 = arith.addf %7, %9 : vector<8x32xf32>
    %c0_9 = arith.constant 0 : index
    %c0_10 = arith.constant 0 : index
    %11 = vector.load %arg6[%c0_9, %c0_10] : memref<1x32xf32, #tpu.memory_space<vmem>>, vector<1x32xf32>
    %c0_11 = arith.constant 0 : index
    %c0_12 = arith.constant 0 : index
    %12 = vector.load %arg7[%c0_11, %c0_12] : memref<1x32xf32, #tpu.memory_space<vmem>>, vector<1x32xf32>
    %cst_13 = arith.constant dense<0.000000e+00> : vector<8xf32>
    %13 = vector.multi_reduction <add>, %10, %cst_13 [1] : vector<8x32xf32> to vector<8xf32>
    %14 = vector.shape_cast %13 : vector<8xf32> to vector<8x1xf32>
    %cst_14 = arith.constant 3.200000e+01 : f32
    %15 = vector.broadcast %cst_14 : f32 to vector<8x1xf32>
    %16 = arith.divf %14, %15 : vector<8x1xf32>
    %17 = vector.broadcast %16 : vector<8x1xf32> to vector<8x32xf32>
    %18 = arith.subf %10, %17 : vector<8x32xf32>
    %19 = arith.mulf %18, %18 : vector<8x32xf32>
    %cst_15 = arith.constant dense<0.000000e+00> : vector<8xf32>
    %20 = vector.multi_reduction <add>, %19, %cst_15 [1] : vector<8x32xf32> to vector<8xf32>
    %21 = vector.shape_cast %20 : vector<8xf32> to vector<8x1xf32>
    %cst_16 = arith.constant 3.200000e+01 : f32
    %22 = vector.broadcast %cst_16 : f32 to vector<8x1xf32>
    %23 = arith.divf %21, %22 : vector<8x1xf32>
    %cst_17 = arith.constant 9.99999974E-6 : f32
    %24 = vector.broadcast %cst_17 : f32 to vector<8x1xf32>
    %25 = arith.addf %23, %24 : vector<8x1xf32>
    %26 = math.rsqrt %25 : vector<8x1xf32>
    %27 = vector.broadcast %26 : vector<8x1xf32> to vector<8x32xf32>
    %28 = arith.mulf %18, %27 : vector<8x32xf32>
    %29 = vector.broadcast %11 : vector<1x32xf32> to vector<8x32xf32>
    %30 = arith.mulf %28, %29 : vector<8x32xf32>
    %31 = vector.broadcast %12 : vector<1x32xf32> to vector<8x32xf32>
    %32 = arith.addf %30, %31 : vector<8x32xf32>
    %33 = arith.truncf %32 : vector<8x32xf32> to vector<8x32xbf16>
    %c0_18 = arith.constant 0 : index
    %c0_19 = arith.constant 0 : index
    %34 = vector.load %arg8[%c0_18, %c0_19] : memref<32x64xbf16, #tpu.memory_space<vmem>>, vector<32x64xbf16>
    %cst_20 = arith.constant dense<0.000000e+00> : vector<8x64xf32>
    %35 = tpu.matmul %33, %34, %cst_20 {dimension_numbers = #tpu.dot_dimension_numbers<[1], [0], [0], [1], [0, 0, 1, 1], [], []>} : vector<8x32xbf16>, vector<32x64xbf16>, vector<8x64xf32> -> vector<8x64xf32>
    %c0_21 = arith.constant 0 : index
    %c0_22 = arith.constant 0 : index
    %36 = vector.load %arg9[%c0_21, %c0_22] : memref<1x64xf32, #tpu.memory_space<vmem>>, vector<1x64xf32>
    %37 = vector.broadcast %36 : vector<1x64xf32> to vector<8x64xf32>
    %38 = arith.addf %35, %37 : vector<8x64xf32>
    %cst_23 = arith.constant 5.000000e-01 : f32
    %39 = vector.broadcast %cst_23 : f32 to vector<8x64xf32>
    %40 = arith.mulf %39, %38 : vector<8x64xf32>
    %cst_24 = arith.constant 0.707106769 : f32
    %41 = vector.broadcast %cst_24 : f32 to vector<8x64xf32>
    %42 = arith.mulf %38, %41 : vector<8x64xf32>
    %43 = math.erf %42 : vector<8x64xf32>
    %cst_25 = arith.constant 1.000000e+00 : f32
    %44 = vector.broadcast %cst_25 : f32 to vector<8x64xf32>
    %45 = arith.addf %44, %43 : vector<8x64xf32>
    %46 = arith.mulf %40, %45 : vector<8x64xf32>
    %47 = arith.truncf %46 : vector<8x64xf32> to vector<8x64xbf16>
    %c0_26 = arith.constant 0 : index
    %c0_27 = arith.constant 0 : index
    %48 = vector.load %arg10[%c0_26, %c0_27] : memref<64x32xbf16, #tpu.memory_space<vmem>>, vector<64x32xbf16>
    %cst_28 = arith.constant dense<0.000000e+00> : vector<8x32xf32>
    %49 = tpu.matmul %47, %48, %cst_28 {dimension_numbers = #tpu.dot_dimension_numbers<[1], [0], [0], [1], [0, 0, 1, 1], [], []>} : vector<8x64xbf16>, vector<64x32xbf16>, vector<8x32xf32> -> vector<8x32xf32>
    %50 = arith.addf %10, %49 : vector<8x32xf32>
    %c0_29 = arith.constant 0 : index
    %c0_30 = arith.constant 0 : index
    %51 = vector.load %arg11[%c0_29, %c0_30] : memref<1x32xf32, #tpu.memory_space<vmem>>, vector<1x32xf32>
    %52 = vector.broadcast %51 : vector<1x32xf32> to vector<8x32xf32>
    %53 = arith.addf %50, %52 : vector<8x32xf32>
    %c0_31 = arith.constant 0 : index
    %c0_32 = arith.constant 0 : index
    %c0_33 = arith.constant 0 : index
    %54 = vector.load %arg12[%c0_31, %c0_32, %c0_33] : memref<1x8x32xf32, #tpu.memory_space<vmem>>, vector<1x8x32xf32>
    %55 = vector.shape_cast %54 : vector<1x8x32xf32> to vector<8x32xf32>
    %56 = vector.shape_cast %53 : vector<8x32xf32> to vector<1x8x32xf32>
    tpu.vector_store %arg12[%c0_31, %c0_32, %c0_33], %56 {strides = array<i32>} : memref<1x8x32xf32, #tpu.memory_space<vmem>>, vector<1x8x32xf32>,
    return
  }
  func.func @transform_0(%arg0: i32, %arg1: i32) -> (i32, i32, i32) {
    %c0_i32 = arith.constant 0 : i32
    %c0_i32_0 = arith.constant 0 : i32
    return %arg0, %arg1, %c0_i32 : i32, i32, i32
  }
  func.func @transform_1(%arg0: i32, %arg1: i32) -> (i32, i32, i32) {
    %c0_i32 = arith.constant 0 : i32
    %c0_i32_0 = arith.constant 0 : i32
    return %arg0, %arg1, %c0_i32 : i32, i32, i32
  }
  func.func @transform_2(%arg0: i32, %arg1: i32) -> (i32, i32) {
    %c0_i32 = arith.constant 0 : i32
    %c0_i32_0 = arith.constant 0 : i32
    %c0_i32_1 = arith.constant 0 : i32
    return %c0_i32, %c0_i32_0 : i32, i32
  }
  func.func @transform_3(%arg0: i32, %arg1: i32) -> (i32, i32) {
    %c0_i32 = arith.constant 0 : i32
    %c0_i32_0 = arith.constant 0 : i32
    %c0_i32_1 = arith.constant 0 : i32
    return %c0_i32, %c0_i32_0 : i32, i32
  }
  func.func @transform_4(%arg0: i32, %arg1: i32) -> (i32, i32) {
    %c0_i32 = arith.constant 0 : i32
    %c0_i32_0 = arith.constant 0 : i32
    %c0_i32_1 = arith.constant 0 : i32
    return %c0_i32, %c0_i32_0 : i32, i32
  }
  func.func @transform_5(%arg0: i32, %arg1: i32) -> (i32, i32) {
    %c0_i32 = arith.constant 0 : i32
    %c0_i32_0 = arith.constant 0 : i32
    %c0_i32_1 = arith.constant 0 : i32
    return %c0_i32, %c0_i32_0 : i32, i32
  }
  func.func @transform_6(%arg0: i32, %arg1: i32) -> (i32, i32) {
    %c0_i32 = arith.constant 0 : i32
    %c0_i32_0 = arith.constant 0 : i32
    %c0_i32_1 = arith.constant 0 : i32
    return %c0_i32, %c0_i32_0 : i32, i32
  }
  func.func @transform_7(%arg0: i32, %arg1: i32) -> (i32, i32) {
    %c0_i32 = arith.constant 0 : i32
    %c0_i32_0 = arith.constant 0 : i32
    %c0_i32_1 = arith.constant 0 : i32
    return %c0_i32, %c0_i32_0 : i32, i32
  }
  func.func @transform_8(%arg0: i32, %arg1: i32) -> (i32, i32) {
    %c0_i32 = arith.constant 0 : i32
    %c0_i32_0 = arith.constant 0 : i32
    %c0_i32_1 = arith.constant 0 : i32
    return %c0_i32, %c0_i32_0 : i32, i32
  }
  func.func @transform_9(%arg0: i32, %arg1: i32) -> (i32, i32) {
    %c0_i32 = arith.constant 0 : i32
    %c0_i32_0 = arith.constant 0 : i32
    %c0_i32_1 = arith.constant 0 : i32
    return %c0_i32, %c0_i32_0 : i32, i32
  }
  func.func @transform_10(%arg0: i32, %arg1: i32) -> (i32, i32, i32) {
    %c0_i32 = arith.constant 0 : i32
    %c0_i32_0 = arith.constant 0 : i32
    return %arg0, %arg1, %c0_i32 : i32, i32, i32
  }
}

</mosaic_0001>

<bundles_post_ra>
// kernel: nystrom_block_forward.5
= control target key start
LH: loop header
LB: loop body
LE: loop exit
PB: predicated region body
PF: predicated region fallthrough
CT: control target
= control target key end

     0   :  { %s1147_s0 = inlined_call_operand.vmem [shape: f32[2,8,32], index: 0, kind: input, shape index: {}]   ;;  %s1148_s1 = inlined_call_operand.vmem [shape: f32[2,12,32], index: 1, kind: input, shape index: {}]   ;;  %s1149_s2 = inlined_call_operand.vmem [shape: bf16[32,32], index: 2, kind: input, shape index: {}]   ;;  %s1150_s3 = inlined_call_operand.vmem [shape: f32[1,32], index: 3, kind: input, shape index: {}]   ;;  %s1151_s4 = inlined_call_operand.vmem [shape: f32[1,32], index: 4, kind: input, shape index: {}]   ;;  %s1152_s5 = inlined_call_operand.vmem [shape: f32[1,32], index: 5, kind: input, shape index: {}]   ;;  %s1153_s6 = inlined_call_operand.vmem [shape: bf16[32,64], index: 6, kind: input, shape index: {}]   ;;  %s1154_s7 = inlined_call_operand.vmem [shape: f32[1,64], index: 7, kind: input, shape index: {}]   ;;  %s1155_s8 = inlined_call_operand.vmem [shape: bf16[64,32], index: 8, kind: input, shape index: {}]   ;;  %s1156_s9 = inlined_call_operand.vmem [shape: f32[1,32], index: 9, kind: input, shape index: {}]   ;;  %s1157_s10 = inlined_call_operand.hbm [shape: f32[2,8,32], index: 10, kind: output, shape index: {}]  }
   0x1   :  { %1159 = sst [smem:[#allocation6_spill]] %s1147_s0 }
   0x2   :  { %15 = vsyncpa [#allocation3], 0 }
   0x3   :  { %17 = vsyncpa [#allocation3 + $0x1], 0  ;;  %s998_s13 = smov 0   ;;  %s1000_s14 = smov 0  }
   0x4   :  { %s1002_s15 = smov 0   ;;  %s1004_s16 = smov 0  }
   0x5   :  { %s1006_s17 = smov 0   ;;  %s1008_s18 = smov 0  }
   0x6 LB: > { %s737_s19 = sadd.s32 4294967295, %s940_s18   ;;  %s738_s20 = sadd.s32 4294967294, %s940_s18   ;;  %s940_s18 = sphi %s1008_s18, %s23_s18   ;;  %s936_s17 = sphi %s1006_s17, %s1169_s17   ;;  %s932_s16 = sphi %s1004_s16, %s1168_s16   ;;  %s928_s15 = sphi %s1002_s15, %s1167_s15   ;;  %s924_s14 = sphi %s1000_s14, %s1166_s14   ;;  %s920_s13 = sphi %s998_s13, %s1165_s13  }
   0x7   : > { %s35_s21 = sadd.s32 1, %s936_s17  ;;  %s268_s22 = sadd.s32 1, %s928_s15 }
   0x8   : > { %p37_p0 = scmp.ge.s32.totalorder %s35_s21, 2  ;;  %p278_p1 = scmp.ne.s32.totalorder %s928_s15, %s924_s14 }
   0x9   : > { %p279_p2 = scmp.eq.s32.totalorder %s737_s19, 1  ;;  %p284_p3 = scmp.ne.s32.totalorder %s924_s14, %s920_s13 }
   0xa   : > { %s1171_s21 = smov (%p37_p0, %s35_s21), 0  ;;  %p285_p5 = scmp.eq.s32.totalorder %s738_s20, 1 }
   0xb   : > { %1160 = sst [smem:[#allocation5_spill]] %s1171_s21  ;;  %p1038_p4 = por %p279_p2, %p278_p1 }
   0xc   : > { %s263_s24 = ssub.s32 %s936_s17, %s1171_s21  ;;  %p741_p6 = scmp.ge.s32.totalorder %s940_s18, 1 }
   0xd   : > { %p266_p7 = scmp.eq.s32.totalorder %s263_s24, 0  ;;  %p1045_p8 = por %p285_p5, %p284_p3 }
   0xe   : > { %p348_p9 = scmp.lt.s32.totalorder %s940_s18, 3 }
   0xf   : > { %s1051_s26 = scalar_select %p266_p7, %s928_s15, %s268_s22  }
  0x10   : > { %p349_p10 = pnand %p741_p6, %p348_p9 }
  0x11   : > { %p396_p11 = scmp.lt.s32.totalorder (!%p349_p10), %s932_s16, 1  ;;  %s1163_s0 = sld [smem:[#allocation6_spill]] (!%p349_p10) }
  0x12   : > { %352 = sbr.rel (%p349_p10) target bundleno = 752 (0x2f0), region = 60  ;;  %s393_s27 = sand.u32 (!%p349_p10), 1, %s924_s14  }
  0x13   : > { %s742_s28 = sshll.u32 (!%p349_p10), %s393_s27, 3  ;;  %s783_s29 = sshll.u32 (!%p349_p10), %s932_s16, 3 }
  0x14   : > { %s395_s20 = scalar_lea.vmem (!%p349_p10), [#allocation2], %s742_s28  ;;  %s882_s28 = scalar_lea.hbm (!%p349_p10), %s1157_s10, 16 }
  0x17   : > { %v788_v0 = vld [vmem:[%s1149_s2 + $0x8] sm:$0xff]  ;;  %v787_v1 = vld [vmem:[%s1149_s2] sm:$0xff]  ;;  %s397_s11 = scalar_select %p396_p11, %s932_s16, 1  ;;  %vm431_vm0 = vcmask 261120   ;;  %v942_v11 = vmov 32.0   ;;  %v794_v48 = vld [vmem:[%s1155_s8 + $0x18] sm:$0xff] }
  0x18   : > { %441 = vmatpush.bf16.msra.mxu0 %v788_v0  ;;  %v851_v5 = vld [vmem:[%s1150_s3] ss:$0 sm:$0xff]  ;;  %856 = vrcp.f32 %v942_v11  ;;  %v790_v23 = vld [vmem:[%s1153_s6 + $0x8] sm:$0xff]  ;;  %615 = vmatpush.bf16.msra.mxu2 %v794_v48  ;;  %v793_v53 = vld [vmem:[%s1155_s8 + $0x10] sm:$0xff]  ;;  %vm607_vm9 = vcmask 523264   ;;  %s632_s16 = scalar_lea.sflag [#allocation3], %s393_s27 }
  0x19   : > { %s786_s12 = sshll.u32 %s397_s11, 4  ;;  %s743_s24 = sshll.u32 %s397_s11, 3  ;;  %523 = vmatpush.bf16.msra.mxu1 %v790_v23  ;;  %v789_v24 = vld [vmem:[%s1153_s6] sm:$0xff]  ;;  %v792_v56 = vld [vmem:[%s1155_s8 + $0x8] sm:$0xff] }
  0x1a   : > { %s410_s22 = scalar_lea.vmem %s1148_s1, %s786_s12  ;;  %s402_s21 = scalar_lea.vmem %s1163_s0, %s743_s24  ;;  %v852_v34 = vld [vmem:[%s1151_s4] ss:$0 sm:$0xff] }
  0x1b   : > { %v413_v2 = vld [vmem:[%s410_s22] sm:$0xff]  ;;  %s643_s11 = scalar_lea.hbm %s1157_s10, %s783_s29  ;;  %s645_s22 = sshll.u32 %s395_s20, 4  ;;  %s646_s22 = int_to_ptr.vmem [resolvable:$true] %s645_s22 }
  0x1c   : > { %442 = vmatpush.bf16.msra.mxu0 %v787_v1  ;;  %v414_v3 = vpack.c.bf16 %v413_v2, %v413_v2  ;;  %v412_v4 = vld [vmem:[%s402_s21] sm:$0xff]  ;;  %616 = vmatpush.bf16.msra.mxu2 %v793_v53  ;;  %s647_s24 = sshll.u32 %s643_s11, 4  ;;  %s648_s24 = int_to_ptr.hbm [resolvable:$true] %s647_s24 }
  0x1d   : > { %524 = vmatpush.bf16.msra.mxu1 %v789_v24  ;;  %v853_v37 = vld [vmem:[%s1152_s5] ss:$0 sm:$0xff]  ;;  %s876_s0 = sshra.s32 %s648_s24, 4  ;;  %s877_s0 = int_to_ptr.hbm [resolvable:$true] %s876_s0 }
  0x1e   : > { %v857_v12 = vpop.eup %856  ;;  %v854_v41 = vld [vmem:[%s1154_s7] ss:$0 sm:$0xff]  ;;  %s878_s29 = scalar_lea.hbm %s877_s0, 8  ;;  %p883_p1 = scmp.lt.s32.totalorder %s877_s0, %s1157_s10 }
  0x1f   : > { %754 = vmatmul.msk.bf16.vlgmr.msra.gmra.mxu0 %vm431_vm0, %v414_v3  ;;  %v460_v13 = vmul.f32 32.0, %v857_v12  ;;  %vm464_vm1 = vweird.f32 %v857_v12  ;;  %v791_v60 = vld [vmem:[%s1155_s8] sm:$0xff]  ;;  %p879_p12 = scmp.ne.s32.totalorder %s877_s0, %s878_s29  ;;  %p884_p2 = scmp.lt.s32.totalorder %s882_s28, %s878_s29 }
  0x20   : > { %617 = vmatpush.bf16.msra.mxu2 %v792_v56 }
  0x21   : > { %v461_v14 = vsub.f32 1.0, %v460_v13  ;;  %p880_p13 = pnand %p879_p12, %p1038_p4  ;;  %p885_p3 = por %p884_p2, %p883_p1 }
  0x23   : > { %v462_v15 = vmul.f32 %v857_v12, %v461_v14  ;;  %p881_p0 = pneg %p880_p13 }
  0x24   : > { %618 = vmatpush.bf16.msra.mxu2 %v791_v60 }
  0x25   : > { %v463_v16 = vadd.f32 %v857_v12, %v462_v15  ;;  %p886_p5 = pnand %p885_p3, %p881_p0 }
  0x27   : > { %v465_v17 = vsel %vm464_vm1, %v857_v12, %v463_v16 }
  0x9c   : > { %v444_v6 = vpop.f32.mrf.mxu0 }
  0x9d   : > { %v448_v7 = vadd.f32 %v444_v6, %v412_v4 }
  0x9f   : > { %v1071_v8 = vadd.f32 %v851_v5, %v448_v7 }
  0xa1   : > { %v456_v9 = vsel %vm431_vm0, %v1071_v8, 0.0 }
  0xa2   : > { %457 = vadd.xlane.f32.xlu0 %v456_v9 }
  0xa4   : > { %v446_v10 = vpop.f32.mrf.mxu0 }
 0x115   : > { %v458_v18 = vpop.xlane.xlu0 %457 }
 0x116   : > { %v466_v19 = vmul.f32 %v465_v17, %v458_v18 }
 0x118   : > { %v467_v20 = vsub.f32 %v1071_v8, %v466_v19 }
 0x11a   : > { %v468_v21 = vmul.f32 %v467_v20, %v467_v20 }
 0x11c   : > { %v469_v22 = vsel %vm431_vm0, %v468_v21, 0.0 }
 0x11d   : > { %470 = vadd.xlane.f32.xlu0 %v469_v22 }
 0x190   : > { %v471_v25 = vpop.xlane.xlu0 %470 }
 0x191   : > { %v472_v26 = vmul.f32 %v471_v25, %v465_v17 }
 0x193   : > { %v473_v27 = vadd.f32 1e-05, %v472_v26  ;;  %v855_v26 = vld [vmem:[%s1156_s9] ss:$0 sm:$0xff] }
 0x195   : > { %858 = vrsqrt.f32 %v473_v27  ;;  %vm480_vm3 = vweird.f32 %v473_v27 }
 0x19b   : > { %v859_v28 = vpop.eup %858 }
 0x19c   : > { %v475_v29 = vmul.f32 %v859_v28, %v473_v27  ;;  %vm481_vm2 = vweird.f32 %v859_v28 }
 0x19d   : > { %vm482_vm4 = vmor %vm480_vm3, %vm481_vm2 }
 0x19e   : > { %v476_v30 = vmul.f32 %v859_v28, %v475_v29 }
 0x1a0   : > { %v477_v31 = vmul.f32 0.5, %v476_v30 }
 0x1a2   : > { %v478_v32 = vsub.f32 1.5, %v477_v31 }
 0x1a4   : > { %v479_v33 = vmul.f32 %v859_v28, %v478_v32 }
 0x1a6   : > { %v483_v35 = vsel %vm482_vm4, %v859_v28, %v479_v33 }
 0x1a7   : > { %v484_v36 = vmul.f32 %v483_v35, %v467_v20 }
 0x1a9   : > { %v488_v38 = vmul.f32 %v852_v34, %v484_v36 }
 0x1ab   : > { %v492_v39 = vadd.f32 %v853_v37, %v488_v38 }
 0x1ad   : > { %v493_v40 = vpack.c.bf16 %v492_v39, %v492_v39 }
 0x1af   : > { %763 = vmatmul.msk.bf16.vlgmr.msra.gmra.mxu1 %vm431_vm0, %v493_v40 }
 0x22c   : > { %v526_v42 = vpop.f32.mrf.mxu1 }
 0x22d   : > { %v527_v43 = vadd.f32 %v854_v41, %v526_v42 }
 0x22f   : > { %v531_v44 = vmul.f32 0.70710677, %v527_v43  ;;  %v530_v22 = vmul.f32 0.5, %v527_v43 }
 0x231   : > { %v532_v45 = vmul.f32 %v531_v44, %v531_v44 }
 0x233   : > { %v533_v46 = vmin.f32 %v532_v45, 16.0 }
 0x234   : > { %v528_v47 = vpop.f32.mrf.mxu1 }
 0x235   : > { %v534_v49 = vmul.f32 2.1237322e-06, %v533_v46  ;;  %v545_v50 = vmul.f32 3.8918573e-05, %v533_v46 }
 0x237   : > { %v535_v51 = vadd.f32 0.00028619796, %v534_v49  ;;  %v546_v52 = vadd.f32 0.001143296, %v545_v50 }
 0x239   : > { %v536_v54 = vmul.f32 %v535_v51, %v533_v46  ;;  %v547_v55 = vmul.f32 %v546_v52, %v533_v46 }
 0x23b   : > { %v548_v57 = vadd.f32 0.014752088, %v547_v55  ;;  %v537_v58 = vadd.f32 0.0036580483, %v536_v54 }
 0x23d   : > { %v549_v59 = vmul.f32 %v548_v57, %v533_v46  ;;  %v538_v62 = vmul.f32 %v537_v58, %v533_v46 }
 0x23f   : > { %v550_v61 = vadd.f32 0.112945676, %v549_v59  ;;  %v539_v1 = vadd.f32 0.05243302, %v538_v62 }
 0x241   : > { %v551_v63 = vmul.f32 %v550_v61, %v533_v46  ;;  %v540_v4 = vmul.f32 %v539_v1, %v533_v46 }
 0x243   : > { %v552_v0 = vadd.f32 0.4994258, %v551_v63  ;;  %v541_v5 = vadd.f32 0.18741608, %v540_v4 }
 0x245   : > { %v553_v2 = vmul.f32 %v552_v0, %v533_v46  ;;  %v542_v7 = vmul.f32 %v541_v5, %v533_v46 }
 0x247   : > { %v554_v3 = vadd.f32 1.0, %v553_v2  ;;  %v543_v12 = vadd.f32 1.1283791, %v542_v7 }
 0x249   : > { %860 = vrcp.f32 %v554_v3  ;;  %v566_v11 = vand.u32 2147483648, %v554_v3  ;;  %v564_v14 = vand.u32 2147483647, %v554_v3  ;;  %vm560_vm6 = vweird.f32 %v554_v3 }
 0x24a   : > { %v544_v17 = vmul.f32 %v543_v12, %v531_v44 }
 0x24b   : > { %v567_v16 = vor.u32 1.1754944e-38, %v566_v11  ;;  %vm565_vm8 = vcmp.eq.f32.partialorder %v564_v14, 8.507059e+37 }
 0x24f   : > { %v861_v6 = vpop.eup %860 }
 0x250   : > { %v556_v9 = vmul.f32 %v861_v6, %v554_v3  ;;  %vm561_vm5 = vweird.f32 %v861_v6 }
 0x251   : > { %vm562_vm7 = vmor %vm560_vm6, %vm561_vm5 }
 0x252   : > { %v557_v10 = vsub.f32 1.0, %v556_v9 }
 0x254   : > { %v558_v13 = vmul.f32 %v861_v6, %v557_v10 }
 0x256   : > { %v559_v15 = vadd.f32 %v861_v6, %v558_v13 }
 0x258   : > { %v563_v18 = vsel %vm562_vm7, %v861_v6, %v559_v15 }
 0x259   : > { %v568_v19 = vsel %vm565_vm8, %v567_v16, %v563_v18 }
 0x25a   : > { %v569_v20 = vmul.f32 %v568_v19, %v544_v17 }
 0x25c   : > { %v764_v21 = vclamps-f32 %v569_v20, 1.0 }
 0x25e   : > { %v572_v23 = vadd.f32 1.0, %v764_v21 }
 0x260   : > { %v573_v24 = vmul.f32 %v572_v23, %v530_v22 }
 0x262   : > { %v574_v25 = vpack.c.bf16 %v573_v24, %v573_v24 }
 0x264   : > { %781 = vmatmul.msk.bf16.vlgmr.msra.gmra.mxu2 %vm607_vm9, %v574_v25 }
 0x2e7   : > { %v620_v27 = vpop.f32.mrf.mxu2 }
 0x2e8   : > { %v624_v28 = vadd.f32 %v620_v27, %v1071_v8 }
 0x2ea   : > { %v629_v29 = vadd.f32 %v855_v26, %v624_v28 }
 0x2ec   : > { %630 = vst.msk [vmem:[%s395_s20] sm:$0xff] %vm431_vm0, %v629_v29 }
 0x2ed   : > { %889 = shalt.err (!%p886_p5)
}
 0x2ee   : > { %795 = dma.vmem_to_hbm [thread:$0]  (%p1038_p4), %s646_s22, 128, %s648_s24, %s632_s16  }
 0x2ef   : > { %v622_v8 = vpop.f32.mrf.mxu2 }
 0x2f0 PF: > { %p801_p6 = scmp.ge.s32.totalorder %s940_s18, 2  ;;  %s659_s27 = sand.u32 1, %s920_s13  }
 0x2f1   : > { %s660_s19 = scalar_lea.sflag [#allocation3], %s659_s27 }
 0x2f2   : > { %p798_p7 = pnand %p801_p6, %p1045_p8 }
 0x2f4   : > { %p799_p9 = pneg %p798_p7 }
 0x2f6   : > { %915 = dma.done.wait (%p799_p9), %s660_s19, 128  }
 0x2f7   : > { %917 = vsyncadd (%p799_p9), %s660_s19, 4294967168  ;;  %s23_s18 = sadd.s32 1, %s940_s18   ;;  %s1164_s0 = sld [smem:[#allocation5_spill]] }
 0x2f8   : > { %p20_p10 = scmp.ge.s32.totalorder %s23_s18, 4   ;;  %s1165_s13 = smov %s924_s14 }
 0x2f9   : > { %s1166_s14 = smov %s928_s15  ;;  %s1167_s15 = smov %s1051_s26 }
 0x2fa   : > { %s1168_s16 = smov %s936_s17  ;;  %22 = sbr.rel (!%p20_p10) target bundleno = 6 (0x6), region = 98 }
 0x2fd   : > { %s1169_s17 = smov %s1164_s0 }
 0x2ff   :  { %666 = vsyncpa [#allocation3], 1 }
 0x300   :  { %668 = vsyncpa [#allocation3 + $0x1], 1 }

// kernel: nystrom_block_forward.3
= control target key start
LH: loop header
LB: loop body
LE: loop exit
PB: predicated region body
PF: predicated region fallthrough
CT: control target
= control target key end

     0   :  { %s690_s21 = smov 0   ;;  %s692_s22 = smov 0   ;;  %s751_s0 = inlined_call_operand.vmem [shape: f32[2,12,32], index: 0, kind: input, shape index: {}]   ;;  %s752_s1 = inlined_call_operand.vmem [shape: f32[2,12,1], index: 1, kind: input, shape index: {}]   ;;  %s753_s2 = inlined_call_operand.vmem [shape: f32[1,32], index: 2, kind: input, shape index: {}]   ;;  %s754_s3 = inlined_call_operand.vmem [shape: f32[1,32], index: 3, kind: input, shape index: {}]   ;;  %s755_s4 = inlined_call_operand.vmem [shape: bf16[32,96], index: 4, kind: input, shape index: {}]   ;;  %s756_s5 = inlined_call_operand.vmem [shape: f32[1,96], index: 5, kind: input, shape index: {}]   ;;  %s757_s6 = inlined_call_operand.vmem [shape: f32[2,12,96], index: 6, kind: output, shape index: {}]  }
   0x1   :  { %s694_s23 = smov 0  }
   0x2 LB: > { %s28_s24 = sadd.s32 1, %s647_s22  ;;  %p569_p0 = scmp.ge.s32.totalorder %s651_s23, 1  ;;  %s651_s23 = sphi %s694_s23, %s16_s23   ;;  %s647_s22 = sphi %s692_s22, %s759_s22   ;;  %s643_s21 = sphi %s690_s21, %s758_s21  }
   0x3   : > { %p30_p1 = scmp.ge.s32.totalorder %s28_s24, 2  ;;  %p250_p2 = scmp.lt.s32.totalorder %s651_s23, 3 }
   0x5   : > { %s761_s24 = smov (%p30_p1, %s28_s24), 0  ;;  %p251_p3 = pnand %p569_p0, %p250_p2 }
   0x6   : > { %p298_p4 = scmp.lt.s32.totalorder (!%p251_p3), %s643_s21, 1 }
   0x7   : > { %254 = sbr.rel (%p251_p3) target bundleno = 433 (0x1b1), region = 44 }
   0xc   : > { %s763_s21 = smov (!%p298_p4, %s643_s21), 1  ;;  %vm332_vm0 = vcmask 261120   ;;  %vm336_vm1 = vcmask 257024   ;;  %v653_v4 = vmov 32.0   ;;  %v591_v21 = vld [vmem:[%s755_s4 + $0x8] sm:$0xff]  ;;  %v590_v23 = vld [vmem:[%s755_s4] sm:$0xff]  ;;  %v433_v57 = vlaneseq }
   0xd   : > { %s708_s25 = sshll.u32 %s763_s21, 4  ;;  %623 = vrcp.f32 %v653_v4  ;;  %425 = vmatpush.bf16.msra.mxu0 %v591_v21  ;;  %v654_v28 = vmov 0   ;;  %v620_v47 = vld [vmem:[%s753_s2] ss:$0 sm:$0xff]  ;;  %vm456_vm10 = vcmask 785408   ;;  %vm458_vm11 = vcmask 781312  }
   0xe   : > { %s305_s28 = scalar_lea.vmem %s751_s0, %s708_s25  ;;  %s315_s11 = scalar_lea.vmem %s752_s1, %s708_s25  ;;  %618 = vset.pattern.permute.xlu2 %v654_v28  ;;  %619 = vset.pattern.permute.xlu0 %v654_v28  ;;  %v621_v52 = vld [vmem:[%s754_s3] ss:$0 sm:$0xff]  ;;  %v434_v58 = vand.u32 127, %v433_v57 }
   0xf   : > { %v328_v0 = vld [vmem:[%s305_s28] sm:$0xff]  ;;  %v329_v2 = vld [vmem:[%s305_s28 + $0x8] sm:$0xf]  ;;  %s325_s20 = scalar_lea.vmem %s757_s6, %s708_s25 }
  0x10   : > { %v333_v1 = vsel %vm332_vm0, %v328_v0, 0.0  ;;  %v337_v3 = vsel %vm336_vm1, %v329_v2, 0.0  ;;  %v436_v26 = vld [vmem:[%s315_s11] sm:$0xff]  ;;  %v437_v33 = vld [vmem:[%s315_s11 + $0x8] sm:$0xf]  ;;  %vm435_vm9 = vcmp.lt.s32.totalorder %v434_v58, 64 }
  0x11   : > { %334 = vadd.xlane.f32.xlu0 %v333_v1  ;;  %426 = vmatpush.bf16.msra.mxu0 %v590_v23  ;;  %v438_v29 = vmul.f32 0.59460354, %v436_v26  ;;  %v439_v36 = vmul.f32 0.59460354, %v437_v33  ;;  %v622_v60 = vld [vmem:[%s756_s5] ss:$0 sm:$0xff] }
  0x13   : > { %v624_v5 = vpop.eup %623  ;;  %444 = vperm.xlu2 %618, %v438_v29  }
  0x14   : > { %v341_v6 = vmul.f32 32.0, %v624_v5  ;;  %vm345_vm2 = vweird.f32 %v624_v5 }
  0x16   : > { %v342_v7 = vsub.f32 1.0, %v341_v6 }
  0x18   : > { %v343_v8 = vmul.f32 %v624_v5, %v342_v7 }
  0x19   : > { %338 = vadd.xlane.f32.xlu0 %v337_v3 }
  0x1a   : > { %v344_v9 = vadd.f32 %v624_v5, %v343_v8 }
  0x1b   : > { %449 = vperm.xlu2 %618, %v439_v36  }
  0x1c   : > { %v346_v10 = vsel %vm345_vm2, %v624_v5, %v344_v9 }
  0x6d   : > { %v445_v59 = vpop.permute.xlu2 %444 }
  0x6e   : > { %v452_v61 = vsel %vm435_vm9, %v445_v59, 1.0 }
  0x75   : > { %v450_v1 = vpop.permute.xlu2 %449 }
  0x76   : > { %v453_v4 = vsel %vm435_vm9, %v450_v1, 1.0 }
  0x84   : > { %v335_v11 = vpop.xlane.xlu0 %334 }
  0x85   : > { %v347_v12 = vmul.f32 %v346_v10, %v335_v11 }
  0x87   : > { %v349_v13 = vsub.f32 %v328_v0, %v347_v12 }
  0x89   : > { %v351_v14 = vmul.f32 %v349_v13, %v349_v13 }
  0x8b   : > { %v353_v15 = vsel %vm332_vm0, %v351_v14, 0.0 }
  0x8c   : > { %354 = vadd.xlane.f32.xlu1 %v353_v15  ;;  %v339_v16 = vpop.xlane.xlu0 %338 }
  0x8d   : > { %v348_v17 = vmul.f32 %v346_v10, %v339_v16 }
  0x8f   : > { %v350_v18 = vsub.f32 %v329_v2, %v348_v17 }
  0x91   : > { %v352_v19 = vmul.f32 %v350_v18, %v350_v18 }
  0x93   : > { %v356_v20 = vsel %vm336_vm1, %v352_v19, 0.0 }
  0x94   : > { %357 = vadd.xlane.f32.xlu1 %v356_v20 }
  0xff   : > { %v355_v22 = vpop.xlane.xlu1 %354 }
 0x100   : > { %v359_v24 = vmul.f32 %v355_v22, %v346_v10 }
 0x102   : > { %v361_v25 = vadd.f32 1e-05, %v359_v24 }
 0x104   : > { %625 = vrsqrt.f32 %v361_v25  ;;  %vm369_vm4 = vweird.f32 %v361_v25 }
 0x107   : > { %v358_v27 = vpop.xlane.xlu1 %357 }
 0x108   : > { %v360_v30 = vmul.f32 %v358_v27, %v346_v10 }
 0x10a   : > { %v626_v31 = vpop.eup %625  ;;  %v362_v32 = vadd.f32 1e-05, %v360_v30 }
 0x10b   : > { %v364_v34 = vmul.f32 %v626_v31, %v361_v25  ;;  %vm370_vm3 = vweird.f32 %v626_v31 }
 0x10c   : > { %627 = vrsqrt.f32 %v362_v32  ;;  %vm371_vm5 = vmor %vm369_vm4, %vm370_vm3  ;;  %vm379_vm7 = vweird.f32 %v362_v32 }
 0x10d   : > { %v365_v35 = vmul.f32 %v626_v31, %v364_v34 }
 0x10f   : > { %v366_v37 = vmul.f32 0.5, %v365_v35 }
 0x111   : > { %v367_v38 = vsub.f32 1.5, %v366_v37 }
 0x112   : > { %v628_v39 = vpop.eup %627 }
 0x113   : > { %v368_v40 = vmul.f32 %v626_v31, %v367_v38  ;;  %v374_v41 = vmul.f32 %v628_v39, %v362_v32  ;;  %vm380_vm6 = vweird.f32 %v628_v39 }
 0x114   : > { %vm381_vm8 = vmor %vm379_vm7, %vm380_vm6 }
 0x115   : > { %v375_v42 = vmul.f32 %v628_v39, %v374_v41  ;;  %v372_v43 = vsel %vm371_vm5, %v626_v31, %v368_v40 }
 0x116   : > { %v383_v46 = vmul.f32 %v372_v43, %v349_v13 }
 0x117   : > { %v376_v44 = vmul.f32 0.5, %v375_v42 }
 0x118   : > { %v388_v51 = vmul.f32 %v620_v47, %v383_v46 }
 0x119   : > { %v377_v45 = vsub.f32 1.5, %v376_v44 }
 0x11a   : > { %v393_v54 = vadd.f32 %v621_v52, %v388_v51 }
 0x11b   : > { %v378_v48 = vmul.f32 %v628_v39, %v377_v45 }
 0x11d   : > { %v382_v49 = vsel %vm381_vm8, %v628_v39, %v378_v48 }
 0x11e   : > { %v384_v50 = vmul.f32 %v382_v49, %v350_v18 }
 0x120   : > { %v389_v53 = vmul.f32 %v620_v47, %v384_v50 }
 0x122   : > { %v394_v55 = vadd.f32 %v621_v52, %v389_v53 }
 0x124   : > { %v395_v56 = vpack.c.bf16 %v394_v55, %v393_v54 }
 0x126   : > { %584 = vmatmul.msk.bf16.vlgmr.msra.gmra.mxu0 %vm332_vm0, %v395_v56 }
 0x1a3   : > { %v428_v62 = vpop.f32.mrf.mxu0 }
 0x1a4   : > { %v429_v63 = vadd.f32 %v622_v60, %v428_v62 }
 0x1a6   : > { %v454_v0 = vmul.f32 %v452_v61, %v429_v63 }
 0x1a8   : > { %457 = vst.msk [vmem:[%s325_s20] sm:$0xff] %vm456_vm10, %v454_v0 }
 0x1ab   : > { %v430_v2 = vpop.f32.mrf.mxu0 }
 0x1ac   : > { %v431_v3 = vadd.f32 %v622_v60, %v430_v2 }
 0x1ae   : > { %v455_v5 = vmul.f32 %v453_v4, %v431_v3 }
 0x1b0   : > { %459 = vst.msk [vmem:[%s325_s20 + $0x8] sm:$0xf] %vm458_vm11, %v455_v5 }
 0x1b1 PF: > { %s16_s23 = sadd.s32 1, %s651_s23   ;;  %s758_s21 = smov %s647_s22 }
 0x1b2   : > { %p13_p5 = scmp.ge.s32.totalorder %s16_s23, 4   ;;  %s759_s22 = smov %s761_s24 }
 0x1b4   :  { %15 = sbr.rel (!%p13_p5) target bundleno = 2 (0x2), region = 77 }

// kernel: nystrom_block_forward.4
= control target key start
LH: loop header
LB: loop body
LE: loop exit
PB: predicated region body
PF: predicated region fallthrough
CT: control target
= control target key end

     0   :  { %s4018_s15 = smov 0   ;;  %s4589_s0 = inlined_call_operand.vmem [shape: f32[2,1,12], index: 0, kind: input, shape index: {}]   ;;  %s4590_s1 = inlined_call_operand.vmem [shape: f32[2,12,96], index: 1, kind: input, shape index: {}]   ;;  %s4591_s2 = inlined_call_operand.vmem [shape: bf16[4,12], index: 2, kind: input, shape index: {}]   ;;  %s4592_s3 = inlined_call_operand.vmem [shape: f32[4,4], index: 3, kind: input, shape index: {}]   ;;  %s4593_s4 = inlined_call_operand.vmem [shape: f32[2,12,32], index: 4, kind: output, shape index: {}]  }
   0x1 LB: > { %s3634_s16 = sadd.s32 4294967295, %s3977_s15   ;;  %p3638_p0 = scmp.ge.s32.totalorder %s3977_s15, 1  ;;  %s3977_s15 = sphi %s4018_s15, %s14_s15  }
   0x2   : > { %p170_p1 = scmp.lt.s32.totalorder %s3977_s15, 3 }
   0x4   : > { %p171_p2 = pnand %p3638_p0, %p170_p1 }
   0x5   : > { %p199_p3 = scmp.lt.s32.totalorder (!%p171_p2), %s3634_s16, 1  ;;  %s3979_s21 = smov (!%p171_p2), 96  }
   0x6   : > { %174 = sbr.rel (%p171_p2) target bundleno = 5665 (0x1621), region = 36  ;;  %s3980_s24 = smov (!%p171_p2), 120  }
   0x7   : > { %s3981_s25 = smov (!%p171_p2), 112   ;;  %s3982_s26 = smov (!%p171_p2), 104  }
   0x8   : > { %s3983_s29 = smov (!%p171_p2), 88   ;;  %s3984_s30 = smov (!%p171_p2), 56  }
   0x9   : > { %s3985_s8 = smov (!%p171_p2), 64   ;;  %s3986_s9 = smov (!%p171_p2), 80  }
   0xa   : > { %s3987_s10 = smov (!%p171_p2), 48   ;;  %s3988_s11 = smov (!%p171_p2), 72  }
   0xb   : > { %s4595_s16 = smov (!%p199_p3, %s3634_s16), 1  ;;  %vm225_vm0 = vcmask 1045504   ;;  %v216_v4 = vld [vmem:[%s4591_s2] sm:$0x3]  ;;  %vm221_vm1 = vcmask 97280   ;;  %vm263_vm2 = vcmask 64512  }
   0xc   : > { %s3875_s17 = sshll.u32 %s4595_s16, 4  ;;  %vm283_vm3 = vcmask 27648   ;;  %vm295_vm4 = vcmask 31744   ;;  %v4096_v49 = vld [vmem:[%s4592_s3] sm:$0xf]  ;;  %vm543_vm5 = vcmask 1043456   ;;  %s201_s7 = scalar_lea.vmem %s4589_s0, %s4595_s16 }
   0xd   : > { %s206_s20 = scalar_lea.vmem %s4590_s1, %s3875_s17  ;;  %vm3028_vm6 = vcmask 93184   ;;  %vm3093_vm7 = vcmask 1041408   ;;  %s3989_s12 = smov 40   ;;  %vm3560_vm8 = vcmask 130048   ;;  %vm3563_vm9 = vcmask 195584  }
   0xe   : > { %v218_v0 = vld [vmem:[%s206_s20] sm:$0xff]  ;;  %v219_v1 = vld [vmem:[%s206_s20 + $0x8] sm:$0xf]  ;;  %s3990_s13 = smov 8   ;;  %s3991_s14 = smov 16   ;;  %vm3566_vm10 = vcmask 261120  }
   0xf   : > { %v4034_v2 = vpack.c.bf16 %v219_v1, %v218_v0  ;;  %s3992_s18 = smov 24   ;;  %vm3568_vm11 = vcmask 257024  }
  0x11   : > { %243 = vrot.lane.b32.xlu0 %v4034_v2, %s3979_s21  ;;  %v227_v3 = vsel %vm225_vm0, %v4034_v2, 0  ;;  %s211_s21 = scalar_lea.vmem %s4593_s4, %s3875_s17 }
  0x12   : > { %236 = vmatpush.bf16.msra.mxu0 %v227_v3 }
  0x15   : > { %3643 = vmatmul.msk.bf16.vlgmr.msra.gmra.mxu0 %vm221_vm1, %v216_v4 }
  0x83   : > { %v4043_v5 = vpop.permute.xlu0 %243 }
  0x84   : > { %v246_v6 = vsel %vm225_vm0, %v4043_v5, 0 }
  0x85   : > { %255 = vmatpush.bf16.msra.mxu1 %v246_v6 }
  0x88   : > { %3644 = vmatmul.msk.bf16.vlgmr.msra.gmra.mxu1 %vm221_vm1, %v216_v4 }
  0x92   : > { %v238_v7 = vpop.f32.mrf.mxu0 }
  0x93   : > { %v4048_v8 = vpack.c.bf16 %v238_v7, %v238_v7 }
  0x95   : > { %323 = vrot.lane.b32.xlu1 %v4048_v8, %s3980_s24  ;;  %381 = vrot.lane.b32.xlu2 %v4048_v8, %s3981_s25 }
  0x9a   : > { %v240_v9 = vpop.f32.mrf.mxu0 }
  0xef   : > { %v4075_v19 = vpop.permute.xlu2 %381 }
 0x105   : > { %v257_v10 = vpop.f32.mrf.mxu1 }
 0x106   : > { %v262_v11 = vpack.c.bf16 %v257_v10, %v257_v10 }
 0x107   : > { %v4065_v14 = vpop.permute.xlu1 %323 }
 0x108   : > { %326 = vrot.lane.b32.xlu0 %v262_v11, %s3980_s24  ;;  %383 = vrot.lane.b32.xlu1 %v262_v11, %s3981_s25  ;;  %v4057_v12 = vsel %vm263_vm2, %v262_v11, 0 }
 0x109   : > { %277 = vmatpush.bf16.xpose.msra.mxu2 %v4057_v12 }
 0x10d   : > { %v259_v13 = vpop.f32.mrf.mxu1 }
 0x110   : > { %440 = vrot.lane.b32.xlu1 %v262_v11, %s3982_s26  ;;  %3645 = vmatmul.msk.bf16.vlgmr.msra.gmra.mxu2 %vm263_vm2, %v4048_v8 }
 0x118   : > { %438 = vrot.lane.b32.xlu1 %v4048_v8, %s3982_s26 }
 0x17a   : > { %v327_v15 = vpop.permute.xlu0 %326  ;;  %v384_v16 = vpop.permute.xlu1 %383 }
 0x17b   : > { %v4068_v17 = vsel %vm263_vm2, %v327_v15, 0  ;;  %v4071_v18 = vsel %vm263_vm2, %v384_v16, 0 }
 0x17c   : > { %341 = vmatpush.bf16.xpose.msra.mxu3 %v4068_v17  ;;  %398 = vmatpush.bf16.xpose.msrb.mxu1 %v4071_v18 }
 0x182   : > { %v441_v23 = vpop.permute.xlu1 %440 }
 0x183   : > { %3648 = vmatmul.msk.bf16.vlgmr.msra.gmra.mxu3 %vm263_vm2, %v4065_v14  ;;  %3651 = vmatmul.msk.bf16.vlgmr.msrb.gmra.mxu1 %vm263_vm2, %v4075_v19  ;;  %v4106_v62 = vsel %vm263_vm2, %v441_v23, 0 }
 0x18a   : > { %v4082_v24 = vpop.permute.xlu1 %438 }
 0x193   : > { %v279_v20 = vpop.f32.mrf.mxu2 }
 0x194   : > { %v284_v21 = vsel %vm283_vm3, %v279_v20, -inf }
 0x195   : > { %285 = vmax.xlane.f32.xlu1 %v284_v21 }
 0x19b   : > { %v281_v22 = vpop.f32.mrf.mxu2 }
 0x200   : > { %v400_v25 = vpop.f32.mrf.mxu1 }
 0x201   : > { %v404_v33 = vsel %vm283_vm3, %v400_v25, -inf }
 0x206   : > { %v343_v26 = vpop.f32.mrf.mxu3 }
 0x207   : > { %v347_v27 = vsel %vm283_vm3, %v343_v26, -inf }
 0x208   : > { %348 = vmax.xlane.f32.xlu2 %v347_v27  ;;  %v402_v28 = vpop.f32.mrf.mxu1  ;;  %v286_v29 = vpop.xlane.xlu1 %285 }
 0x209   : > { %v287_v30 = vsub.f32 %v279_v20, %v286_v29 }
 0x20b   : > { %v288_v31 = vmul.f32 1.442695, %v287_v30 }
 0x20d   : > { %3899 = vpow2.f32 %v288_v31 }
 0x20e   : > { %v345_v32 = vpop.f32.mrf.mxu3 }
 0x210   : > { %405 = vmax.xlane.f32.xlu2 %v404_v33 }
 0x213   : > { %v3900_v34 = vpop.eup %3899 }
 0x214   : > { %v290_v35 = vsel %vm283_vm3, %v3900_v34, 0.0 }
 0x218   : > { %291 = vadd.xlane.f32.xlu2 %v290_v35 }
 0x27b   : > { %v349_v36 = vpop.xlane.xlu2 %348 }
 0x27c   : > { %v350_v37 = vsub.f32 %v343_v26, %v349_v36 }
 0x27e   : > { %v351_v38 = vmul.f32 1.442695, %v350_v37 }
 0x280   : > { %3901 = vpow2.f32 %v351_v38  ;;  %v4141_v38 = vmul.f32 7.0, %v4096_v49 }
 0x283   : > { %v406_v39 = vpop.xlane.xlu2 %405 }
 0x284   : > { %v407_v40 = vsub.f32 %v400_v25, %v406_v39 }
 0x286   : > { %v3902_v41 = vpop.eup %3901  ;;  %v408_v42 = vmul.f32 1.442695, %v407_v40 }
 0x287   : > { %v353_v43 = vsel %vm283_vm3, %v3902_v41, 0.0 }
 0x288   : > { %3903 = vpow2.f32 %v408_v42  ;;  %354 = vadd.xlane.f32.xlu0 %v353_v43 }
 0x28b   : > { %v292_v44 = vpop.xlane.xlu2 %291 }
 0x28c   : > { %3905 = vrcp.f32 %v292_v44 }
 0x28e   : > { %v3904_v45 = vpop.eup %3903 }
 0x28f   : > { %v410_v46 = vsel %vm283_vm3, %v3904_v45, 0.0 }
 0x290   : > { %411 = vadd.xlane.f32.xlu0 %v410_v46 }
 0x292   : > { %v3906_v47 = vpop.eup %3905 }
 0x293   : > { %v4089_v48 = vmul.f32 %v3906_v47, %v3900_v34 }
 0x295   : > { %3646 = vmatpush.xpose.msk.msrb.mxu2 %vm295_vm4, %v4089_v48  ;;  %v495_v50 = vsel %vm283_vm3, %v4089_v48, 0.0 }
 0x296   : > { %v496_v51 = vrot.slane %v495_v50, 4 }
 0x298   : > { %3647 = vmatmul.msk.f32.vlgmr.msrb.gmra.mxu2 %vm295_vm4, %v4096_v49  ;;  %v497_v52 = vadd.f32 %v496_v51, %v495_v50  ;;  %v4151_v50 = vmul.f32 15.0, %v4096_v49 }
 0x29a   : > { %v498_v53 = vrot.slane %v497_v52, 2 }
 0x29c   : > { %v499_v54 = vadd.f32 %v498_v53, %v497_v52 }
 0x29e   : > { %v500_v55 = vrot.slane %v499_v54, 1 }
 0x2a0   : > { %v501_v56 = vadd.f32 %v500_v55, %v499_v54 }
 0x2a2   : > { %v523_v57 = vsel %vm295_vm4, %v501_v56, -inf }
 0x2a3   : > { %524 = vmax.xlane.f32.xlu1 %v523_v57 }
 0x2fb   : > { %v355_v58 = vpop.xlane.xlu0 %354 }
 0x2fc   : > { %3907 = vrcp.f32 %v355_v58 }
 0x302   : > { %v3908_v59 = vpop.eup %3907 }
 0x303   : > { %v4103_v60 = vmul.f32 %v3908_v59, %v3902_v41  ;;  %v412_v61 = vpop.xlane.xlu0 %411 }
 0x304   : > { %3909 = vrcp.f32 %v412_v61 }
 0x305   : > { %3649 = vmatpush.xpose.msk.msrb.mxu0 %vm295_vm4, %v4103_v60  ;;  %v502_v63 = vsel %vm283_vm3, %v4103_v60, 0.0 }
 0x306   : > { %v503_v0 = vrot.slane %v502_v63, 4 }
 0x308   : > { %3650 = vmatmul.msk.f32.vlgmr.msrb.gmra.mxu0 %vm295_vm4, %v4096_v49  ;;  %v504_v1 = vadd.f32 %v503_v0, %v502_v63 }
 0x309   : > { %455 = vmatpush.bf16.xpose.msra.mxu0 %v4106_v62 }
 0x30a   : > { %v3910_v3 = vpop.eup %3909  ;;  %v505_v4 = vrot.slane %v504_v1, 2 }
 0x30b   : > { %v4115_v6 = vmul.f32 %v3910_v3, %v3904_v45 }
 0x30c   : > { %v506_v7 = vadd.f32 %v505_v4, %v504_v1 }
 0x30d   : > { %3652 = vmatpush.xpose.msk.msra.mxu2 %vm295_vm4, %v4115_v6  ;;  %v509_v21 = vsel %vm283_vm3, %v4115_v6, 0.0 }
 0x30e   : > { %v507_v9 = vrot.slane %v506_v7, 1  ;;  %v510_v22 = vrot.slane %v509_v21, 4 }
 0x310   : > { %3654 = vmatmul.msk.bf16.vlgmr.msra.gmra.mxu0 %vm263_vm2, %v4082_v24  ;;  %v508_v10 = vadd.f32 %v507_v9, %v506_v7  ;;  %3653 = vmatmul.msk.f32.vlgmr.msra.gmra.mxu2 %vm295_vm4, %v4096_v49  ;;  %v511_v23 = vadd.f32 %v510_v22, %v509_v21 }
 0x312   : > { %v526_v11 = vsel %vm295_vm4, %v508_v10, -inf  ;;  %v512_v27 = vrot.slane %v511_v23, 2 }
 0x313   : > { %527 = vmax.xlane.f32.xlu2 %v526_v11  ;;  %v4175_v11 = vmul.f32 13.0, %v4096_v49 }
 0x314   : > { %v513_v28 = vadd.f32 %v512_v27, %v511_v23 }
 0x316   : > { %v525_v13 = vpop.xlane.xlu1 %524  ;;  %v514_v33 = vrot.slane %v513_v28, 1 }
 0x317   : > { %3911 = vrcp.f32 %v525_v13 }
 0x318   : > { %v515_v34 = vadd.f32 %v514_v33, %v513_v28 }
 0x31a   : > { %v529_v36 = vsel %vm295_vm4, %v515_v34, -inf }
 0x31b   : > { %v319_v15 = vpop.f32.mrf.mxu2 }
 0x31d   : > { %v3912_v16 = vpop.eup %3911 }
 0x31e   : > { %v4124_v20 = vmul.f32 %v3912_v16, %v319_v15 }
 0x320   : > { %3657 = vmatpush.msk.msrb.mxu2 %vm543_vm5, %v4124_v20 }
 0x321   : > { %3658 = vmatmul.msk.f32.vlgmr.msrb.gmra.mxu2 %vm295_vm4, %v4089_v48 }
 0x385   : > { %v378_v25 = vpop.f32.mrf.mxu0 }
 0x386   : > { %v528_v26 = vpop.xlane.xlu2 %527 }
 0x387   : > { %3913 = vrcp.f32 %v528_v26 }
 0x38d   : > { %v3914_v29 = vpop.eup %3913  ;;  %v457_v30 = vpop.f32.mrf.mxu0 }
 0x38e   : > { %v4132_v31 = vmul.f32 %v3914_v29, %v378_v25  ;;  %v461_v32 = vsel %vm283_vm3, %v457_v30, -inf }
 0x38f   : > { %462 = vmax.xlane.f32.xlu0 %v461_v32 }
 0x390   : > { %3659 = vmatpush.msk.msra.mxu1 %vm543_vm5, %v4132_v31 }
 0x391   : > { %3660 = vmatmul.msk.f32.vlgmr.msra.gmra.mxu1 %vm295_vm4, %v4103_v60 }
 0x393   : > { %v435_v37 = vpop.f32.mrf.mxu2 }
 0x395   : > { %v459_v35 = vpop.f32.mrf.mxu0 }
 0x397   : > { %530 = vmax.xlane.f32.xlu0 %v529_v36 }
 0x3a4   : > { %v564_v39 = vpop.f32.mrf.mxu2 }
 0x3a5   : > { %v637_v40 = vsub.f32 %v4141_v38, %v564_v39 }
 0x3a7   : > { %3665 = vmatpush.msk.msrb.mxu0 %vm543_vm5, %v637_v40 }
 0x3a8   : > { %3666 = vmatmul.msk.f32.vlgmr.msrb.gmra.mxu0 %vm295_vm4, %v564_v39 }
 0x3ab   : > { %3152 = vrot.lane.b32.xlu0 %v4034_v2, %s3983_s29 }
 0x3b3   : > { %3183 = vrot.lane.b32.xlu0 %v4034_v2, %s3984_s30 }
 0x402   : > { %v463_v41 = vpop.xlane.xlu0 %462 }
 0x403   : > { %v464_v42 = vsub.f32 %v457_v30, %v463_v41 }
 0x405   : > { %v465_v43 = vmul.f32 1.442695, %v464_v42 }
 0x407   : > { %3915 = vpow2.f32 %v465_v43 }
 0x40a   : > { %v531_v53 = vpop.xlane.xlu0 %530 }
 0x40b   : > { %3917 = vrcp.f32 %v531_v53 }
 0x40d   : > { %v3916_v44 = vpop.eup %3915 }
 0x40e   : > { %v587_v45 = vpop.f32.mrf.mxu1  ;;  %v467_v46 = vsel %vm283_vm3, %v3916_v44, 0.0 }
 0x40f   : > { %v638_v47 = vsub.f32 %v4141_v38, %v587_v45  ;;  %468 = vadd.xlane.f32.xlu2 %v467_v46 }
 0x411   : > { %3667 = vmatpush.msk.msrb.mxu1 %vm543_vm5, %v638_v47  ;;  %v3918_v55 = vpop.eup %3917 }
 0x412   : > { %3668 = vmatmul.msk.f32.vlgmr.msrb.gmra.mxu1 %vm295_vm4, %v587_v45  ;;  %v4158_v58 = vmul.f32 %v3918_v55, %v435_v37 }
 0x425   : > { %v665_v51 = vpop.f32.mrf.mxu0 }
 0x426   : > { %v746_v52 = vsub.f32 %v4151_v50, %v665_v51 }
 0x428   : > { %3673 = vmatpush.msk.msra.mxu0 %vm543_vm5, %v746_v52 }
 0x429   : > { %3674 = vmatmul.msk.f32.vlgmr.msra.gmra.mxu0 %vm295_vm4, %v564_v39 }
 0x482   : > { %v469_v54 = vpop.xlane.xlu2 %468 }
 0x483   : > { %3919 = vrcp.f32 %v469_v54 }
 0x489   : > { %v3920_v56 = vpop.eup %3919 }
 0x48a   : > { %v4156_v57 = vmul.f32 %v3920_v56, %v3916_v44 }
 0x48c   : > { %3655 = vmatpush.xpose.msk.msrb.mxu3 %vm295_vm4, %v4156_v57  ;;  %v516_v59 = vsel %vm283_vm3, %v4156_v57, 0.0 }
 0x48d   : > { %v517_v61 = vrot.slane %v516_v59, 4 }
 0x48f   : > { %3656 = vmatmul.msk.f32.vlgmr.msrb.gmra.mxu3 %vm295_vm4, %v4096_v49  ;;  %v691_v63 = vpop.f32.mrf.mxu1  ;;  %v518_v0 = vadd.f32 %v517_v61, %v516_v59 }
 0x490   : > { %3661 = vmatpush.msk.msra.mxu3 %vm543_vm5, %v4158_v58  ;;  %v747_v1 = vsub.f32 %v4151_v50, %v691_v63 }
 0x491   : > { %v519_v3 = vrot.slane %v518_v0, 2 }
 0x492   : > { %3675 = vmatpush.msk.msra.mxu1 %vm543_vm5, %v747_v1 }
 0x493   : > { %3676 = vmatmul.msk.f32.vlgmr.msra.gmra.mxu1 %vm295_vm4, %v587_v45  ;;  %v520_v4 = vadd.f32 %v519_v3, %v518_v0 }
 0x495   : > { %v521_v7 = vrot.slane %v520_v4, 1 }
 0x497   : > { %3662 = vmatmul.msk.f32.vlgmr.msra.gmra.mxu3 %vm295_vm4, %v4115_v6  ;;  %v522_v9 = vadd.f32 %v521_v7, %v520_v4 }
 0x499   : > { %v532_v10 = vsel %vm295_vm4, %v522_v9, -inf }
 0x49a   : > { %533 = vmax.xlane.f32.xlu2 %v532_v10 }
 0x4a6   : > { %v771_v13 = vpop.f32.mrf.mxu0 }
 0x4a7   : > { %v843_v15 = vsub.f32 %v4175_v11, %v771_v13 }
 0x4a9   : > { %3681 = vmatpush.msk.msrb.mxu0 %vm543_vm5, %v843_v15 }
 0x4aa   : > { %3682 = vmatmul.msk.f32.vlgmr.msrb.gmra.mxu0 %vm295_vm4, %v4124_v20 }
 0x50d   : > { %v534_v16 = vpop.xlane.xlu2 %533 }
 0x50e   : > { %3921 = vrcp.f32 %v534_v16 }
 0x510   : > { %v794_v21 = vpop.f32.mrf.mxu1 }
 0x511   : > { %v844_v22 = vsub.f32 %v4175_v11, %v794_v21 }
 0x512   : > { %v492_v23 = vpop.f32.mrf.mxu3 }
 0x513   : > { %3683 = vmatpush.msk.msrb.mxu1 %vm543_vm5, %v844_v22 }
 0x514   : > { %v3922_v25 = vpop.eup %3921  ;;  %3684 = vmatmul.msk.f32.vlgmr.msrb.gmra.mxu1 %vm295_vm4, %v4132_v31 }
 0x515   : > { %v542_v49 = vmul.f32 %v3922_v25, %v492_v23 }
 0x517   : > { %3663 = vmatpush.msk.msra.mxu2 %vm543_vm5, %v542_v49 }
 0x518   : > { %3664 = vmatmul.msk.f32.vlgmr.msra.gmra.mxu2 %vm295_vm4, %v4156_v57 }
 0x51a   : > { %v610_v26 = vpop.f32.mrf.mxu3 }
 0x51b   : > { %v639_v20 = vsub.f32 %v4141_v38, %v610_v26 }
 0x51d   : > { %3669 = vmatpush.msk.msrb.mxu3 %vm543_vm5, %v639_v20 }
 0x51e   : > { %3670 = vmatmul.msk.f32.vlgmr.msrb.gmra.mxu3 %vm295_vm4, %v610_v26 }
 0x527   : > { %v869_v27 = vpop.f32.mrf.mxu0 }
 0x528   : > { %v947_v28 = vmul.f32 0.25, %v869_v27 }
 0x52a   : > { %3689 = vmatpush.msk.msra.mxu0 %vm543_vm5, %v947_v28 }
 0x52b   : > { %3690 = vmatmul.msk.f32.vlgmr.msra.gmra.mxu0 %vm295_vm4, %v4089_v48 }
 0x591   : > { %v894_v29 = vpop.f32.mrf.mxu1 }
 0x592   : > { %v948_v30 = vmul.f32 0.25, %v894_v29 }
 0x594   : > { %3691 = vmatpush.msk.msra.mxu1 %vm543_vm5, %v948_v30 }
 0x595   : > { %3692 = vmatmul.msk.f32.vlgmr.msra.gmra.mxu1 %vm295_vm4, %v4103_v60 }
 0x59b   : > { %v633_v31 = vpop.f32.mrf.mxu2 }
 0x59c   : > { %v640_v32 = vsub.f32 %v4141_v38, %v633_v31 }
 0x59e   : > { %3671 = vmatpush.msk.msrb.mxu2 %vm543_vm5, %v640_v32 }
 0x59f   : > { %3672 = vmatmul.msk.f32.vlgmr.msrb.gmra.mxu2 %vm295_vm4, %v633_v31 }
 0x5a1   : > { %v717_v33 = vpop.f32.mrf.mxu3 }
 0x5a2   : > { %v748_v34 = vsub.f32 %v4151_v50, %v717_v33 }
 0x5a4   : > { %3677 = vmatpush.msk.msra.mxu3 %vm543_vm5, %v748_v34 }
 0x5a5   : > { %3678 = vmatmul.msk.f32.vlgmr.msra.gmra.mxu3 %vm295_vm4, %v610_v26 }
 0x5a8   : > { %v971_v35 = vpop.f32.mrf.mxu0 }
 0x5a9   : > { %v1043_v36 = vsub.f32 %v4141_v38, %v971_v35 }
 0x5ab   : > { %3697 = vmatpush.msk.msrb.mxu0 %vm543_vm5, %v1043_v36 }
 0x5ac   : > { %3698 = vmatmul.msk.f32.vlgmr.msrb.gmra.mxu0 %vm295_vm4, %v971_v35 }
 0x612   : > { %v994_v37 = vpop.f32.mrf.mxu1 }
 0x613   : > { %v1044_v39 = vsub.f32 %v4141_v38, %v994_v37 }
 0x615   : > { %3699 = vmatpush.msk.msrb.mxu1 %vm543_vm5, %v1044_v39 }
 0x616   : > { %3700 = vmatmul.msk.f32.vlgmr.msrb.gmra.mxu1 %vm295_vm4, %v994_v37 }
 0x622   : > { %v743_v40 = vpop.f32.mrf.mxu2 }
 0x623   : > { %v749_v41 = vsub.f32 %v4151_v50, %v743_v40 }
 0x625   : > { %3679 = vmatpush.msk.msra.mxu2 %vm543_vm5, %v749_v41 }
 0x626   : > { %3680 = vmatmul.msk.f32.vlgmr.msra.gmra.mxu2 %vm295_vm4, %v633_v31 }
 0x628   : > { %v817_v42 = vpop.f32.mrf.mxu3 }
 0x629   : > { %v845_v43 = vsub.f32 %v4175_v11, %v817_v42  ;;  %v1070_v44 = vpop.f32.mrf.mxu0 }
 0x62a   : > { %v1151_v45 = vsub.f32 %v4151_v50, %v1070_v44 }
 0x62b   : > { %3685 = vmatpush.msk.msrb.mxu3 %vm543_vm5, %v845_v43 }
 0x62c   : > { %3686 = vmatmul.msk.f32.vlgmr.msrb.gmra.mxu3 %vm295_vm4, %v4158_v58  ;;  %3705 = vmatpush.msk.msra.mxu0 %vm543_vm5, %v1151_v45 }
 0x62d   : > { %3706 = vmatmul.msk.f32.vlgmr.msra.gmra.mxu0 %vm295_vm4, %v971_v35 }
 0x693   : > { %v1096_v46 = vpop.f32.mrf.mxu1 }
 0x694   : > { %v1152_v47 = vsub.f32 %v4151_v50, %v1096_v46 }
 0x696   : > { %3707 = vmatpush.msk.msra.mxu1 %vm543_vm5, %v1152_v47 }
 0x697   : > { %3708 = vmatmul.msk.f32.vlgmr.msra.gmra.mxu1 %vm295_vm4, %v994_v37 }
 0x6a9   : > { %v840_v51 = vpop.f32.mrf.mxu2 }
 0x6aa   : > { %v846_v52 = vsub.f32 %v4175_v11, %v840_v51  ;;  %v1175_v53 = vpop.f32.mrf.mxu0 }
 0x6ab   : > { %v1247_v54 = vsub.f32 %v4175_v11, %v1175_v53 }
 0x6ac   : > { %3687 = vmatpush.msk.msrb.mxu2 %vm543_vm5, %v846_v52 }
 0x6ad   : > { %3688 = vmatmul.msk.f32.vlgmr.msrb.gmra.mxu2 %vm295_vm4, %v542_v49  ;;  %3713 = vmatpush.msk.msrb.mxu0 %vm543_vm5, %v1247_v54 }
 0x6ae   : > { %3714 = vmatmul.msk.f32.vlgmr.msrb.gmra.mxu0 %vm295_vm4, %v947_v28 }
 0x6af   : > { %v919_v55 = vpop.f32.mrf.mxu3 }
 0x6b0   : > { %v949_v56 = vmul.f32 0.25, %v919_v55 }
 0x6b2   : > { %3693 = vmatpush.msk.msra.mxu3 %vm543_vm5, %v949_v56 }
 0x6b3   : > { %3694 = vmatmul.msk.f32.vlgmr.msra.gmra.mxu3 %vm295_vm4, %v4115_v6 }
 0x714   : > { %v1198_v58 = vpop.f32.mrf.mxu1 }
 0x715   : > { %v1248_v59 = vsub.f32 %v4175_v11, %v1198_v58 }
 0x717   : > { %3715 = vmatpush.msk.msrb.mxu1 %vm543_vm5, %v1248_v59 }
 0x718   : > { %3716 = vmatmul.msk.f32.vlgmr.msrb.gmra.mxu1 %vm295_vm4, %v948_v30 }
 0x72b   : > { %v1273_v61 = vpop.f32.mrf.mxu0 }
 0x72c   : > { %v1351_v63 = vmul.f32 0.25, %v1273_v61 }
 0x72e   : > { %3721 = vmatpush.msk.msra.mxu0 %vm543_vm5, %v1351_v63 }
 0x72f   : > { %3722 = vmatmul.msk.f32.vlgmr.msra.gmra.mxu0 %vm295_vm4, %v4089_v48 }
 0x730   : > { %v944_v0 = vpop.f32.mrf.mxu2 }
 0x731   : > { %v950_v1 = vmul.f32 0.25, %v944_v0 }
 0x733   : > { %3695 = vmatpush.msk.msra.mxu2 %vm543_vm5, %v950_v1 }
 0x734   : > { %3696 = vmatmul.msk.f32.vlgmr.msra.gmra.mxu2 %vm295_vm4, %v4156_v57 }
 0x736   : > { %v1017_v3 = vpop.f32.mrf.mxu3 }
 0x737   : > { %v1045_v4 = vsub.f32 %v4141_v38, %v1017_v3 }
 0x739   : > { %3701 = vmatpush.msk.msrb.mxu3 %vm543_vm5, %v1045_v4 }
 0x73a   : > { %3702 = vmatmul.msk.f32.vlgmr.msrb.gmra.mxu3 %vm295_vm4, %v1017_v3 }
 0x795   : > { %v1298_v7 = vpop.f32.mrf.mxu1 }
 0x796   : > { %v1352_v9 = vmul.f32 0.25, %v1298_v7 }
 0x798   : > { %3723 = vmatpush.msk.msra.mxu1 %vm543_vm5, %v1352_v9 }
 0x799   : > { %3724 = vmatmul.msk.f32.vlgmr.msra.gmra.mxu1 %vm295_vm4, %v4103_v60 }
 0x7ac   : > { %v1375_v10 = vpop.f32.mrf.mxu0 }
 0x7ad   : > { %v1447_v13 = vsub.f32 %v4141_v38, %v1375_v10 }
 0x7af   : > { %3729 = vmatpush.msk.msrb.mxu0 %vm543_vm5, %v1447_v13 }
 0x7b0   : > { %3730 = vmatmul.msk.f32.vlgmr.msrb.gmra.mxu0 %vm295_vm4, %v1375_v10 }
 0x7b7   : > { %v1040_v15 = vpop.f32.mrf.mxu2 }
 0x7b8   : > { %v1046_v16 = vsub.f32 %v4141_v38, %v1040_v15 }
 0x7ba   : > { %3703 = vmatpush.msk.msrb.mxu2 %vm543_vm5, %v1046_v16 }
 0x7bb   : > { %3704 = vmatmul.msk.f32.vlgmr.msrb.gmra.mxu2 %vm295_vm4, %v1040_v15 }
 0x7bd   : > { %v1122_v21 = vpop.f32.mrf.mxu3 }
 0x7be   : > { %v1153_v22 = vsub.f32 %v4151_v50, %v1122_v21 }
 0x7c0   : > { %3709 = vmatpush.msk.msra.mxu3 %vm543_vm5, %v1153_v22 }
 0x7c1   : > { %3710 = vmatmul.msk.f32.vlgmr.msra.gmra.mxu3 %vm295_vm4, %v1017_v3 }
 0x816   : > { %v1398_v23 = vpop.f32.mrf.mxu1 }
 0x817   : > { %v1448_v25 = vsub.f32 %v4141_v38, %v1398_v23 }
 0x819   : > { %3731 = vmatpush.msk.msrb.mxu1 %vm543_vm5, %v1448_v25 }
 0x81a   : > { %3732 = vmatmul.msk.f32.vlgmr.msrb.gmra.mxu1 %vm295_vm4, %v1398_v23 }
 0x82d   : > { %v1474_v49 = vpop.f32.mrf.mxu0 }
 0x82e   : > { %v1555_v26 = vsub.f32 %v4151_v50, %v1474_v49 }
 0x830   : > { %3737 = vmatpush.msk.msra.mxu0 %vm543_vm5, %v1555_v26 }
 0x831   : > { %3738 = vmatmul.msk.f32.vlgmr.msra.gmra.mxu0 %vm295_vm4, %v1375_v10 }
 0x83e   : > { %v1148_v20 = vpop.f32.mrf.mxu2 }
 0x83f   : > { %v1154_v27 = vsub.f32 %v4151_v50, %v1148_v20 }
 0x841   : > { %3711 = vmatpush.msk.msra.mxu2 %vm543_vm5, %v1154_v27 }
 0x842   : > { %3712 = vmatmul.msk.f32.vlgmr.msra.gmra.mxu2 %vm295_vm4, %v1040_v15 }
 0x844   : > { %v1221_v28 = vpop.f32.mrf.mxu3 }
 0x845   : > { %v1249_v29 = vsub.f32 %v4175_v11, %v1221_v28 }
 0x847   : > { %3717 = vmatpush.msk.msrb.mxu3 %vm543_vm5, %v1249_v29 }
 0x848   : > { %3718 = vmatmul.msk.f32.vlgmr.msrb.gmra.mxu3 %vm295_vm4, %v949_v56 }
 0x897   : > { %v1500_v30 = vpop.f32.mrf.mxu1 }
 0x898   : > { %v1556_v31 = vsub.f32 %v4151_v50, %v1500_v30 }
 0x89a   : > { %3739 = vmatpush.msk.msra.mxu1 %vm543_vm5, %v1556_v31 }
 0x89b   : > { %3740 = vmatmul.msk.f32.vlgmr.msra.gmra.mxu1 %vm295_vm4, %v1398_v23 }
 0x8ae   : > { %v1579_v32 = vpop.f32.mrf.mxu0 }
 0x8af   : > { %v1651_v33 = vsub.f32 %v4175_v11, %v1579_v32 }
 0x8b1   : > { %3745 = vmatpush.msk.msrb.mxu0 %vm543_vm5, %v1651_v33 }
 0x8b2   : > { %3746 = vmatmul.msk.f32.vlgmr.msrb.gmra.mxu0 %vm295_vm4, %v1351_v63 }
 0x8c5   : > { %v1244_v34 = vpop.f32.mrf.mxu2 }
 0x8c6   : > { %v1250_v35 = vsub.f32 %v4175_v11, %v1244_v34 }
 0x8c8   : > { %3719 = vmatpush.msk.msrb.mxu2 %vm543_vm5, %v1250_v35 }
 0x8c9   : > { %3720 = vmatmul.msk.f32.vlgmr.msrb.gmra.mxu2 %vm295_vm4, %v950_v1 }
 0x8cb   : > { %v1323_v36 = vpop.f32.mrf.mxu3 }
 0x8cc   : > { %v1353_v37 = vmul.f32 0.25, %v1323_v36 }
 0x8ce   : > { %3725 = vmatpush.msk.msra.mxu3 %vm543_vm5, %v1353_v37 }
 0x8cf   : > { %3726 = vmatmul.msk.f32.vlgmr.msra.gmra.mxu3 %vm295_vm4, %v4115_v6 }
 0x918   : > { %v1602_v39 = vpop.f32.mrf.mxu1 }
 0x919   : > { %v1652_v40 = vsub.f32 %v4175_v11, %v1602_v39 }
 0x91b   : > { %3747 = vmatpush.msk.msrb.mxu1 %vm543_vm5, %v1652_v40 }
 0x91c   : > { %3748 = vmatmul.msk.f32.vlgmr.msrb.gmra.mxu1 %vm295_vm4, %v1352_v9 }
 0x92f   : > { %v1677_v41 = vpop.f32.mrf.mxu0 }
 0x930   : > { %v1755_v42 = vmul.f32 0.25, %v1677_v41 }
 0x932   : > { %3753 = vmatpush.msk.msra.mxu0 %vm543_vm5, %v1755_v42 }
 0x933   : > { %3754 = vmatmul.msk.f32.vlgmr.msra.gmra.mxu0 %vm295_vm4, %v4089_v48 }
 0x94c   : > { %v1348_v43 = vpop.f32.mrf.mxu2 }
 0x94d   : > { %v1354_v44 = vmul.f32 0.25, %v1348_v43 }
 0x94f   : > { %3727 = vmatpush.msk.msra.mxu2 %vm543_vm5, %v1354_v44 }
 0x950   : > { %3728 = vmatmul.msk.f32.vlgmr.msra.gmra.mxu2 %vm295_vm4, %v4156_v57 }
 0x952   : > { %v1421_v45 = vpop.f32.mrf.mxu3 }
 0x953   : > { %v1449_v46 = vsub.f32 %v4141_v38, %v1421_v45 }
 0x955   : > { %3733 = vmatpush.msk.msrb.mxu3 %vm543_vm5, %v1449_v46 }
 0x956   : > { %3734 = vmatmul.msk.f32.vlgmr.msrb.gmra.mxu3 %vm295_vm4, %v1421_v45 }
 0x999   : > { %v1702_v47 = vpop.f32.mrf.mxu1 }
 0x99a   : > { %v1756_v51 = vmul.f32 0.25, %v1702_v47 }
 0x99c   : > { %3755 = vmatpush.msk.msra.mxu1 %vm543_vm5, %v1756_v51 }
 0x99d   : > { %3756 = vmatmul.msk.f32.vlgmr.msra.gmra.mxu1 %vm295_vm4, %v4103_v60 }
 0x9b0   : > { %v1779_v52 = vpop.f32.mrf.mxu0 }
 0x9b1   : > { %v1851_v53 = vsub.f32 %v4141_v38, %v1779_v52 }
 0x9b3   : > { %3761 = vmatpush.msk.msrb.mxu0 %vm543_vm5, %v1851_v53 }
 0x9b4   : > { %3762 = vmatmul.msk.f32.vlgmr.msrb.gmra.mxu0 %vm295_vm4, %v1779_v52 }
 0x9d3   : > { %v1444_v54 = vpop.f32.mrf.mxu2 }
 0x9d4   : > { %v1450_v55 = vsub.f32 %v4141_v38, %v1444_v54 }
 0x9d6   : > { %3735 = vmatpush.msk.msrb.mxu2 %vm543_vm5, %v1450_v55 }
 0x9d7   : > { %3736 = vmatmul.msk.f32.vlgmr.msrb.gmra.mxu2 %vm295_vm4, %v1444_v54 }
 0x9d9   : > { %v1526_v56 = vpop.f32.mrf.mxu3 }
 0x9da   : > { %v1557_v58 = vsub.f32 %v4151_v50, %v1526_v56 }
 0x9dc   : > { %3741 = vmatpush.msk.msra.mxu3 %vm543_vm5, %v1557_v58 }
 0x9dd   : > { %3742 = vmatmul.msk.f32.vlgmr.msra.gmra.mxu3 %vm295_vm4, %v1421_v45 }
 0xa1a   : > { %v1802_v59 = vpop.f32.mrf.mxu1 }
 0xa1b   : > { %v1852_v61 = vsub.f32 %v4141_v38, %v1802_v59 }
 0xa1d   : > { %3763 = vmatpush.msk.msrb.mxu1 %vm543_vm5, %v1852_v61 }
 0xa1e   : > { %3764 = vmatmul.msk.f32.vlgmr.msrb.gmra.mxu1 %vm295_vm4, %v1802_v59 }
 0xa31   : > { %v1878_v63 = vpop.f32.mrf.mxu0 }
 0xa32   : > { %v1959_v0 = vsub.f32 %v4151_v50, %v1878_v63 }
 0xa34   : > { %3769 = vmatpush.msk.msra.mxu0 %vm543_vm5, %v1959_v0 }
 0xa35   : > { %3770 = vmatmul.msk.f32.vlgmr.msra.gmra.mxu0 %vm295_vm4, %v1779_v52 }
 0xa5a   : > { %v1552_v1 = vpop.f32.mrf.mxu2 }
 0xa5b   : > { %v1558_v3 = vsub.f32 %v4151_v50, %v1552_v1 }
 0xa5d   : > { %3743 = vmatpush.msk.msra.mxu2 %vm543_vm5, %v1558_v3 }
 0xa5e   : > { %3744 = vmatmul.msk.f32.vlgmr.msra.gmra.mxu2 %vm295_vm4, %v1444_v54 }
 0xa60   : > { %v1625_v4 = vpop.f32.mrf.mxu3 }
 0xa61   : > { %v1653_v7 = vsub.f32 %v4175_v11, %v1625_v4 }
 0xa63   : > { %3749 = vmatpush.msk.msrb.mxu3 %vm543_vm5, %v1653_v7 }
 0xa64   : > { %3750 = vmatmul.msk.f32.vlgmr.msrb.gmra.mxu3 %vm295_vm4, %v1353_v37 }
 0xa9b   : > { %v1904_v9 = vpop.f32.mrf.mxu1 }
 0xa9c   : > { %v1960_v10 = vsub.f32 %v4151_v50, %v1904_v9 }
 0xa9e   : > { %3771 = vmatpush.msk.msra.mxu1 %vm543_vm5, %v1960_v10 }
 0xa9f   : > { %3772 = vmatmul.msk.f32.vlgmr.msra.gmra.mxu1 %vm295_vm4, %v1802_v59 }
 0xab2   : > { %v1983_v13 = vpop.f32.mrf.mxu0 }
 0xab3   : > { %v2055_v15 = vsub.f32 %v4175_v11, %v1983_v13 }
 0xab5   : > { %3777 = vmatpush.msk.msrb.mxu0 %vm543_vm5, %v2055_v15 }
 0xab6   : > { %3778 = vmatmul.msk.f32.vlgmr.msrb.gmra.mxu0 %vm295_vm4, %v1755_v42 }
 0xae1   : > { %v1648_v16 = vpop.f32.mrf.mxu2 }
 0xae2   : > { %v1654_v21 = vsub.f32 %v4175_v11, %v1648_v16 }
 0xae4   : > { %3751 = vmatpush.msk.msrb.mxu2 %vm543_vm5, %v1654_v21 }
 0xae5   : > { %3752 = vmatmul.msk.f32.vlgmr.msrb.gmra.mxu2 %vm295_vm4, %v1354_v44 }
 0xae7   : > { %v1727_v22 = vpop.f32.mrf.mxu3 }
 0xae8   : > { %v1757_v23 = vmul.f32 0.25, %v1727_v22 }
 0xaea   : > { %3757 = vmatpush.msk.msra.mxu3 %vm543_vm5, %v1757_v23 }
 0xaeb   : > { %3758 = vmatmul.msk.f32.vlgmr.msra.gmra.mxu3 %vm295_vm4, %v4115_v6 }
 0xb1c   : > { %v2006_v25 = vpop.f32.mrf.mxu1 }
 0xb1d   : > { %v2056_v49 = vsub.f32 %v4175_v11, %v2006_v25 }
 0xb1f   : > { %3779 = vmatpush.msk.msrb.mxu1 %vm543_vm5, %v2056_v49 }
 0xb20   : > { %3780 = vmatmul.msk.f32.vlgmr.msrb.gmra.mxu1 %vm295_vm4, %v1756_v51 }
 0xb33   : > { %v2081_v26 = vpop.f32.mrf.mxu0 }
 0xb34   : > { %v2159_v20 = vmul.f32 0.25, %v2081_v26 }
 0xb36   : > { %3785 = vmatpush.msk.msra.mxu0 %vm543_vm5, %v2159_v20 }
 0xb37   : > { %3786 = vmatmul.msk.f32.vlgmr.msra.gmra.mxu0 %vm295_vm4, %v4089_v48 }
 0xb68   : > { %v1752_v27 = vpop.f32.mrf.mxu2 }
 0xb69   : > { %v1758_v28 = vmul.f32 0.25, %v1752_v27 }
 0xb6b   : > { %3759 = vmatpush.msk.msra.mxu2 %vm543_vm5, %v1758_v28 }
 0xb6c   : > { %3760 = vmatmul.msk.f32.vlgmr.msra.gmra.mxu2 %vm295_vm4, %v4156_v57 }
 0xb6e   : > { %v1825_v29 = vpop.f32.mrf.mxu3 }
 0xb6f   : > { %v1853_v30 = vsub.f32 %v4141_v38, %v1825_v29 }
 0xb71   : > { %3765 = vmatpush.msk.msrb.mxu3 %vm543_vm5, %v1853_v30 }
 0xb72   : > { %3766 = vmatmul.msk.f32.vlgmr.msrb.gmra.mxu3 %vm295_vm4, %v1825_v29 }
 0xb9d   : > { %v2106_v31 = vpop.f32.mrf.mxu1 }
 0xb9e   : > { %v2160_v32 = vmul.f32 0.25, %v2106_v31 }
 0xba0   : > { %3787 = vmatpush.msk.msra.mxu1 %vm543_vm5, %v2160_v32 }
 0xba1   : > { %3788 = vmatmul.msk.f32.vlgmr.msra.gmra.mxu1 %vm295_vm4, %v4103_v60 }
 0xbb4   : > { %v2183_v33 = vpop.f32.mrf.mxu0 }
 0xbb5   : > { %v2255_v34 = vsub.f32 %v4141_v38, %v2183_v33 }
 0xbb7   : > { %3793 = vmatpush.msk.msrb.mxu0 %vm543_vm5, %v2255_v34 }
 0xbb8   : > { %3794 = vmatmul.msk.f32.vlgmr.msrb.gmra.mxu0 %vm295_vm4, %v2183_v33 }
 0xbef   : > { %v1848_v35 = vpop.f32.mrf.mxu2 }
 0xbf0   : > { %v1854_v36 = vsub.f32 %v4141_v38, %v1848_v35 }
 0xbf2   : > { %3767 = vmatpush.msk.msrb.mxu2 %vm543_vm5, %v1854_v36 }
 0xbf3   : > { %3768 = vmatmul.msk.f32.vlgmr.msrb.gmra.mxu2 %vm295_vm4, %v1848_v35 }
 0xbf5   : > { %v1930_v37 = vpop.f32.mrf.mxu3 }
 0xbf6   : > { %v1961_v39 = vsub.f32 %v4151_v50, %v1930_v37 }
 0xbf8   : > { %3773 = vmatpush.msk.msra.mxu3 %vm543_vm5, %v1961_v39 }
 0xbf9   : > { %3774 = vmatmul.msk.f32.vlgmr.msra.gmra.mxu3 %vm295_vm4, %v1825_v29 }
 0xc1e   : > { %v2206_v40 = vpop.f32.mrf.mxu1 }
 0xc1f   : > { %v2256_v41 = vsub.f32 %v4141_v38, %v2206_v40 }
 0xc21   : > { %3795 = vmatpush.msk.msrb.mxu1 %vm543_vm5, %v2256_v41  ;;  %v3009_v41 = vsel %vm263_vm2, %v4043_v5, 0  ;;  %v213_v5 = vld [vmem:[%s201_s7] sm:$0x1] }
 0xc22   : > { %3796 = vmatmul.msk.f32.vlgmr.msrb.gmra.mxu1 %vm295_vm4, %v2206_v40 }
 0xc35   : > { %v2282_v42 = vpop.f32.mrf.mxu0 }
 0xc36   : > { %v2363_v43 = vsub.f32 %v4151_v50, %v2282_v42 }
 0xc38   : > { %3801 = vmatpush.msk.msra.mxu0 %vm543_vm5, %v2363_v43  ;;  %v214_v43 = vsub.f32 1.0, %v213_v5 }
 0xc39   : > { %3802 = vmatmul.msk.f32.vlgmr.msra.gmra.mxu0 %vm295_vm4, %v2183_v33 }
 0xc76   : > { %v1956_v44 = vpop.f32.mrf.mxu2 }
 0xc77   : > { %v1962_v45 = vsub.f32 %v4151_v50, %v1956_v44 }
 0xc79   : > { %3775 = vmatpush.msk.msra.mxu2 %vm543_vm5, %v1962_v45 }
 0xc7a   : > { %3776 = vmatmul.msk.f32.vlgmr.msra.gmra.mxu2 %vm295_vm4, %v1848_v35 }
 0xc7c   : > { %v2029_v46 = vpop.f32.mrf.mxu3 }
 0xc7d   : > { %v2057_v47 = vsub.f32 %v4175_v11, %v2029_v46 }
 0xc7f   : > { %3781 = vmatpush.msk.msrb.mxu3 %vm543_vm5, %v2057_v47 }
 0xc80   : > { %3782 = vmatmul.msk.f32.vlgmr.msrb.gmra.mxu3 %vm295_vm4, %v1757_v23 }
 0xc9f   : > { %v2308_v51 = vpop.f32.mrf.mxu1 }
 0xca0   : > { %v2364_v52 = vsub.f32 %v4151_v50, %v2308_v51 }
 0xca2   : > { %3803 = vmatpush.msk.msra.mxu1 %vm543_vm5, %v2364_v52 }
 0xca3   : > { %3804 = vmatmul.msk.f32.vlgmr.msra.gmra.mxu1 %vm295_vm4, %v2206_v40 }
 0xcb6   : > { %v2387_v53 = vpop.f32.mrf.mxu0 }
 0xcb7   : > { %v2459_v54 = vsub.f32 %v4175_v11, %v2387_v53 }
 0xcb9   : > { %3809 = vmatpush.msk.msrb.mxu0 %vm543_vm5, %v2459_v54 }
 0xcba   : > { %3810 = vmatmul.msk.f32.vlgmr.msrb.gmra.mxu0 %vm295_vm4, %v2159_v20 }
 0xcfd   : > { %v2052_v55 = vpop.f32.mrf.mxu2 }
 0xcfe   : > { %v2058_v56 = vsub.f32 %v4175_v11, %v2052_v55 }
 0xd00   : > { %3783 = vmatpush.msk.msrb.mxu2 %vm543_vm5, %v2058_v56 }
 0xd01   : > { %3784 = vmatmul.msk.f32.vlgmr.msrb.gmra.mxu2 %vm295_vm4, %v1758_v28 }
 0xd03   : > { %v2131_v58 = vpop.f32.mrf.mxu3 }
 0xd04   : > { %v2161_v59 = vmul.f32 0.25, %v2131_v58 }
 0xd06   : > { %3789 = vmatpush.msk.msra.mxu3 %vm543_vm5, %v2161_v59 }
 0xd07   : > { %3790 = vmatmul.msk.f32.vlgmr.msra.gmra.mxu3 %vm295_vm4, %v4115_v6 }
 0xd20   : > { %v2410_v61 = vpop.f32.mrf.mxu1 }
 0xd21   : > { %v2460_v63 = vsub.f32 %v4175_v11, %v2410_v61 }
 0xd23   : > { %3811 = vmatpush.msk.msrb.mxu1 %vm543_vm5, %v2460_v63 }
 0xd24   : > { %3812 = vmatmul.msk.f32.vlgmr.msrb.gmra.mxu1 %vm295_vm4, %v2160_v32 }
 0xd37   : > { %v2485_v0 = vpop.f32.mrf.mxu0 }
 0xd38   : > { %v2563_v1 = vmul.f32 0.25, %v2485_v0 }
 0xd3a   : > { %3817 = vmatpush.msk.msra.mxu0 %vm543_vm5, %v2563_v1 }
 0xd3b   : > { %3818 = vmatmul.msk.f32.vlgmr.msra.gmra.mxu0 %vm295_vm4, %v4089_v48 }
 0xd84   : > { %v2156_v3 = vpop.f32.mrf.mxu2 }
 0xd85   : > { %v2162_v4 = vmul.f32 0.25, %v2156_v3 }
 0xd87   : > { %3791 = vmatpush.msk.msra.mxu2 %vm543_vm5, %v2162_v4 }
 0xd88   : > { %3792 = vmatmul.msk.f32.vlgmr.msra.gmra.mxu2 %vm295_vm4, %v4156_v57 }
 0xd8a   : > { %v2229_v7 = vpop.f32.mrf.mxu3 }
 0xd8b   : > { %v2257_v9 = vsub.f32 %v4141_v38, %v2229_v7 }
 0xd8d   : > { %3797 = vmatpush.msk.msrb.mxu3 %vm543_vm5, %v2257_v9 }
 0xd8e   : > { %3798 = vmatmul.msk.f32.vlgmr.msrb.gmra.mxu3 %vm295_vm4, %v2229_v7 }
 0xda1   : > { %v2510_v10 = vpop.f32.mrf.mxu1 }
 0xda2   : > { %v2564_v13 = vmul.f32 0.25, %v2510_v10 }
 0xda4   : > { %3819 = vmatpush.msk.msra.mxu1 %vm543_vm5, %v2564_v13 }
 0xda5   : > { %3820 = vmatmul.msk.f32.vlgmr.msra.gmra.mxu1 %vm295_vm4, %v4103_v60 }
 0xdb8   : > { %v2587_v48 = vpop.f32.mrf.mxu0 }
 0xdb9   : > { %v2659_v15 = vsub.f32 %v4141_v38, %v2587_v48 }
 0xdbb   : > { %3825 = vmatpush.msk.msrb.mxu0 %vm543_vm5, %v2659_v15 }
 0xdbc   : > { %3826 = vmatmul.msk.f32.vlgmr.msrb.gmra.mxu0 %vm295_vm4, %v2587_v48 }
 0xe0b   : > { %v2252_v16 = vpop.f32.mrf.mxu2 }
 0xe0c   : > { %v2258_v21 = vsub.f32 %v4141_v38, %v2252_v16 }
 0xe0e   : > { %3799 = vmatpush.msk.msrb.mxu2 %vm543_vm5, %v2258_v21 }
 0xe0f   : > { %3800 = vmatmul.msk.f32.vlgmr.msrb.gmra.mxu2 %vm295_vm4, %v2252_v16 }
 0xe11   : > { %v2334_v22 = vpop.f32.mrf.mxu3 }
 0xe12   : > { %v2365_v23 = vsub.f32 %v4151_v50, %v2334_v22 }
 0xe14   : > { %3805 = vmatpush.msk.msra.mxu3 %vm543_vm5, %v2365_v23 }
 0xe15   : > { %3806 = vmatmul.msk.f32.vlgmr.msra.gmra.mxu3 %vm295_vm4, %v2229_v7 }
 0xe22   : > { %v2610_v60 = vpop.f32.mrf.mxu1 }
 0xe23   : > { %v2660_v25 = vsub.f32 %v4141_v38, %v2610_v60 }
 0xe25   : > { %3827 = vmatpush.msk.msrb.mxu1 %vm543_vm5, %v2660_v25 }
 0xe26   : > { %3828 = vmatmul.msk.f32.vlgmr.msrb.gmra.mxu1 %vm295_vm4, %v2610_v60 }
 0xe39   : > { %v2686_v49 = vpop.f32.mrf.mxu0 }
 0xe3a   : > { %v2767_v26 = vsub.f32 %v4151_v50, %v2686_v49 }
 0xe3c   : > { %3833 = vmatpush.msk.msra.mxu0 %vm543_vm5, %v2767_v26 }
 0xe3d   : > { %3834 = vmatmul.msk.f32.vlgmr.msra.gmra.mxu0 %vm295_vm4, %v2587_v48 }
 0xe92   : > { %v2360_v20 = vpop.f32.mrf.mxu2 }
 0xe93   : > { %v2366_v27 = vsub.f32 %v4151_v50, %v2360_v20 }
 0xe95   : > { %3807 = vmatpush.msk.msra.mxu2 %vm543_vm5, %v2366_v27 }
 0xe96   : > { %3808 = vmatmul.msk.f32.vlgmr.msra.gmra.mxu2 %vm295_vm4, %v2252_v16 }
 0xe98   : > { %v2433_v28 = vpop.f32.mrf.mxu3 }
 0xe99   : > { %v2461_v29 = vsub.f32 %v4175_v11, %v2433_v28 }
 0xe9b   : > { %3813 = vmatpush.msk.msrb.mxu3 %vm543_vm5, %v2461_v29 }
 0xe9c   : > { %3814 = vmatmul.msk.f32.vlgmr.msrb.gmra.mxu3 %vm295_vm4, %v2161_v59 }
 0xea3   : > { %v2712_v30 = vpop.f32.mrf.mxu1 }
 0xea4   : > { %v2768_v31 = vsub.f32 %v4151_v50, %v2712_v30 }
 0xea6   : > { %3835 = vmatpush.msk.msra.mxu1 %vm543_vm5, %v2768_v31 }
 0xea7   : > { %3836 = vmatmul.msk.f32.vlgmr.msra.gmra.mxu1 %vm295_vm4, %v2610_v60 }
 0xeba   : > { %v2791_v32 = vpop.f32.mrf.mxu0 }
 0xebb   : > { %v2863_v33 = vsub.f32 %v4175_v11, %v2791_v32 }
 0xebd   : > { %3841 = vmatpush.msk.msrb.mxu0 %vm543_vm5, %v2863_v33 }
 0xebe   : > { %3842 = vmatmul.msk.f32.vlgmr.msrb.gmra.mxu0 %vm295_vm4, %v2563_v1 }
 0xebf   : > { %2980 = vmatpush.bf16.xpose.msra.mxu0 %v4057_v12 }
 0xec6   : > { %3849 = vmatmul.msk.bf16.vlgmr.msra.gmra.mxu0 %vm263_vm2, %v4034_v2 }
 0xec7   : > { %3123 = vmatpush.bf16.xpose.msrb.mxu0 %v4068_v17  ;;  %v3153_v17 = vpop.permute.xlu0 %3152 }
 0xec8   : > { %v3155_v40 = vsel %vm263_vm2, %v3153_v17, 0 }
 0xecf   : > { %v3184_v23 = vpop.permute.xlu0 %3183 }
 0xf19   : > { %v2456_v34 = vpop.f32.mrf.mxu2 }
 0xf1a   : > { %v2462_v35 = vsub.f32 %v4175_v11, %v2456_v34 }
 0xf1c   : > { %3815 = vmatpush.msk.msrb.mxu2 %vm543_vm5, %v2462_v35 }
 0xf1d   : > { %3816 = vmatmul.msk.f32.vlgmr.msrb.gmra.mxu2 %vm295_vm4, %v2162_v4 }
 0xf1f   : > { %v2535_v36 = vpop.f32.mrf.mxu3 }
 0xf20   : > { %v4425_v37 = vmul.f32 0.25, %v2535_v36 }
 0xf22   : > { %3821 = vmatpush.msk.msra.mxu3 %vm543_vm5, %v4425_v37 }
 0xf23   : > { %3822 = vmatmul.msk.f32.vlgmr.msra.gmra.mxu3 %vm295_vm4, %v4115_v6 }
 0xf24   : > { %v2814_v12 = vpop.f32.mrf.mxu1 }
 0xf25   : > { %v2864_v39 = vsub.f32 %v4175_v11, %v2814_v12 }
 0xf27   : > { %3843 = vmatpush.msk.msrb.mxu1 %vm543_vm5, %v2864_v39 }
 0xf28   : > { %3844 = vmatmul.msk.f32.vlgmr.msrb.gmra.mxu1 %vm295_vm4, %v2564_v13 }
 0xf29   : > { %3018 = vmatpush.bf16.xpose.msra.mxu1 %v3009_v41 }
 0xf30   : > { %3850 = vmatmul.msk.bf16.vlgmr.msra.gmra.mxu1 %vm263_vm2, %v4048_v8 }
 0xf31   : > { %3164 = vmatpush.bf16.xpose.msrb.mxu1 %v3155_v40 }
 0xf39   : > { %3264 = vmatpush.bf16.xpose.msra.mxu1 %v4071_v18  ;;  %v215_v18 = vmul.f32 1e+09, %v214_v43 }
 0xf3b   : > { %v4458_v45 = vperm.slane %v215_v18, 0  ;;  %v4465_v56 = vpop.f32.mrf.mxu0 }
 0xf40   : > { %3856 = vmatmul.msk.bf16.vlgmr.msrb.gmra.mxu1 %vm263_vm2, %v4065_v14 }
 0xf43   : > { %v2982_v58 = vpop.f32.mrf.mxu0 }
 0xf44   : > { %v2987_v59 = vsel %vm295_vm4, %v2982_v58, -inf }
 0xf45   : > { %2988 = vmax.xlane.f32.xlu0 %v2987_v59 }
 0xf4b   : > { %v2984_v4 = vpop.f32.mrf.mxu0 }
 0xf4c   : > { %v2990_v7 = vsel %vm283_vm3, %v2984_v4, -inf }
 0xfa0   : > { %v2560_v6 = vpop.f32.mrf.mxu2 }
 0xfa1   : > { %v4447_v42 = vmul.f32 0.25, %v2560_v6 }
 0xfa3   : > { %3823 = vmatpush.msk.msra.mxu2 %vm543_vm5, %v4447_v42 }
 0xfa4   : > { %3824 = vmatmul.msk.f32.vlgmr.msra.gmra.mxu2 %vm295_vm4, %v4156_v57 }
 0xfa5   : > { %v4453_v8 = vpop.f32.mrf.mxu1 }
 0xfa6   : > { %v2633_v14 = vpop.f32.mrf.mxu3 }
 0xfa7   : > { %v2661_v44 = vsub.f32 %v4141_v38, %v2633_v14 }
 0xfa9   : > { %3829 = vmatpush.msk.msrb.mxu3 %vm543_vm5, %v2661_v44 }
 0xfaa   : > { %3830 = vmatmul.msk.f32.vlgmr.msrb.gmra.mxu3 %vm295_vm4, %v2633_v14 }
 0xfad   : > { %v3020_v46 = vpop.f32.mrf.mxu1 }
 0xfae   : > { %v3027_v47 = vsub.f32 %v3020_v46, %v4458_v45 }
 0xfb0   : > { %v3029_v51 = vsel %vm3028_vm6, %v3027_v47, -inf }
 0xfb1   : > { %3030 = vmax.xlane.f32.xlu1 %v3029_v51 }
 0xfb5   : > { %v3022_v57 = vpop.f32.mrf.mxu1 }
 0xfb6   : > { %v2967_v57 = vmul.f32 0.25, %v4465_v56 }
 0xfb8   : > { %v2989_v25 = vpop.xlane.xlu0 %2988 }
 0xfb9   : > { %v2993_v49 = vsub.f32 %v2982_v58, %v2989_v25 }
 0xfbb   : > { %v2995_v20 = vmul.f32 1.442695, %v2993_v49 }
 0xfbd   : > { %v3166_v52 = vpop.f32.mrf.mxu1 }
 0xfbe   : > { %v3170_v53 = vsub.f32 %v3166_v52, %v4458_v45 }
 0xfc0   : > { %v3171_v54 = vsel %vm3028_vm6, %v3170_v53, -inf }
 0xfc1   : > { %3172 = vmax.xlane.f32.xlu2 %v3171_v54 }
 0xfc5   : > { %v3168_v55 = vpop.f32.mrf.mxu1 }
 0xfd9   : > { %3041 = vrot.lane.b32.xlu2 %v4034_v2, %s3985_s8 }
0x1002   : > { %2991 = vmax.xlane.f32.xlu2 %v2990_v7 }
0x101a   : > { %3111 = vrot.lane.b32.xlu2 %v4034_v2, %s3980_s24 }
0x1022   : > { %3252 = vrot.lane.b32.xlu2 %v4034_v2, %s3981_s25 }
0x1024   : > { %v3031_v61 = vpop.xlane.xlu1 %3030 }
0x1025   : > { %v3032_v63 = vsub.f32 %v3027_v47, %v3031_v61 }
0x1027   : > { %v3033_v0 = vmul.f32 1.442695, %v3032_v63  ;;  %v2656_v1 = vpop.f32.mrf.mxu2 }
0x1028   : > { %v2662_v3 = vsub.f32 %v4141_v38, %v2656_v1 }
0x1029   : > { %3923 = vpow2.f32 %v3033_v0 }
0x102a   : > { %3831 = vmatpush.msk.msrb.mxu2 %vm543_vm5, %v2662_v3 }
0x102b   : > { %3832 = vmatmul.msk.f32.vlgmr.msrb.gmra.mxu2 %vm295_vm4, %v2656_v1 }
0x102d   : > { %v2738_v9 = vpop.f32.mrf.mxu3 }
0x102e   : > { %v2769_v10 = vsub.f32 %v4151_v50, %v2738_v9 }
0x102f   : > { %v3924_v13 = vpop.eup %3923 }
0x1030   : > { %3837 = vmatpush.msk.msra.mxu3 %vm543_vm5, %v2769_v10  ;;  %v3035_v48 = vsel %vm3028_vm6, %v3924_v13, 0.0 }
0x1031   : > { %3838 = vmatmul.msk.f32.vlgmr.msra.gmra.mxu3 %vm295_vm4, %v2633_v14  ;;  %3036 = vadd.xlane.f32.xlu1 %v3035_v48 }
0x1034   : > { %v3173_v38 = vpop.xlane.xlu2 %3172 }
0x1035   : > { %v3174_v15 = vsub.f32 %v3170_v53, %v3173_v38 }
0x1037   : > { %v3175_v16 = vmul.f32 1.442695, %v3174_v15 }
0x1039   : > { %3925 = vpow2.f32 %v3175_v16  ;;  %v2968_v16 = vmul.f32 0.25, %v4453_v8 }
0x103a   : > { %3927 = vpow2.f32 %v2995_v20 }
0x103c   : > { %v3042_v60 = vpop.permute.xlu2 %3041 }
0x103d   : > { %v3047_v17 = vsel %vm225_vm0, %v3042_v60, 0 }
0x103f   : > { %v3926_v21 = vpop.eup %3925 }
0x1040   : > { %v3177_v22 = vsel %vm3028_vm6, %v3926_v21, 0.0  ;;  %v4482_v29 = vpop.eup %3927 }
0x1041   : > { %3178 = vadd.xlane.f32.xlu1 %v3177_v22  ;;  %v2999_v32 = vsel %vm295_vm4, %v4482_v29, 0.0 }
0x1042   : > { %3000 = vadd.xlane.f32.xlu0 %v2999_v32 }
0x105a   : > { %3293 = vrot.lane.b32.xlu1 %v4034_v2, %s3986_s9 }
0x1075   : > { %v2992_v26 = vpop.xlane.xlu2 %2991 }
0x1076   : > { %v2994_v27 = vsub.f32 %v2984_v4, %v2992_v26 }
0x1078   : > { %v2997_v28 = vmul.f32 1.442695, %v2994_v27 }
0x107a   : > { %3929 = vpow2.f32 %v2997_v28 }
0x107d   : > { %v3112_v6 = vpop.permute.xlu2 %3111 }
0x107e   : > { %3855 = vmatmul.msk.bf16.vlgmr.msrb.gmra.mxu0 %vm263_vm2, %v3112_v6 }
0x1080   : > { %v4487_v34 = vpop.eup %3929 }
0x1081   : > { %v3002_v36 = vsel %vm283_vm3, %v4487_v34, 0.0 }
0x1082   : > { %3003 = vadd.xlane.f32.xlu0 %v3002_v36 }
0x1085   : > { %v3253_v15 = vpop.permute.xlu2 %3252 }
0x1086   : > { %3861 = vmatmul.msk.bf16.vlgmr.msra.gmra.mxu1 %vm263_vm2, %v3253_v15 }
0x10a4   : > { %v3037_v30 = vpop.xlane.xlu1 %3036 }
0x10a5   : > { %3931 = vrcp.f32 %v3037_v30 }
0x10ab   : > { %v3932_v39 = vpop.eup %3931 }
0x10ac   : > { %v3039_v40 = vmul.f32 %v3932_v39, %v3924_v13 }
0x10ae   : > { %v2764_v31 = vpop.f32.mrf.mxu2  ;;  %v3040_v41 = vpack.c.bf16 %v3039_v40, %v3039_v40 }
0x10af   : > { %v2770_v33 = vsub.f32 %v4151_v50, %v2764_v31  ;;  %v3189_v50 = vsel %vm225_vm0, %v3184_v23, 0 }
0x10b1   : > { %3839 = vmatpush.msk.msra.mxu2 %vm543_vm5, %v2770_v33 }
0x10b2   : > { %3840 = vmatmul.msk.f32.vlgmr.msra.gmra.mxu2 %vm295_vm4, %v2656_v1 }
0x10b4   : > { %v2837_v35 = vpop.f32.mrf.mxu3  ;;  %v3179_v5 = vpop.xlane.xlu1 %3178 }
0x10b5   : > { %v2865_v12 = vsub.f32 %v4175_v11, %v2837_v35  ;;  %3933 = vrcp.f32 %v3179_v5  ;;  %v3001_v56 = vpop.xlane.xlu0 %3000 }
0x10b6   : > { %3935 = vrcp.f32 %v3001_v56 }
0x10b7   : > { %3845 = vmatpush.msk.msrb.mxu3 %vm543_vm5, %v2865_v12 }
0x10b8   : > { %3846 = vmatmul.msk.f32.vlgmr.msrb.gmra.mxu3 %vm295_vm4, %v4425_v37 }
0x10b9   : > { %3056 = vmatpush.bf16.msra.mxu3 %v3047_v17 }
0x10bb   : > { %v3934_v43 = vpop.eup %3933 }
0x10bc   : > { %v3181_v14 = vmul.f32 %v3934_v43, %v3926_v21  ;;  %v3936_v0 = vpop.eup %3935 }
0x10bd   : > { %3198 = vmatpush.bf16.msrb.mxu3 %v3189_v50  ;;  %v3007_v4 = vmul.f32 %v3936_v0, %v4482_v29 }
0x10be   : > { %v3182_v46 = vpack.c.bf16 %v3181_v14, %v3181_v14 }
0x10c0   : > { %3851 = vmatmul.msk.bf16.vlgmr.msra.gmra.mxu3 %vm221_vm1, %v3040_v41 }
0x10cc   : > { %v3294_v18 = vpop.permute.xlu1 %3293 }
0x10cd   : > { %v3296_v44 = vsel %vm263_vm2, %v3294_v18, 0 }
0x10ce   : > { %3305 = vmatpush.bf16.xpose.msra.mxu3 %v3296_v44 }
0x10d0   : > { %3857 = vmatmul.msk.bf16.vlgmr.msrb.gmra.mxu3 %vm221_vm1, %v3182_v46 }
0x10d6   : > { %3405 = vmatpush.bf16.xpose.msrb.mxu3 %v4106_v62 }
0x10e0   : > { %3862 = vmatmul.msk.bf16.vlgmr.msra.gmra.mxu3 %vm263_vm2, %v4075_v19 }
0x10f5   : > { %v3004_v61 = vpop.xlane.xlu0 %3003 }
0x10f6   : > { %3937 = vrcp.f32 %v3004_v61 }
0x10fb   : > { %v3125_v53 = vpop.f32.mrf.mxu0 }
0x10fc   : > { %v3130_v19 = vsel %vm295_vm4, %v3125_v53, -inf  ;;  %v3938_v1 = vpop.eup %3937 }
0x10fd   : > { %3131 = vmax.xlane.f32.xlu2 %v3130_v19  ;;  %v3008_v7 = vmul.f32 %v3938_v1, %v4487_v34 }
0x10ff   : > { %v3088_v13 = vpack.c.bf16 %v3008_v7, %v3007_v4 }
0x1103   : > { %v3127_v8 = vpop.f32.mrf.mxu0  ;;  %v3266_v56 = vpop.f32.mrf.mxu1 }
0x1104   : > { %v3133_v27 = vsel %vm283_vm3, %v3127_v8, -inf  ;;  %v3271_v61 = vsel %vm295_vm4, %v3266_v56, -inf }
0x110b   : > { %v3268_v0 = vpop.f32.mrf.mxu1 }
0x110c   : > { %v3274_v1 = vsel %vm283_vm3, %v3268_v0, -inf }
0x1135   : > { %v2860_v37 = vpop.f32.mrf.mxu2 }
0x1136   : > { %v2866_v47 = vsub.f32 %v4175_v11, %v2860_v37 }
0x1138   : > { %3847 = vmatpush.msk.msrb.mxu2 %vm543_vm5, %v2866_v47 }
0x1139   : > { %3848 = vmatmul.msk.f32.vlgmr.msrb.gmra.mxu2 %vm295_vm4, %v4447_v42 }
0x113b   : > { %v4510_v51 = vpop.f32.mrf.mxu3 }
0x1143   : > { %v3058_v52 = vpop.f32.mrf.mxu3 }
0x1144   : > { %3852 = vmatpush.msk.msra.mxu2 %vm543_vm5, %v3058_v52 }
0x1145   : > { %3853 = vmatmul.msk.f32.vlgmr.msra.gmra.mxu2 %vm295_vm4, %v2967_v57 }
0x114b   : > { %v3060_v62 = vpop.f32.mrf.mxu3 }
0x1153   : > { %v3200_v11 = vpop.f32.mrf.mxu3 }
0x115b   : > { %v3202_v54 = vpop.f32.mrf.mxu3 }
0x1163   : > { %v3307_v55 = vpop.f32.mrf.mxu3 }
0x1164   : > { %v3311_v58 = vsub.f32 %v3307_v55, %v4458_v45 }
0x1166   : > { %v3312_v42 = vsel %vm3028_vm6, %v3311_v58, -inf }
0x1167   : > { %3313 = vmax.xlane.f32.xlu1 %v3312_v42 }
0x116b   : > { %v3309_v59 = vpop.f32.mrf.mxu3 }
0x1170   : > { %v3132_v22 = vpop.xlane.xlu2 %3131 }
0x1171   : > { %v3136_v23 = vsub.f32 %v3125_v53, %v3132_v22 }
0x1173   : > { %v3138_v49 = vmul.f32 1.442695, %v3136_v23 }
0x1180   : > { %3324 = vrot.lane.b32.xlu1 %v4034_v2, %s3987_s10 }
0x11bc   : > { %v4519_v63 = vpop.f32.mrf.mxu2 }
0x11c8   : > { %v3085_v3 = vpop.f32.mrf.mxu2 }
0x11c9   : > { %v3089_v9 = vpack.c.bf16 %v3085_v3, %v3085_v3 }
0x11cb   : > { %v3095_v10 = vsel %vm3093_vm7, %v3089_v9, 0 }
0x11cc   : > { %3104 = vmatpush.bf16.msrb.mxu2 %v3095_v10 }
0x11cf   : > { %3854 = vmatmul.msk.bf16.vlgmr.msrb.gmra.mxu2 %vm295_vm4, %v3088_v13 }
0x11d0   : > { %3858 = vmatpush.msk.msra.mxu2 %vm543_vm5, %v3200_v11 }
0x11da   : > { %v3314_v48 = vpop.xlane.xlu1 %3313 }
0x11db   : > { %v3315_v38 = vsub.f32 %v3311_v58, %v3314_v48 }
0x11dd   : > { %v3316_v21 = vmul.f32 1.442695, %v3315_v38 }
0x11df   : > { %3939 = vpow2.f32 %v3316_v21  ;;  %3859 = vmatmul.msk.f32.vlgmr.msra.gmra.mxu2 %vm295_vm4, %v2968_v16 }
0x11e0   : > { %3941 = vpow2.f32 %v3138_v49 }
0x11e5   : > { %v3940_v60 = vpop.eup %3939 }
0x11e6   : > { %v3318_v25 = vsel %vm3028_vm6, %v3940_v60, 0.0  ;;  %v3942_v26 = vpop.eup %3941 }
0x11e7   : > { %3319 = vadd.xlane.f32.xlu0 %v3318_v25  ;;  %v3142_v20 = vsel %vm295_vm4, %v3942_v26, 0.0 }
0x11e8   : > { %3143 = vadd.xlane.f32.xlu2 %v3142_v20 }
0x11f2   : > { %v3325_v28 = vpop.permute.xlu1 %3324 }
0x11f3   : > { %v3330_v29 = vsel %vm225_vm0, %v3325_v28, 0 }
0x11f4   : > { %3339 = vmatpush.bf16.msrb.mxu2 %v3330_v29 }
0x11fb   : > { %3434 = vrot.lane.b32.xlu0 %v4034_v2, %s3988_s11 }
0x1200   : > { %3465 = vrot.lane.b32.xlu2 %v4034_v2, %s3989_s12 }
0x1225   : > { %3134 = vmax.xlane.f32.xlu0 %v3133_v27 }
0x1252   : > { %v4534_v30 = vpop.f32.mrf.mxu2 }
0x125a   : > { %v4536_v31 = vpop.f32.mrf.mxu2  ;;  %v3320_v32 = vpop.xlane.xlu0 %3319 }
0x125b   : > { %3943 = vrcp.f32 %v3320_v32  ;;  %v3144_v47 = vpop.xlane.xlu2 %3143 }
0x1261   : > { %v3944_v33 = vpop.eup %3943 }
0x1262   : > { %v3322_v34 = vmul.f32 %v3944_v33, %v3940_v60  ;;  %v3227_v35 = vpop.f32.mrf.mxu2 }
0x1263   : > { %v3231_v36 = vpack.c.bf16 %v3227_v35, %v3227_v35  ;;  %v3466_v48 = vpop.permute.xlu2 %3465 }
0x1264   : > { %v3323_v12 = vpack.c.bf16 %v3322_v34, %v3322_v34  ;;  %v3471_v38 = vsel %vm225_vm0, %v3466_v48, 0 }
0x1265   : > { %v3236_v17 = vsel %vm3093_vm7, %v3231_v36, 0 }
0x1266   : > { %3245 = vmatpush.bf16.msra.mxu0 %v3236_v17  ;;  %3863 = vmatmul.msk.bf16.vlgmr.msrb.gmra.mxu2 %vm221_vm1, %v3323_v12 }
0x126d   : > { %v3435_v39 = vpop.permute.xlu0 %3434 }
0x126e   : > { %v3437_v50 = vsel %vm263_vm2, %v3435_v39, 0 }
0x126f   : > { %3446 = vmatpush.bf16.xpose.msra.mxu2 %v3437_v50 }
0x1276   : > { %3868 = vmatmul.msk.bf16.vlgmr.msra.gmra.mxu2 %vm263_vm2, %v4082_v24 }
0x1298   : > { %v3135_v40 = vpop.xlane.xlu0 %3134 }
0x1299   : > { %v3137_v41 = vsub.f32 %v3127_v8, %v3135_v40 }
0x129b   : > { %v3140_v5 = vmul.f32 1.442695, %v3137_v41 }
0x129d   : > { %3945 = vpow2.f32 %v3140_v5 }
0x129e   : > { %3947 = vrcp.f32 %v3144_v47 }
0x12a3   : > { %v3946_v6 = vpop.eup %3945 }
0x12a4   : > { %v3145_v43 = vsel %vm283_vm3, %v3946_v6, 0.0  ;;  %v3948_v52 = vpop.eup %3947 }
0x12a5   : > { %3146 = vadd.xlane.f32.xlu0 %v3145_v43  ;;  %v3150_v53 = vmul.f32 %v3948_v52, %v3942_v26 }
0x12b9   : > { %3393 = vrot.lane.b32.xlu0 %v4034_v2, %s3982_s26 }
0x12e9   : > { %v3341_v14 = vpop.f32.mrf.mxu2 }
0x12ea   : > { %3864 = vmatpush.msk.msrb.mxu0 %vm543_vm5, %v3341_v14 }
0x12f1   : > { %v3343_v18 = vpop.f32.mrf.mxu2 }
0x12f9   : > { %v3448_v44 = vpop.f32.mrf.mxu2 }
0x12fa   : > { %v3452_v46 = vsub.f32 %v3448_v44, %v4458_v45  ;;  %v2969_v45 = vmul.f32 0.25, %v4510_v51 }
0x12fc   : > { %v3453_v24 = vsel %vm3028_vm6, %v3452_v46, -inf }
0x12fd   : > { %3454 = vmax.xlane.f32.xlu1 %v3453_v24 }
0x1301   : > { %v3450_v37 = vpop.f32.mrf.mxu2 }
0x1318   : > { %v3147_v57 = vpop.xlane.xlu0 %3146 }
0x1319   : > { %3949 = vrcp.f32 %v3147_v57  ;;  %v2970_v57 = vmul.f32 0.25, %v4519_v63 }
0x131f   : > { %v3950_v62 = vpop.eup %3949 }
0x1320   : > { %v3151_v19 = vmul.f32 %v3950_v62, %v3946_v6 }
0x1322   : > { %v3230_v11 = vpack.c.bf16 %v3151_v19, %v3150_v53 }
0x1324   : > { %3860 = vmatmul.msk.bf16.vlgmr.msra.gmra.mxu0 %vm295_vm4, %v3230_v11 }
0x1325   : > { %3480 = vmatpush.bf16.msra.mxu0 %v3471_v38 }
0x132b   : > { %v3394_v54 = vpop.permute.xlu0 %3393 }
0x132c   : > { %3867 = vmatmul.msk.bf16.vlgmr.msrb.gmra.mxu3 %vm263_vm2, %v3394_v54 }
0x1334   : > { %3865 = vmatmul.msk.f32.vlgmr.msrb.gmra.mxu0 %vm295_vm4, %v2969_v45 }
0x1370   : > { %v3455_v55 = vpop.xlane.xlu1 %3454 }
0x1371   : > { %v3456_v2 = vsub.f32 %v3452_v46, %v3455_v55 }
0x1373   : > { %v3457_v58 = vmul.f32 1.442695, %v3456_v2 }
0x1375   : > { %3951 = vpow2.f32 %v3457_v58 }
0x137b   : > { %v3952_v42 = vpop.eup %3951 }
0x137c   : > { %v3459_v59 = vsel %vm3028_vm6, %v3952_v42, 0.0 }
0x137d   : > { %3460 = vadd.xlane.f32.xlu1 %v3459_v59 }
0x1385   : > { %3272 = vmax.xlane.f32.xlu1 %v3271_v61 }
0x138d   : > { %3275 = vmax.xlane.f32.xlu1 %v3274_v1 }
0x13a1   : > { %v4557_v3 = vpop.f32.mrf.mxu0 }
0x13a9   : > { %v3249_v51 = vpop.f32.mrf.mxu0 }
0x13af   : > { %v3407_v4 = vpop.f32.mrf.mxu3 }
0x13b0   : > { %v3412_v7 = vsel %vm295_vm4, %v3407_v4, -inf }
0x13b1   : > { %v3368_v9 = vpop.f32.mrf.mxu0  ;;  %3413 = vmax.xlane.f32.xlu2 %v3412_v7 }
0x13b2   : > { %v3372_v10 = vpack.c.bf16 %v3368_v9, %v3368_v9 }
0x13b4   : > { %v3377_v13 = vsel %vm3093_vm7, %v3372_v10, 0 }
0x13b5   : > { %3386 = vmatpush.bf16.msrb.mxu1 %v3377_v13 }
0x13b7   : > { %v3409_v28 = vpop.f32.mrf.mxu3 }
0x13b8   : > { %v3415_v29 = vsel %vm283_vm3, %v3409_v28, -inf }
0x13f0   : > { %v3461_v15 = vpop.xlane.xlu1 %3460 }
0x13f1   : > { %3953 = vrcp.f32 %v3461_v15 }
0x13f7   : > { %v3954_v16 = vpop.eup %3953 }
0x13f8   : > { %v3463_v21 = vmul.f32 %v3954_v16, %v3952_v42  ;;  %v3273_v22 = vpop.xlane.xlu1 %3272 }
0x13f9   : > { %v3277_v23 = vsub.f32 %v3266_v56, %v3273_v22 }
0x13fa   : > { %v3464_v60 = vpack.c.bf16 %v3463_v21, %v3463_v21 }
0x13fb   : > { %v3279_v25 = vmul.f32 1.442695, %v3277_v23 }
0x13fc   : > { %3869 = vmatmul.msk.bf16.vlgmr.msra.gmra.mxu0 %vm221_vm1, %v3464_v60 }
0x13fd   : > { %3955 = vpow2.f32 %v3279_v25 }
0x1400   : > { %v3276_v49 = vpop.xlane.xlu1 %3275 }
0x1401   : > { %v3278_v26 = vsub.f32 %v3268_v0, %v3276_v49 }
0x1403   : > { %v3956_v20 = vpop.eup %3955  ;;  %v3281_v8 = vmul.f32 1.442695, %v3278_v26 }
0x1404   : > { %v3283_v27 = vsel %vm295_vm4, %v3956_v20, 0.0 }
0x1405   : > { %3957 = vpow2.f32 %v3281_v8  ;;  %3284 = vadd.xlane.f32.xlu1 %v3283_v27 }
0x140b   : > { %v3958_v32 = vpop.eup %3957 }
0x140c   : > { %v3286_v33 = vsel %vm283_vm3, %v3958_v32, 0.0 }
0x140d   : > { %3287 = vadd.xlane.f32.xlu0 %v3286_v33  ;;  %3416 = vmax.xlane.f32.xlu1 %v3415_v29 }
0x1421   : > { %3538 = vrot.lane.b32.xlu0 %v3249_v51, %s3990_s13 }
0x1424   : > { %v3414_v34 = vpop.xlane.xlu2 %3413 }
0x1425   : > { %v3418_v35 = vsub.f32 %v3407_v4, %v3414_v34 }
0x1427   : > { %v3420_v36 = vmul.f32 1.442695, %v3418_v35 }
0x1429   : > { %3959 = vpow2.f32 %v3420_v36 }
0x142f   : > { %v3960_v12 = vpop.eup %3959 }
0x1430   : > { %v3424_v17 = vsel %vm295_vm4, %v3960_v12, 0.0 }
0x1431   : > { %3425 = vadd.xlane.f32.xlu1 %v3424_v17 }
0x1478   : > { %v3285_v39 = vpop.xlane.xlu1 %3284 }
0x1479   : > { %v3482_v50 = vpop.f32.mrf.mxu0  ;;  %3961 = vrcp.f32 %v3285_v39 }
0x147a   : > { %3870 = vmatpush.msk.msra.mxu1 %vm543_vm5, %v3482_v50 }
0x147f   : > { %v3962_v14 = vpop.eup %3961 }
0x1480   : > { %v3288_v40 = vpop.xlane.xlu0 %3287  ;;  %v3417_v41 = vpop.xlane.xlu1 %3416  ;;  %v3291_v44 = vmul.f32 %v3962_v14, %v3956_v20 }
0x1481   : > { %3963 = vrcp.f32 %v3288_v40  ;;  %v3419_v5 = vsub.f32 %v3409_v28, %v3417_v41  ;;  %v3484_v6 = vpop.f32.mrf.mxu0 }
0x1483   : > { %v3422_v43 = vmul.f32 1.442695, %v3419_v5 }
0x1485   : > { %3965 = vpow2.f32 %v3422_v43 }
0x1487   : > { %v3964_v18 = vpop.eup %3963 }
0x1488   : > { %v3292_v46 = vmul.f32 %v3964_v18, %v3958_v32 }
0x148a   : > { %v3371_v24 = vpack.c.bf16 %v3292_v46, %v3291_v44 }
0x148b   : > { %v3966_v37 = vpop.eup %3965 }
0x148c   : > { %3866 = vmatmul.msk.bf16.vlgmr.msrb.gmra.mxu1 %vm295_vm4, %v3371_v24  ;;  %v3427_v47 = vsel %vm283_vm3, %v3966_v37, 0.0 }
0x148d   : > { %3428 = vadd.xlane.f32.xlu1 %v3427_v47 }
0x1493   : > { %v3539_v61 = vpop.permute.xlu0 %3538 }
0x1494   : > { %v3559_v10 = vsel %vm263_vm2, %v4536_v31, %v3539_v61 }
0x149c   : > { %3871 = vmatmul.msk.f32.vlgmr.msra.gmra.mxu1 %vm295_vm4, %v2970_v57 }
0x14a4   : > { %v3426_v52 = vpop.xlane.xlu1 %3425 }
0x14a6   : > { %3536 = vrot.lane.b32.xlu1 %v4557_v3, %s3990_s13 }
0x1500   : > { %v3429_v53 = vpop.xlane.xlu1 %3428 }
0x1501   : > { %3967 = vrcp.f32 %v3429_v53 }
0x1502   : > { %3969 = vrcp.f32 %v3426_v52 }
0x1507   : > { %v3968_v11 = vpop.eup %3967 }
0x1508   : > { %v3970_v54 = vpop.eup %3969  ;;  %v3433_v55 = vmul.f32 %v3968_v11, %v3966_v37 }
0x1509   : > { %v3388_v62 = vpop.f32.mrf.mxu1  ;;  %v3432_v63 = vmul.f32 %v3970_v54, %v3960_v12 }
0x150a   : > { %3544 = vrot.lane.b32.xlu2 %v3388_v62, %s3991_s14 }
0x150b   : > { %v3512_v42 = vpack.c.bf16 %v3433_v55, %v3432_v63 }
0x1511   : > { %v3390_v19 = vpop.f32.mrf.mxu1 }
0x1512   : > { %3546 = vrot.lane.b32.xlu1 %v3390_v19, %s3991_s14 }
0x1518   : > { %v3537_v0 = vpop.permute.xlu1 %3536 }
0x1519   : > { %v3509_v45 = vpop.f32.mrf.mxu1  ;;  %v3558_v3 = vsel %vm263_vm2, %v4534_v30, %v3537_v0 }
0x151a   : > { %v3513_v2 = vpack.c.bf16 %v3509_v45, %v3509_v45 }
0x151c   : > { %v3518_v58 = vsel %vm3093_vm7, %v3513_v2, 0 }
0x151d   : > { %3527 = vmatpush.bf16.msra.mxu3 %v3518_v58 }
0x1520   : > { %3872 = vmatmul.msk.bf16.vlgmr.msra.gmra.mxu3 %vm295_vm4, %v3512_v42 }
0x1564   : > { %v3545_v1 = vpop.permute.xlu2 %3544 }
0x1565   : > { %v3561_v51 = vsel %vm3560_vm8, %v3558_v3, %v3545_v1 }
0x1584   : > { %v3547_v4 = vpop.permute.xlu1 %3546 }
0x1585   : > { %v3562_v13 = vsel %vm3560_vm8, %v3559_v10, %v3547_v4 }
0x15a3   : > { %v3529_v59 = vpop.f32.mrf.mxu3 }
0x15a4   : > { %3552 = vrot.lane.b32.xlu0 %v3529_v59, %s3992_s18 }
0x15ab   : > { %v3531_v56 = vpop.f32.mrf.mxu3 }
0x15ac   : > { %3554 = vrot.lane.b32.xlu1 %v3531_v56, %s3992_s18 }
0x1616   : > { %v3553_v7 = vpop.permute.xlu0 %3552 }
0x1617   : > { %v3564_v9 = vsel %vm3563_vm9, %v3561_v51, %v3553_v7 }
0x1618   : > { %3567 = vst.msk [vmem:[%s211_s21] sm:$0xff] %vm3566_vm10, %v3564_v9 }
0x161e   : > { %v3555_v48 = vpop.permute.xlu1 %3554 }
0x161f   : > { %v3565_v38 = vsel %vm3563_vm9, %v3562_v13, %v3555_v48 }
0x1620   : > { %3569 = vst.msk [vmem:[%s211_s21 + $0x8] sm:$0xf] %vm3568_vm11, %v3565_v38 }
0x1621 PF: > { %s14_s15 = sadd.s32 1, %s3977_s15  }
0x1622   : > { %p11_p4 = scmp.ge.s32.totalorder %s14_s15, 4  }
0x1624   :  { %13 = sbr.rel (!%p11_p4) target bundleno = 1 (0x1), region = 69 }

</bundles_post_ra>
